<compile_context>
chip_gen: v5e
topology: v5e:2x2
jax: 0.10.0
libtpu: 0.0.40
codegen_flags: <defaults>
</compile_context>

<pallas_src>
import numpy as np
import jax
import jax.numpy as jnp
from jax import lax
from jax.experimental import pallas as pl
from jax.experimental.pallas import tpu as pltpu


# ----------------------------------------------------------------------------- host helpers
def _bilinear_matrix(n_in, n_out):
    """M (n_out, n_in) s.t. M @ v == 1-D bilinear upsample of v, align_corners=True."""
    if n_in == 1:
        return np.ones((n_out, 1), np.float32)
    src = np.arange(n_out, dtype=np.float64) * (n_in - 1) / (n_out - 1)
    i0 = np.clip(np.floor(src).astype(np.int64), 0, n_in - 1)
    i1 = np.minimum(i0 + 1, n_in - 1)
    frac = src - i0
    m = np.zeros((n_out, n_in), np.float64)
    m[np.arange(n_out), i0] += 1.0 - frac
    m[np.arange(n_out), i1] += frac
    return m.astype(np.float32)


def _pick_padded_width(H2, W2, lane=128, max_waste=1.5):
    """Smallest padded row width Wp >= W2+2 with H2*Wp % 128 == 0 (lane-dense flat
    output rows -> unmasked stores), unless that would inflate Nout > max_waste x."""
    base = W2 + 2
    for wp in range(base, base + lane + 1):
        if (H2 * wp) % lane == 0:
            if H2 * wp <= max_waste * H2 * base:
                return wp
            break
    return base


def _make_upsample_matrix(H, W, Wp, Nfull):
    """(H*W, Nfull) matrix mapping a flattened (H, W) plane onto the row-major
    flattened, zero-padded (2H+2, Wp) bilinearly-upsampled plane (align_corners=True).
    The zero 3x3-halo and the trailing zero columns (so every flat 3x3-tap window
    stays in bounds, and Nfull is a lane multiple) are baked in."""
    H2, W2 = 2 * H, 2 * W
    uh = _bilinear_matrix(H, H2)                         # (H2, H)
    uw = _bilinear_matrix(W, W2)                         # (W2, W)
    core = np.einsum('rh,sw->hwrs', uh, uw).reshape(H * W, H2, W2)
    k = np.zeros((H * W, H2 + 2, Wp), np.float32)
    k[:, 1:H2 + 1, 1:W2 + 1] = core                      # 1-px zero halo baked in
    k = k.reshape(H * W, (H2 + 2) * Wp)
    pad = Nfull - k.shape[1]
    k = np.concatenate([k, np.zeros((H * W, pad), np.float32)], axis=1)
    return k


def _num_tensorcores_per_device():
    """2 for chips exposing two TensorCores per device (v4/v5p/v7x), else 1."""
    try:
        kind = jax.devices()[0].device_kind.lower()
    except Exception:
        return 1
    return 2 if any(t in kind for t in ("v4", "v5p", "v7")) else 1


# ----------------------------------------------------------------------------- forward
def upconv_forward(x, dw_weight, dw_bias, pw_weight, pw_bias, *,
                   compute_dtype=jnp.bfloat16, num_programs=None):
    B, C_in, H, W = x.shape
    C_out = pw_weight.shape[0]
    H2, W2 = 2 * H, 2 * W
    HW = H * W

    # ---- lane-dense flat geometry ------------------------------------------------
    Wp = _pick_padded_width(H2, W2)                       # padded output row width
    Nout = H2 * Wp                                        # flat output length / channel
    Nfull = int(np.ceil(((H2 + 2) * Wp + 2) / 128)) * 128  # padded-plane flat length

    # ---- grid strategy: fold batch on 1-TC chips, keep >=2 parallel programs on 2-TC
    if num_programs is None:
        two_tc = _num_tensorcores_per_device() >= 2
        G = 2 if (two_tc and B >= 2 and B % 2 == 0) else 1
    else:
        G = int(num_programs)
    if G < 1 or B % G != 0:
        G = 1
    Bg = B // G                                           # batch elements per program
    BgC = Bg * C_in
    BgNout = Bg * Nout

    # ---- sublane-aligned tap groups + bias row group -----------------------------
    Cg = -(-C_in // 8) * 8                                # tap-group height (multiple of 8)
    Krows = 9 * Cg + 8                                    # 9 tap groups + ones group (bias)
    bias_col = 9 * Cg

    # ---- host-side operand prep ---------------------------------------------------
    upk = jnp.asarray(_make_upsample_matrix(H, W, Wp, Nfull)).astype(compute_dtype)

    # fused depthwise+pointwise weights, tap-major groups padded to Cg rows,
    # plus an extra column holding the effective bias (matched by a ones row in col).
    pww = pw_weight.reshape(C_out, C_in).astype(jnp.float32)
    dwt = dw_weight.reshape(C_in, 9).astype(jnp.float32)
    wc_core = pww[:, None, :] * dwt.T[None, :, :]         # (C_out, 9, C_in)
    wc_core = jnp.pad(wc_core, ((0, 0), (0, 0), (0, Cg - C_in)))
    bias_eff = pw_bias.astype(jnp.float32) + pww @ dw_bias.astype(jnp.float32)
    bias_blk = jnp.concatenate(
        [bias_eff[:, None], jnp.zeros((C_out, 7), jnp.float32)], axis=1)
    wc = jnp.concatenate([wc_core.reshape(C_out, 9 * Cg), bias_blk], axis=1)   # (C_out, Krows)
    wc = wc.astype(compute_dtype)

    # lane-dense input, batch folded into the matmul-1 M dimension
    x_host = x.astype(compute_dtype).reshape(G, BgC, HW)

    # flat offsets of the 9 conv taps on the padded-width grid
    tap_offsets = tuple(di * Wp + dj for di in range(3) for dj in range(3))

    # ---- kernel --------------------------------------------------------------------
    def kernel(x_ref, upk_ref, wc_ref, o_ref, col_ref):
        # Constant content: tap-group padding rows and the bias group.  A single
        # full-tile ones-fill covers both (wc has zero columns at padding rows, so
        # their value only needs to be finite; the bias group must be exactly 1).
        col_ref[...] = jnp.ones_like(col_ref)

        # (1) bilinear upsample of ALL (batch, channel) planes: one MXU matmul.
        padflat = jnp.dot(x_ref[0], upk_ref[...],
                          preferred_element_type=jnp.float32)          # (BgC, Nfull) f32
        pf = padflat.astype(col_ref.dtype)

        # (2) im2col: 9 contiguous flat windows per batch element, written into
        #     sublane-aligned Cg-row tap groups (lane-dense Nout columns).
        for bg in range(Bg):
            rows = pf[bg * C_in:(bg + 1) * C_in, :]
            for t, off in enumerate(tap_offsets):
                col_ref[t * Cg:t * Cg + C_in, bg * Nout:(bg + 1) * Nout] = \
                    rows[:, off:off + Nout]

        # (3) fused depthwise-3x3 + pointwise-1x1 conv + bias: one MXU matmul
        #     (K = 9*Cg + 8, bias folded via the ones group).
        res = jnp.dot(wc_ref[...], col_ref[...],
                      preferred_element_type=jnp.float32)               # (C_out, Bg*Nout)
        for bg in range(Bg):
            o_ref[bg] = res[:, bg * Nout:(bg + 1) * Nout]

    # ---- BlockSpecs -----------------------------------------------------------------
    def resident_spec(shape, single_buffer):
        # Grid-invariant block; single-buffer it when large (dense upk at bigger H/W)
        # to stay inside the default scoped-VMEM limits on v5e/v7x.
        if single_buffer and hasattr(pl, "Buffered"):
            try:
                return pl.BlockSpec(shape, lambda g: (0, 0), pipeline_mode=pl.Buffered(1))
            except TypeError:
                pass
        return pl.BlockSpec(shape, lambda g: (0, 0))

    itemsize = jnp.dtype(compute_dtype).itemsize
    upk_bytes = HW * Nfull * itemsize

    grid_spec = pltpu.PrefetchScalarGridSpec(
        num_scalar_prefetch=0,
        grid=(G,),
        in_specs=[
            pl.BlockSpec((1, BgC, HW), lambda g: (g, 0, 0)),          # lane-dense input
            resident_spec((HW, Nfull), upk_bytes > (4 << 20)),        # upsample matrix
            resident_spec((C_out, Krows), False),                     # fused conv weights (+bias col)
        ],
        out_specs=pl.BlockSpec((Bg, C_out, Nout), lambda g: (g, 0, 0)),   # lane-dense output
        scratch_shapes=[pltpu.VMEM((Krows, BgNout), compute_dtype)],      # im2col buffer
    )

    est_bytes = (2 * BgC * HW * itemsize            # x block (double-buffered)
                 + 2 * Bg * C_out * Nout * 4        # output block
                 + 2 * upk_bytes                    # upsample matrix
                 + 2 * C_out * Krows * itemsize     # fused weights
                 + Krows * BgNout * itemsize        # im2col scratch
                 + BgC * Nfull * 4)                 # padflat temporary
    vmem_limit = int(min(64 << 20, max(32 << 20, 2 * est_bytes)))

    out_flat = pl.pallas_call(
        kernel,
        out_shape=jax.ShapeDtypeStruct((B, C_out, Nout), jnp.float32),
        grid_spec=grid_spec,
        compiler_params=pltpu.CompilerParams(
            dimension_semantics=("parallel",),
            vmem_limit_bytes=vmem_limit,
        ),
    )(x_host, upk, wc)

    # drop the padded columns (free wrapper-side reshape + slice)
    return out_flat.reshape(B, C_out, H2, Wp)[:, :, :, :W2]


# ----------------------------------------------------------------------------- reference
def upconv_reference(x, dw_weight, dw_bias, pw_weight, pw_bias):
    """Pure-JAX reference matching torch semantics (f32)."""
    B, C_in, H, W = x.shape
    H2, W2 = 2 * H, 2 * W
    uh = jnp.asarray(_bilinear_matrix(H, H2))
    uw = jnp.asarray(_bilinear_matrix(W, W2))
    up = jnp.einsum('ph,bchw,qw->bcpq', uh, x, uw)
    dw = lax.conv_general_dilated(
        up, dw_weight, window_strides=(1, 1), padding=((1, 1), (1, 1)),
        dimension_numbers=('NCHW', 'OIHW', 'NCHW'), feature_group_count=C_in)
    dw = dw + dw_bias.reshape(1, C_in, 1, 1)
    pw = lax.conv_general_dilated(
        dw, pw_weight, window_strides=(1, 1), padding=((0, 0), (0, 0)),
        dimension_numbers=('NCHW', 'OIHW', 'NCHW'))
    return pw + pw_bias.reshape(1, -1, 1, 1)


if __name__ == "__main__":
    B, C_in, C_out, H, W = 2, 4, 8, 16, 16

    key = jax.random.PRNGKey(0)
    kx, k1, k2, k3, k4 = jax.random.split(key, 5)
    x = jax.random.normal(kx, (B, C_in, H, W), jnp.float32)
    # synthetic parameters (shapes per nn.Conv2d in __init__)
    dw_weight = jax.random.normal(k1, (C_in, 1, 3, 3), jnp.float32) * 0.2
    dw_bias = jax.random.normal(k2, (C_in,), jnp.float32) * 0.1
    pw_weight = jax.random.normal(k3, (C_out, C_in, 1, 1), jnp.float32) * 0.2
    pw_bias = jax.random.normal(k4, (C_out,), jnp.float32) * 0.1

    ref = upconv_reference(x, dw_weight, dw_bias, pw_weight, pw_bias)

    # Exact-semantics path (f32 MXU operands): tight check against the reference.
    out_f32 = jax.block_until_ready(
        upconv_forward(x, dw_weight, dw_bias, pw_weight, pw_bias,
                       compute_dtype=jnp.float32))
    assert out_f32.shape == (B, C_out, 2 * H, 2 * W), out_f32.shape
    assert jnp.allclose(out_f32, ref, atol=1e-4, rtol=1e-4), \
        float(jnp.max(jnp.abs(out_f32 - ref)))

    # Perf-default path (bf16 MXU operands, f32 accumulation): relaxed tolerance
    # as endorsed by the perf review (bf16 operand rounding is ~4e-3 relative).
    out_bf16 = jax.block_until_ready(
        upconv_forward(x, dw_weight, dw_bias, pw_weight, pw_bias))
    assert out_bf16.shape == (B, C_out, 2 * H, 2 * W), out_bf16.shape
    max_err = float(jnp.max(jnp.abs(out_bf16 - ref)))
    assert max_err < 5e-2 * max(1.0, float(jnp.max(jnp.abs(ref)))), max_err

    print("KERNEL_OK")
</pallas_src>

<mosaic_0001>
module attributes {stable_mosaic.version = 11 : i64} {
  func.func @kernel(%arg0: i32, %arg1: memref<1x8x256xf32, #tpu.memory_space<vmem>>, %arg2: memref<256x1280xf32, #tpu.memory_space<vmem>>, %arg3: memref<8x80xf32, #tpu.memory_space<vmem>>, %arg4: memref<2x8x1152xf32, #tpu.memory_space<vmem>>, %arg5: memref<80x2304xf32, #tpu.memory_space<vmem>>) attributes {dimension_semantics = [#tpu.dimension_semantics<parallel>], iteration_bounds = array<i64: 1>, scalar_prefetch = 0 : i64, scratch_operands = 1 : i64, tpu.core_type = #tpu.core_type<tc>, window_params = [{transform_indices = @transform_0, window_bounds = array<i64: 1, 8, 256>}, {pipeline_mode = #tpu.pipeline_mode<synchronous>, transform_indices = @transform_1, window_bounds = array<i64: 256, 1280>}, {pipeline_mode = #tpu.pipeline_mode<synchronous>, transform_indices = @transform_2, window_bounds = array<i64: 8, 80>}, {transform_indices = @transform_3, window_bounds = array<i64: 2, 8, 1152>}]} {
    %cst = arith.constant 1.000000e+00 : f32
    %0 = vector.broadcast %cst : f32 to vector<80x2304xf32>
    %c0 = arith.constant 0 : index
    %c0_0 = arith.constant 0 : index
    %1 = vector.load %arg5[%c0, %c0_0] : memref<80x2304xf32, #tpu.memory_space<vmem>>, vector<80x2304xf32>
    tpu.vector_store %arg5[%c0, %c0_0], %0 {strides = array<i32>} : memref<80x2304xf32, #tpu.memory_space<vmem>>, vector<80x2304xf32>,
    %c0_1 = arith.constant 0 : index
    %c0_2 = arith.constant 0 : index
    %c0_3 = arith.constant 0 : index
    %2 = vector.load %arg1[%c0_1, %c0_2, %c0_3] : memref<1x8x256xf32, #tpu.memory_space<vmem>>, vector<1x8x256xf32>
    %3 = vector.shape_cast %2 : vector<1x8x256xf32> to vector<8x256xf32>
    %c0_4 = arith.constant 0 : index
    %c0_5 = arith.constant 0 : index
    %4 = vector.load %arg2[%c0_4, %c0_5] : memref<256x1280xf32, #tpu.memory_space<vmem>>, vector<256x1280xf32>
    %cst_6 = arith.constant dense<0.000000e+00> : vector<8x1280xf32>
    %5 = tpu.matmul %3, %4, %cst_6 {dimension_numbers = #tpu.dot_dimension_numbers<[1], [0], [0], [1], [0, 0, 1, 1], [], []>} : vector<8x256xf32>, vector<256x1280xf32>, vector<8x1280xf32> -> vector<8x1280xf32>
    %6 = vector.extract_strided_slice %5 {offsets = [0, 0], sizes = [4, 1280], strides = [1, 1]} : vector<8x1280xf32> to vector<4x1280xf32>
    %7 = vector.extract_strided_slice %6 {offsets = [0, 0], sizes = [4, 1152], strides = [1, 1]} : vector<4x1280xf32> to vector<4x1152xf32>
    %c0_7 = arith.constant 0 : index
    %c0_8 = arith.constant 0 : index
    %8 = vector.load %arg5[%c0_7, %c0_8] : memref<80x2304xf32, #tpu.memory_space<vmem>>, vector<4x1152xf32>
    tpu.vector_store %arg5[%c0_7, %c0_8], %7 {strides = array<i32>} : memref<80x2304xf32, #tpu.memory_space<vmem>>, vector<4x1152xf32>,
    %9 = vector.extract_strided_slice %6 {offsets = [0, 1], sizes = [4, 1152], strides = [1, 1]} : vector<4x1280xf32> to vector<4x1152xf32>
    %c8 = arith.constant 8 : index
    %c0_9 = arith.constant 0 : index
    %10 = vector.load %arg5[%c8, %c0_9] : memref<80x2304xf32, #tpu.memory_space<vmem>>, vector<4x1152xf32>
    tpu.vector_store %arg5[%c8, %c0_9], %9 {strides = array<i32>} : memref<80x2304xf32, #tpu.memory_space<vmem>>, vector<4x1152xf32>,
    %11 = vector.extract_strided_slice %6 {offsets = [0, 2], sizes = [4, 1152], strides = [1, 1]} : vector<4x1280xf32> to vector<4x1152xf32>
    %c16 = arith.constant 16 : index
    %c0_10 = arith.constant 0 : index
    %12 = vector.load %arg5[%c16, %c0_10] : memref<80x2304xf32, #tpu.memory_space<vmem>>, vector<4x1152xf32>
    tpu.vector_store %arg5[%c16, %c0_10], %11 {strides = array<i32>} : memref<80x2304xf32, #tpu.memory_space<vmem>>, vector<4x1152xf32>,
    %13 = vector.extract_strided_slice %6 {offsets = [0, 36], sizes = [4, 1152], strides = [1, 1]} : vector<4x1280xf32> to vector<4x1152xf32>
    %c24 = arith.constant 24 : index
    %c0_11 = arith.constant 0 : index
    %14 = vector.load %arg5[%c24, %c0_11] : memref<80x2304xf32, #tpu.memory_space<vmem>>, vector<4x1152xf32>
    tpu.vector_store %arg5[%c24, %c0_11], %13 {strides = array<i32>} : memref<80x2304xf32, #tpu.memory_space<vmem>>, vector<4x1152xf32>,
    %15 = vector.extract_strided_slice %6 {offsets = [0, 37], sizes = [4, 1152], strides = [1, 1]} : vector<4x1280xf32> to vector<4x1152xf32>
    %c32 = arith.constant 32 : index
    %c0_12 = arith.constant 0 : index
    %16 = vector.load %arg5[%c32, %c0_12] : memref<80x2304xf32, #tpu.memory_space<vmem>>, vector<4x1152xf32>
    tpu.vector_store %arg5[%c32, %c0_12], %15 {strides = array<i32>} : memref<80x2304xf32, #tpu.memory_space<vmem>>, vector<4x1152xf32>,
    %17 = vector.extract_strided_slice %6 {offsets = [0, 38], sizes = [4, 1152], strides = [1, 1]} : vector<4x1280xf32> to vector<4x1152xf32>
    %c40 = arith.constant 40 : index
    %c0_13 = arith.constant 0 : index
    %18 = vector.load %arg5[%c40, %c0_13] : memref<80x2304xf32, #tpu.memory_space<vmem>>, vector<4x1152xf32>
    tpu.vector_store %arg5[%c40, %c0_13], %17 {strides = array<i32>} : memref<80x2304xf32, #tpu.memory_space<vmem>>, vector<4x1152xf32>,
    %19 = vector.extract_strided_slice %6 {offsets = [0, 72], sizes = [4, 1152], strides = [1, 1]} : vector<4x1280xf32> to vector<4x1152xf32>
    %c48 = arith.constant 48 : index
    %c0_14 = arith.constant 0 : index
    %20 = vector.load %arg5[%c48, %c0_14] : memref<80x2304xf32, #tpu.memory_space<vmem>>, vector<4x1152xf32>
    tpu.vector_store %arg5[%c48, %c0_14], %19 {strides = array<i32>} : memref<80x2304xf32, #tpu.memory_space<vmem>>, vector<4x1152xf32>,
    %21 = vector.extract_strided_slice %6 {offsets = [0, 73], sizes = [4, 1152], strides = [1, 1]} : vector<4x1280xf32> to vector<4x1152xf32>
    %c56 = arith.constant 56 : index
    %c0_15 = arith.constant 0 : index
    %22 = vector.load %arg5[%c56, %c0_15] : memref<80x2304xf32, #tpu.memory_space<vmem>>, vector<4x1152xf32>
    tpu.vector_store %arg5[%c56, %c0_15], %21 {strides = array<i32>} : memref<80x2304xf32, #tpu.memory_space<vmem>>, vector<4x1152xf32>,
    %23 = vector.extract_strided_slice %6 {offsets = [0, 74], sizes = [4, 1152], strides = [1, 1]} : vector<4x1280xf32> to vector<4x1152xf32>
    %c64 = arith.constant 64 : index
    %c0_16 = arith.constant 0 : index
    %24 = vector.load %arg5[%c64, %c0_16] : memref<80x2304xf32, #tpu.memory_space<vmem>>, vector<4x1152xf32>
    tpu.vector_store %arg5[%c64, %c0_16], %23 {strides = array<i32>} : memref<80x2304xf32, #tpu.memory_space<vmem>>, vector<4x1152xf32>,
    %25 = vector.extract_strided_slice %5 {offsets = [4, 0], sizes = [4, 1280], strides = [1, 1]} : vector<8x1280xf32> to vector<4x1280xf32>
    %26 = vector.extract_strided_slice %25 {offsets = [0, 0], sizes = [4, 1152], strides = [1, 1]} : vector<4x1280xf32> to vector<4x1152xf32>
    %c0_17 = arith.constant 0 : index
    %c1152 = arith.constant 1152 : index
    %27 = vector.load %arg5[%c0_17, %c1152] : memref<80x2304xf32, #tpu.memory_space<vmem>>, vector<4x1152xf32>
    tpu.vector_store %arg5[%c0_17, %c1152], %26 {strides = array<i32>} : memref<80x2304xf32, #tpu.memory_space<vmem>>, vector<4x1152xf32>,
    %28 = vector.extract_strided_slice %25 {offsets = [0, 1], sizes = [4, 1152], strides = [1, 1]} : vector<4x1280xf32> to vector<4x1152xf32>
    %c8_18 = arith.constant 8 : index
    %c1152_19 = arith.constant 1152 : index
    %29 = vector.load %arg5[%c8_18, %c1152_19] : memref<80x2304xf32, #tpu.memory_space<vmem>>, vector<4x1152xf32>
    tpu.vector_store %arg5[%c8_18, %c1152_19], %28 {strides = array<i32>} : memref<80x2304xf32, #tpu.memory_space<vmem>>, vector<4x1152xf32>,
    %30 = vector.extract_strided_slice %25 {offsets = [0, 2], sizes = [4, 1152], strides = [1, 1]} : vector<4x1280xf32> to vector<4x1152xf32>
    %c16_20 = arith.constant 16 : index
    %c1152_21 = arith.constant 1152 : index
    %31 = vector.load %arg5[%c16_20, %c1152_21] : memref<80x2304xf32, #tpu.memory_space<vmem>>, vector<4x1152xf32>
    tpu.vector_store %arg5[%c16_20, %c1152_21], %30 {strides = array<i32>} : memref<80x2304xf32, #tpu.memory_space<vmem>>, vector<4x1152xf32>,
    %32 = vector.extract_strided_slice %25 {offsets = [0, 36], sizes = [4, 1152], strides = [1, 1]} : vector<4x1280xf32> to vector<4x1152xf32>
    %c24_22 = arith.constant 24 : index
    %c1152_23 = arith.constant 1152 : index
    %33 = vector.load %arg5[%c24_22, %c1152_23] : memref<80x2304xf32, #tpu.memory_space<vmem>>, vector<4x1152xf32>
    tpu.vector_store %arg5[%c24_22, %c1152_23], %32 {strides = array<i32>} : memref<80x2304xf32, #tpu.memory_space<vmem>>, vector<4x1152xf32>,
    %34 = vector.extract_strided_slice %25 {offsets = [0, 37], sizes = [4, 1152], strides = [1, 1]} : vector<4x1280xf32> to vector<4x1152xf32>
    %c32_24 = arith.constant 32 : index
    %c1152_25 = arith.constant 1152 : index
    %35 = vector.load %arg5[%c32_24, %c1152_25] : memref<80x2304xf32, #tpu.memory_space<vmem>>, vector<4x1152xf32>
    tpu.vector_store %arg5[%c32_24, %c1152_25], %34 {strides = array<i32>} : memref<80x2304xf32, #tpu.memory_space<vmem>>, vector<4x1152xf32>,
    %36 = vector.extract_strided_slice %25 {offsets = [0, 38], sizes = [4, 1152], strides = [1, 1]} : vector<4x1280xf32> to vector<4x1152xf32>
    %c40_26 = arith.constant 40 : index
    %c1152_27 = arith.constant 1152 : index
    %37 = vector.load %arg5[%c40_26, %c1152_27] : memref<80x2304xf32, #tpu.memory_space<vmem>>, vector<4x1152xf32>
    tpu.vector_store %arg5[%c40_26, %c1152_27], %36 {strides = array<i32>} : memref<80x2304xf32, #tpu.memory_space<vmem>>, vector<4x1152xf32>,
    %38 = vector.extract_strided_slice %25 {offsets = [0, 72], sizes = [4, 1152], strides = [1, 1]} : vector<4x1280xf32> to vector<4x1152xf32>
    %c48_28 = arith.constant 48 : index
    %c1152_29 = arith.constant 1152 : index
    %39 = vector.load %arg5[%c48_28, %c1152_29] : memref<80x2304xf32, #tpu.memory_space<vmem>>, vector<4x1152xf32>
    tpu.vector_store %arg5[%c48_28, %c1152_29], %38 {strides = array<i32>} : memref<80x2304xf32, #tpu.memory_space<vmem>>, vector<4x1152xf32>,
    %40 = vector.extract_strided_slice %25 {offsets = [0, 73], sizes = [4, 1152], strides = [1, 1]} : vector<4x1280xf32> to vector<4x1152xf32>
    %c56_30 = arith.constant 56 : index
    %c1152_31 = arith.constant 1152 : index
    %41 = vector.load %arg5[%c56_30, %c1152_31] : memref<80x2304xf32, #tpu.memory_space<vmem>>, vector<4x1152xf32>
    tpu.vector_store %arg5[%c56_30, %c1152_31], %40 {strides = array<i32>} : memref<80x2304xf32, #tpu.memory_space<vmem>>, vector<4x1152xf32>,
    %42 = vector.extract_strided_slice %25 {offsets = [0, 74], sizes = [4, 1152], strides = [1, 1]} : vector<4x1280xf32> to vector<4x1152xf32>
    %c64_32 = arith.constant 64 : index
    %c1152_33 = arith.constant 1152 : index
    %43 = vector.load %arg5[%c64_32, %c1152_33] : memref<80x2304xf32, #tpu.memory_space<vmem>>, vector<4x1152xf32>
    tpu.vector_store %arg5[%c64_32, %c1152_33], %42 {strides = array<i32>} : memref<80x2304xf32, #tpu.memory_space<vmem>>, vector<4x1152xf32>,
    %c0_34 = arith.constant 0 : index
    %c0_35 = arith.constant 0 : index
    %44 = vector.load %arg3[%c0_34, %c0_35] : memref<8x80xf32, #tpu.memory_space<vmem>>, vector<8x80xf32>
    %c0_36 = arith.constant 0 : index
    %c0_37 = arith.constant 0 : index
    %45 = vector.load %arg5[%c0_36, %c0_37] : memref<80x2304xf32, #tpu.memory_space<vmem>>, vector<80x2304xf32>
    %cst_38 = arith.constant dense<0.000000e+00> : vector<8x2304xf32>
    %46 = tpu.matmul %44, %45, %cst_38 {dimension_numbers = #tpu.dot_dimension_numbers<[1], [0], [0], [1], [0, 0, 1, 1], [], []>} : vector<8x80xf32>, vector<80x2304xf32>, vector<8x2304xf32> -> vector<8x2304xf32>
    %47 = vector.extract_strided_slice %46 {offsets = [0, 0], sizes = [8, 1152], strides = [1, 1]} : vector<8x2304xf32> to vector<8x1152xf32>
    %c0_39 = arith.constant 0 : index
    %c0_40 = arith.constant 0 : index
    %c0_41 = arith.constant 0 : index
    %48 = vector.load %arg4[%c0_39, %c0_40, %c0_41] : memref<2x8x1152xf32, #tpu.memory_space<vmem>>, vector<1x8x1152xf32>
    %49 = vector.shape_cast %48 : vector<1x8x1152xf32> to vector<8x1152xf32>
    %50 = vector.shape_cast %47 : vector<8x1152xf32> to vector<1x8x1152xf32>
    tpu.vector_store %arg4[%c0_39, %c0_40, %c0_41], %50 {strides = array<i32>} : memref<2x8x1152xf32, #tpu.memory_space<vmem>>, vector<1x8x1152xf32>,
    %51 = vector.extract_strided_slice %46 {offsets = [0, 1152], sizes = [8, 1152], strides = [1, 1]} : vector<8x2304xf32> to vector<8x1152xf32>
    %c1 = arith.constant 1 : index
    %c0_42 = arith.constant 0 : index
    %c0_43 = arith.constant 0 : index
    %52 = vector.load %arg4[%c1, %c0_42, %c0_43] : memref<2x8x1152xf32, #tpu.memory_space<vmem>>, vector<1x8x1152xf32>
    %53 = vector.shape_cast %52 : vector<1x8x1152xf32> to vector<8x1152xf32>
    %54 = vector.shape_cast %51 : vector<8x1152xf32> to vector<1x8x1152xf32>
    tpu.vector_store %arg4[%c1, %c0_42, %c0_43], %54 {strides = array<i32>} : memref<2x8x1152xf32, #tpu.memory_space<vmem>>, vector<1x8x1152xf32>,
    return
  }
  func.func @transform_0(%arg0: i32) -> (i32, i32, i32) {
    %c0_i32 = arith.constant 0 : i32
    %c0_i32_0 = arith.constant 0 : i32
    %c0_i32_1 = arith.constant 0 : i32
    return %arg0, %c0_i32, %c0_i32_0 : i32, i32, i32
  }
  func.func @transform_1(%arg0: i32) -> (i32, i32) {
    %c0_i32 = arith.constant 0 : i32
    %c0_i32_0 = arith.constant 0 : i32
    %c0_i32_1 = arith.constant 0 : i32
    return %c0_i32, %c0_i32_0 : i32, i32
  }
  func.func @transform_2(%arg0: i32) -> (i32, i32) {
    %c0_i32 = arith.constant 0 : i32
    %c0_i32_0 = arith.constant 0 : i32
    %c0_i32_1 = arith.constant 0 : i32
    return %c0_i32, %c0_i32_0 : i32, i32
  }
  func.func @transform_3(%arg0: i32) -> (i32, i32, i32) {
    %c0_i32 = arith.constant 0 : i32
    %c0_i32_0 = arith.constant 0 : i32
    %c0_i32_1 = arith.constant 0 : i32
    return %arg0, %c0_i32, %c0_i32_0 : i32, i32, i32
  }
}

</mosaic_0001>

<bundles_post_ra>
// kernel: tpu_custom_call.1
= control target key start
LH: loop header
LB: loop body
LE: loop exit
PB: predicated region body
PF: predicated region fallthrough
CT: control target
= control target key end

     0   :  { %8 = vsyncpa [#allocation4], 0  ;;  %s3542_s0 = inlined_call_operand.hbm [shape: f32[1,8,256], index: 0, kind: input, shape index: {}]   ;;  %s3543_s1 = inlined_call_operand.hbm [shape: f32[256,1280], index: 1, kind: input, shape index: {}]   ;;  %s3544_s2 = inlined_call_operand.hbm [shape: f32[8,80], index: 2, kind: input, shape index: {}]   ;;  %s3545_s3 = inlined_call_operand.hbm [shape: f32[2,8,1152], index: 3, kind: output, shape index: {}]  }
   0x1   :  { %9 = vsyncpa [#allocation7], 0  ;;  %s26_s14 = sshll.u32 %s3543_s1, 4  ;;  %s27_s14 = int_to_ptr.hbm [resolvable:$true] %s26_s14 }
   0x2   :  { %10 = vsyncpa [#allocation5], 0  ;;  %s2492_s15 = smov [#allocation6]   ;;  %s16_s19 = sshll.u32 %s3542_s0, 4  ;;  %s17_s19 = int_to_ptr.hbm [resolvable:$true] %s16_s19 }
   0x3   :  { %s28_s16 = sshll.u32 %s2492_s15, 4  ;;  %s2493_s20 = smov 1280   ;;  %s29_s16 = int_to_ptr.vmem [resolvable:$true] %s28_s16 }
   0x4   :  { %s2494_s21 = smov 80   ;;  %s2495_s22 = smov [#allocation3]  }
   0x5   :  { %34 = dma.hbm_to_vmem [thread:$0]  %s27_s14, 40960, %s29_s16, [#allocation7], %s2493_s20, %s2493_s20, %s2494_s21  }
   0x6   :  { %s18_s23 = sshll.u32 %s2495_s22, 4  ;;  %s40_s26 = sshll.u32 %s3544_s2, 4  ;;  %s19_s23 = int_to_ptr.vmem [resolvable:$true] %s18_s23  ;;  %s41_s26 = int_to_ptr.hbm [resolvable:$true] %s40_s26 }
   0x7   :  { %21 = dma.hbm_to_vmem [thread:$0]  %s17_s19, 256, %s19_s23, [#allocation4]  }
   0x8   :  { %s2496_s1 = smov [#allocation8]  }
   0x9   :  { %s42_s27 = sshll.u32 %s2496_s1, 4  ;;  %s43_s27 = int_to_ptr.vmem [resolvable:$true] %s42_s27 }
   0xa   :  { %45 = dma.hbm_to_vmem [thread:$0]  %s41_s26, 128, %s43_s27, [#allocation7]  }
   0xb   :  { %2486 = dma.done.wait [#allocation4], 256  }
   0xc   :  { %2487 = vsyncadd [#allocation4], 4294967040 }
   0xd   :  { %2488 = dma.done.wait [#allocation7], 41088  }
   0xe   :  { %2489 = vsyncadd [#allocation7], 4294926208  ;;  %v390_v0 = vld [vmem:[#allocation6 + $0x4b0] sm:$0xff]  ;;  %v380_v2 = vld [vmem:[#allocation6 + $0x460] sm:$0xff]  ;;  %s2498_s0 = smov 92   ;;  %s2499_s2 = smov 126  }
   0xf   :  { %v550_v1 = vld [vmem:[#allocation6 + $0x9b0] sm:$0xff]  ;;  %560 = vmatpush.msra.mxu0 %v390_v0  ;;  %v540_v3 = vld [vmem:[#allocation6 + $0x960] sm:$0xff]  ;;  %v391_v10 = vld [vmem:[#allocation6 + $0x4b8] sm:$0xff]  ;;  %s2500_s28 = smov 127   ;;  %s2501_s29 = smov 56   ;;  %vm1047_vm0 = vcmask 1031168  }
  0x10   :  { %580 = vmatpush.msra.mxu1 %v550_v1  ;;  %v370_v4 = vld [vmem:[#allocation6 + $0x410] sm:$0xff]  ;;  %v360_v6 = vld [vmem:[#allocation6 + $0x3c0] sm:$0xff]  ;;  %v551_v12 = vld [vmem:[#allocation6 + $0x9b8] sm:$0xff]  ;;  %600 = vmatpush.msra.mxu2 %v391_v10  ;;  %s2502_s30 = smov 90   ;;  %s2503_s4 = smov 91   ;;  %vm1191_vm1 = vcmask 736256  }
  0x11   :  { %v530_v5 = vld [vmem:[#allocation6 + $0x910] sm:$0xff]  ;;  %561 = vmatpush.msra.mxu0 %v380_v2  ;;  %v520_v7 = vld [vmem:[#allocation6 + $0x8c0] sm:$0xff]  ;;  %620 = vmatpush.msra.mxu3 %v551_v12  ;;  %v381_v14 = vld [vmem:[#allocation6 + $0x468] sm:$0xff]  ;;  %s2504_s5 = smov 54   ;;  %s2505_s6 = smov 55   ;;  %vm1335_vm2 = vcmask 441344  }
  0x12   :  { %581 = vmatpush.msra.mxu1 %v540_v3  ;;  %v350_v8 = vld [vmem:[#allocation6 + $0x370] sm:$0xff]  ;;  %v340_v11 = vld [vmem:[#allocation6 + $0x320] sm:$0xff]  ;;  %v541_v15 = vld [vmem:[#allocation6 + $0x968] sm:$0xff]  ;;  %601 = vmatpush.msra.mxu2 %v381_v14  ;;  %vm1143_vm3 = vcmask 744448   ;;  %vm999_vm4 = vcmask 1039360   ;;  %vm1287_vm5 = vcmask 449536  }
  0x13   :  { %562 = vmatpush.msra.mxu0 %v370_v4  ;;  %v510_v9 = vld [vmem:[#allocation6 + $0x870] sm:$0xff]  ;;  %v500_v13 = vld [vmem:[#allocation6 + $0x820] sm:$0xff]  ;;  %v371_v16 = vld [vmem:[#allocation6 + $0x418] sm:$0xff]  ;;  %621 = vmatpush.msra.mxu3 %v541_v15  ;;  %vm1095_vm6 = vcmask 752640   ;;  %vm1239_vm7 = vcmask 457728   ;;  %vm1948_vm8 = vcmask 654336  }
  0x14   :  { %582 = vmatpush.msra.mxu1 %v530_v5  ;;  %v531_v17 = vld [vmem:[#allocation6 + $0x918] sm:$0xff]  ;;  %v330_v18 = vld [vmem:[#allocation6 + $0x2d0] sm:$0xff]  ;;  %v361_v20 = vld [vmem:[#allocation6 + $0x3c8] sm:$0xff]  ;;  %602 = vmatpush.msra.mxu2 %v371_v16  ;;  %s2506_s7 = smov [#allocation9]   ;;  %s2337_s11 = sshll.u32 %s3545_s3, 4  ;;  %s2338_s11 = int_to_ptr.hbm [resolvable:$true] %s2337_s11 }
  0x15   :  { %563 = vmatpush.msra.mxu0 %v360_v6  ;;  %v490_v19 = vld [vmem:[#allocation6 + $0x7d0] sm:$0xff]  ;;  %v521_v21 = vld [vmem:[#allocation6 + $0x8c8] sm:$0xff]  ;;  %v320_v22 = vld [vmem:[#allocation6 + $0x280] sm:$0xff]  ;;  %622 = vmatpush.msra.mxu3 %v531_v17  ;;  %s2335_s8 = sshll.u32 %s2506_s7, 4  ;;  %s2507_s12 = smov 1152   ;;  %s2336_s8 = int_to_ptr.vmem [resolvable:$true] %s2335_s8 }
  0x16   :  { %583 = vmatpush.msra.mxu1 %v520_v7  ;;  %v480_v23 = vld [vmem:[#allocation6 + $0x780] sm:$0xff]  ;;  %v351_v24 = vld [vmem:[#allocation6 + $0x378] sm:$0xff]  ;;  %v310_v26 = vld [vmem:[#allocation6 + $0x230] sm:$0xff]  ;;  %603 = vmatpush.msra.mxu2 %v361_v20  ;;  %s2508_s13 = smov 72  }
  0x17   :  { %564 = vmatpush.msra.mxu0 %v350_v8  ;;  %v511_v25 = vld [vmem:[#allocation6 + $0x878] sm:$0xff]  ;;  %v470_v27 = vld [vmem:[#allocation6 + $0x730] sm:$0xff]  ;;  %623 = vmatpush.msra.mxu3 %v521_v21  ;;  %v341_v28 = vld [vmem:[#allocation6 + $0x328] sm:$0xff] }
  0x18   :  { %584 = vmatpush.msra.mxu1 %v510_v9  ;;  %v501_v29 = vld [vmem:[#allocation6 + $0x828] sm:$0xff]  ;;  %v300_v30 = vld [vmem:[#allocation6 + $0x1e0] sm:$0xff]  ;;  %604 = vmatpush.msra.mxu2 %v351_v24  ;;  %v331_v32 = vld [vmem:[#allocation6 + $0x2d8] sm:$0xff] }
  0x19   :  { %565 = vmatpush.msra.mxu0 %v340_v11  ;;  %v460_v31 = vld [vmem:[#allocation6 + $0x6e0] sm:$0xff]  ;;  %624 = vmatpush.msra.mxu3 %v511_v25  ;;  %v491_v33 = vld [vmem:[#allocation6 + $0x7d8] sm:$0xff]  ;;  %v290_v34 = vld [vmem:[#allocation6 + $0x190] sm:$0xff] }
  0x1a   :  { %585 = vmatpush.msra.mxu1 %v500_v13  ;;  %v450_v35 = vld [vmem:[#allocation6 + $0x690] sm:$0xff]  ;;  %605 = vmatpush.msra.mxu2 %v341_v28  ;;  %v321_v36 = vld [vmem:[#allocation6 + $0x288] sm:$0xff]  ;;  %v280_v38 = vld [vmem:[#allocation6 + $0x140] sm:$0xff] }
  0x1b   :  { %566 = vmatpush.msra.mxu0 %v330_v18  ;;  %625 = vmatpush.msra.mxu3 %v501_v29  ;;  %v481_v37 = vld [vmem:[#allocation6 + $0x788] sm:$0xff]  ;;  %v440_v39 = vld [vmem:[#allocation6 + $0x640] sm:$0xff]  ;;  %v311_v40 = vld [vmem:[#allocation6 + $0x238] sm:$0xff] }
  0x1c   :  { %586 = vmatpush.msra.mxu1 %v490_v19  ;;  %606 = vmatpush.msra.mxu2 %v331_v32  ;;  %v471_v41 = vld [vmem:[#allocation6 + $0x738] sm:$0xff]  ;;  %v270_v42 = vld [vmem:[#allocation6 + $0xf0] sm:$0xff]  ;;  %v301_v44 = vld [vmem:[#allocation6 + $0x1e8] sm:$0xff] }
  0x1d   :  { %567 = vmatpush.msra.mxu0 %v320_v22  ;;  %626 = vmatpush.msra.mxu3 %v491_v33  ;;  %v430_v43 = vld [vmem:[#allocation6 + $0x5f0] sm:$0xff]  ;;  %v461_v45 = vld [vmem:[#allocation6 + $0x6e8] sm:$0xff]  ;;  %v260_v46 = vld [vmem:[#allocation6 + $0xa0] sm:$0xff] }
  0x1e   :  { %587 = vmatpush.msra.mxu1 %v480_v23  ;;  %607 = vmatpush.msra.mxu2 %v321_v36  ;;  %v420_v47 = vld [vmem:[#allocation6 + $0x5a0] sm:$0xff]  ;;  %v291_v48 = vld [vmem:[#allocation6 + $0x198] sm:$0xff]  ;;  %v250_v50 = vld [vmem:[#allocation6 + $0x50] sm:$0xff] }
  0x1f   :  { %568 = vmatpush.msra.mxu0 %v310_v26  ;;  %627 = vmatpush.msra.mxu3 %v481_v37  ;;  %v451_v49 = vld [vmem:[#allocation6 + $0x698] sm:$0xff]  ;;  %v410_v51 = vld [vmem:[#allocation6 + $0x550] sm:$0xff]  ;;  %v281_v52 = vld [vmem:[#allocation6 + $0x148] sm:$0xff] }
  0x20   :  { %588 = vmatpush.msra.mxu1 %v470_v27  ;;  %608 = vmatpush.msra.mxu2 %v311_v40  ;;  %v441_v53 = vld [vmem:[#allocation6 + $0x648] sm:$0xff]  ;;  %v240_v54 = vld [vmem:[#allocation6] sm:$0xff]  ;;  %v2538_v56 = vld [vmem:[#allocation3] sm:$0xff] }
  0x21   :  { %569 = vmatpush.msra.mxu0 %v300_v30  ;;  %628 = vmatpush.msra.mxu3 %v471_v41  ;;  %v400_v55 = vld [vmem:[#allocation6 + $0x500] sm:$0xff]  ;;  %v2540_v57 = vld [vmem:[#allocation3 + $0x8] sm:$0xff]  ;;  %v382_v62 = vld [vmem:[#allocation6 + $0x470] sm:$0xff] }
  0x22   :  { %589 = vmatpush.msra.mxu1 %v460_v31  ;;  %609 = vmatpush.msra.mxu2 %v301_v44  ;;  %v392_v58 = vld [vmem:[#allocation6 + $0x4c0] sm:$0xff]  ;;  %v271_v60 = vld [vmem:[#allocation6 + $0xf8] sm:$0xff]  ;;  %v542_v63 = vld [vmem:[#allocation6 + $0x970] sm:$0xff] }
  0x23   :  { %570 = vmatpush.msra.mxu0 %v290_v34  ;;  %629 = vmatpush.msra.mxu3 %v461_v45  ;;  %v552_v59 = vld [vmem:[#allocation6 + $0x9c0] sm:$0xff]  ;;  %v431_v61 = vld [vmem:[#allocation6 + $0x5f8] sm:$0xff]  ;;  %v261_v0 = vld [vmem:[#allocation6 + $0xa8] sm:$0xff] }
  0x24   :  { %590 = vmatpush.msra.mxu1 %v450_v35  ;;  %610 = vmatpush.msra.mxu2 %v291_v48  ;;  %v421_v1 = vld [vmem:[#allocation6 + $0x5a8] sm:$0xff]  ;;  %v372_v2 = vld [vmem:[#allocation6 + $0x420] sm:$0xff]  ;;  %v251_v4 = vld [vmem:[#allocation6 + $0x58] sm:$0xff] }
  0x25   :  { %571 = vmatpush.msra.mxu0 %v280_v38  ;;  %630 = vmatpush.msra.mxu3 %v451_v49  ;;  %v532_v3 = vld [vmem:[#allocation6 + $0x920] sm:$0xff]  ;;  %v411_v5 = vld [vmem:[#allocation6 + $0x558] sm:$0xff]  ;;  %v362_v6 = vld [vmem:[#allocation6 + $0x3d0] sm:$0xff] }
  0x26   :  { %591 = vmatpush.msra.mxu1 %v440_v39  ;;  %611 = vmatpush.msra.mxu2 %v281_v52  ;;  %v522_v7 = vld [vmem:[#allocation6 + $0x8d0] sm:$0xff]  ;;  %v241_v8 = vld [vmem:[#allocation6 + $0x8] sm:$0xff]  ;;  %v352_v10 = vld [vmem:[#allocation6 + $0x380] sm:$0xff] }
  0x27   :  { %572 = vmatpush.msra.mxu0 %v270_v42  ;;  %631 = vmatpush.msra.mxu3 %v441_v53  ;;  %v401_v9 = vld [vmem:[#allocation6 + $0x508] sm:$0xff]  ;;  %v512_v11 = vld [vmem:[#allocation6 + $0x880] sm:$0xff]  ;;  %v342_v12 = vld [vmem:[#allocation6 + $0x330] sm:$0xff] }
  0x28   :  { %592 = vmatpush.msra.mxu1 %v430_v43  ;;  %612 = vmatpush.msra.mxu2 %v271_v60  ;;  %v502_v13 = vld [vmem:[#allocation6 + $0x830] sm:$0xff]  ;;  %v393_v14 = vld [vmem:[#allocation6 + $0x4c8] sm:$0xff]  ;;  %v332_v16 = vld [vmem:[#allocation6 + $0x2e0] sm:$0xff] }
  0x29   :  { %573 = vmatpush.msra.mxu0 %v260_v46  ;;  %632 = vmatpush.msra.mxu3 %v431_v61  ;;  %v553_v15 = vld [vmem:[#allocation6 + $0x9c8] sm:$0xff]  ;;  %v492_v17 = vld [vmem:[#allocation6 + $0x7e0] sm:$0xff]  ;;  %v383_v18 = vld [vmem:[#allocation6 + $0x478] sm:$0xff] }
  0x2a   :  { %593 = vmatpush.msra.mxu1 %v420_v47  ;;  %613 = vmatpush.msra.mxu2 %v261_v0  ;;  %v543_v19 = vld [vmem:[#allocation6 + $0x978] sm:$0xff]  ;;  %v322_v20 = vld [vmem:[#allocation6 + $0x290] sm:$0xff]  ;;  %v373_v22 = vld [vmem:[#allocation6 + $0x428] sm:$0xff] }
  0x2b   :  { %574 = vmatpush.msra.mxu0 %v250_v50  ;;  %633 = vmatpush.msra.mxu3 %v421_v1  ;;  %v482_v21 = vld [vmem:[#allocation6 + $0x790] sm:$0xff]  ;;  %v533_v23 = vld [vmem:[#allocation6 + $0x928] sm:$0xff]  ;;  %v312_v24 = vld [vmem:[#allocation6 + $0x240] sm:$0xff] }
  0x2c   :  { %594 = vmatpush.msra.mxu1 %v410_v51  ;;  %614 = vmatpush.msra.mxu2 %v251_v4  ;;  %v472_v25 = vld [vmem:[#allocation6 + $0x740] sm:$0xff]  ;;  %v363_v26 = vld [vmem:[#allocation6 + $0x3d8] sm:$0xff]  ;;  %v302_v28 = vld [vmem:[#allocation6 + $0x1f0] sm:$0xff] }
  0x2d   :  { %575 = vmatpush.msra.mxu0 %v240_v54  ;;  %634 = vmatpush.msra.mxu3 %v411_v5  ;;  %v523_v27 = vld [vmem:[#allocation6 + $0x8d8] sm:$0xff]  ;;  %v462_v29 = vld [vmem:[#allocation6 + $0x6f0] sm:$0xff]  ;;  %v353_v30 = vld [vmem:[#allocation6 + $0x388] sm:$0xff] }
  0x2e   :  { %595 = vmatpush.msra.mxu1 %v400_v55  ;;  %576 = vmatmul.f32.vlgmr.msra.gmra.mxu0 %v2538_v56  ;;  %v513_v31 = vld [vmem:[#allocation6 + $0x888] sm:$0xff]  ;;  %v292_v32 = vld [vmem:[#allocation6 + $0x1a0] sm:$0xff]  ;;  %v343_v34 = vld [vmem:[#allocation6 + $0x338] sm:$0xff] }
  0x2f   :  { %596 = vmatmul.f32.vlgmr.msra.gmra.mxu1 %v2540_v57  ;;  %640 = vmatpush.msrb.mxu0 %v392_v58  ;;  %v452_v33 = vld [vmem:[#allocation6 + $0x6a0] sm:$0xff]  ;;  %v503_v35 = vld [vmem:[#allocation6 + $0x838] sm:$0xff]  ;;  %v282_v36 = vld [vmem:[#allocation6 + $0x150] sm:$0xff] }
  0x30   :  { %660 = vmatpush.msrb.mxu1 %v552_v59  ;;  %615 = vmatpush.msra.mxu2 %v241_v8  ;;  %v442_v37 = vld [vmem:[#allocation6 + $0x650] sm:$0xff]  ;;  %v333_v38 = vld [vmem:[#allocation6 + $0x2e8] sm:$0xff]  ;;  %v272_v40 = vld [vmem:[#allocation6 + $0x100] sm:$0xff] }
  0x31   :  { %641 = vmatpush.msrb.mxu0 %v382_v62  ;;  %635 = vmatpush.msra.mxu3 %v401_v9  ;;  %v493_v39 = vld [vmem:[#allocation6 + $0x7e8] sm:$0xff]  ;;  %v432_v41 = vld [vmem:[#allocation6 + $0x600] sm:$0xff]  ;;  %v323_v42 = vld [vmem:[#allocation6 + $0x298] sm:$0xff] }
  0x32   :  { %661 = vmatpush.msrb.mxu1 %v542_v63  ;;  %616 = vmatmul.f32.vlgmr.msra.gmra.mxu2 %v2538_v56  ;;  %v483_v43 = vld [vmem:[#allocation6 + $0x798] sm:$0xff]  ;;  %v262_v44 = vld [vmem:[#allocation6 + $0xb0] sm:$0xff]  ;;  %v313_v46 = vld [vmem:[#allocation6 + $0x248] sm:$0xff] }
  0x33   :  { %642 = vmatpush.msrb.mxu0 %v372_v2  ;;  %636 = vmatmul.f32.vlgmr.msra.gmra.mxu3 %v2540_v57  ;;  %v422_v45 = vld [vmem:[#allocation6 + $0x5b0] sm:$0xff]  ;;  %v473_v47 = vld [vmem:[#allocation6 + $0x748] sm:$0xff]  ;;  %v252_v48 = vld [vmem:[#allocation6 + $0x60] sm:$0xff] }
  0x34   :  { %662 = vmatpush.msrb.mxu1 %v532_v3  ;;  %680 = vmatpush.msrb.mxu2 %v393_v14  ;;  %v412_v49 = vld [vmem:[#allocation6 + $0x560] sm:$0xff]  ;;  %v303_v50 = vld [vmem:[#allocation6 + $0x1f8] sm:$0xff]  ;;  %v242_v52 = vld [vmem:[#allocation6 + $0x10] sm:$0xff] }
  0x35   :  { %643 = vmatpush.msrb.mxu0 %v362_v6  ;;  %700 = vmatpush.msrb.mxu3 %v553_v15  ;;  %v463_v51 = vld [vmem:[#allocation6 + $0x6f8] sm:$0xff]  ;;  %v402_v53 = vld [vmem:[#allocation6 + $0x510] sm:$0xff]  ;;  %v293_v54 = vld [vmem:[#allocation6 + $0x1a8] sm:$0xff] }
  0x36   :  { %663 = vmatpush.msrb.mxu1 %v522_v7  ;;  %681 = vmatpush.msrb.mxu2 %v383_v18  ;;  %v453_v55 = vld [vmem:[#allocation6 + $0x6a8] sm:$0xff]  ;;  %v394_v58 = vld [vmem:[#allocation6 + $0x4d0] sm:$0xff]  ;;  %v283_v60 = vld [vmem:[#allocation6 + $0x158] sm:$0xff] }
  0x37   :  { %644 = vmatpush.msrb.mxu0 %v352_v10  ;;  %701 = vmatpush.msrb.mxu3 %v543_v19  ;;  %v554_v59 = vld [vmem:[#allocation6 + $0x9d0] sm:$0xff]  ;;  %v443_v61 = vld [vmem:[#allocation6 + $0x658] sm:$0xff]  ;;  %v384_v62 = vld [vmem:[#allocation6 + $0x480] sm:$0xff] }
  0x38   :  { %664 = vmatpush.msrb.mxu1 %v512_v11  ;;  %682 = vmatpush.msrb.mxu2 %v373_v22  ;;  %v544_v63 = vld [vmem:[#allocation6 + $0x980] sm:$0xff]  ;;  %v273_v0 = vld [vmem:[#allocation6 + $0x108] sm:$0xff]  ;;  %v374_v2 = vld [vmem:[#allocation6 + $0x430] sm:$0xff] }
  0x39   :  { %645 = vmatpush.msrb.mxu0 %v342_v12  ;;  %702 = vmatpush.msrb.mxu3 %v533_v23  ;;  %v433_v1 = vld [vmem:[#allocation6 + $0x608] sm:$0xff]  ;;  %v534_v3 = vld [vmem:[#allocation6 + $0x930] sm:$0xff]  ;;  %v263_v4 = vld [vmem:[#allocation6 + $0xb8] sm:$0xff] }
  0x3a   :  { %665 = vmatpush.msrb.mxu1 %v502_v13  ;;  %683 = vmatpush.msrb.mxu2 %v363_v26  ;;  %v423_v5 = vld [vmem:[#allocation6 + $0x5b8] sm:$0xff]  ;;  %v364_v6 = vld [vmem:[#allocation6 + $0x3e0] sm:$0xff]  ;;  %v253_v8 = vld [vmem:[#allocation6 + $0x68] sm:$0xff] }
  0x3b   :  { %646 = vmatpush.msrb.mxu0 %v332_v16  ;;  %703 = vmatpush.msrb.mxu3 %v523_v27  ;;  %v524_v7 = vld [vmem:[#allocation6 + $0x8e0] sm:$0xff]  ;;  %v413_v9 = vld [vmem:[#allocation6 + $0x568] sm:$0xff]  ;;  %v354_v10 = vld [vmem:[#allocation6 + $0x390] sm:$0xff] }
  0x3c   :  { %666 = vmatpush.msrb.mxu1 %v492_v17  ;;  %684 = vmatpush.msrb.mxu2 %v353_v30  ;;  %v514_v11 = vld [vmem:[#allocation6 + $0x890] sm:$0xff]  ;;  %v243_v12 = vld [vmem:[#allocation6 + $0x18] sm:$0xff]  ;;  %v344_v14 = vld [vmem:[#allocation6 + $0x340] sm:$0xff] }
  0x3d   :  { %647 = vmatpush.msrb.mxu0 %v322_v20  ;;  %704 = vmatpush.msrb.mxu3 %v513_v31  ;;  %v403_v13 = vld [vmem:[#allocation6 + $0x518] sm:$0xff]  ;;  %v504_v15 = vld [vmem:[#allocation6 + $0x840] sm:$0xff]  ;;  %v334_v18 = vld [vmem:[#allocation6 + $0x2f0] sm:$0xff] }
  0x3e   :  { %667 = vmatpush.msrb.mxu1 %v482_v21  ;;  %685 = vmatpush.msrb.mxu2 %v343_v34  ;;  %v395_v16 = vld [vmem:[#allocation6 + $0x4d8] sm:$0xff]  ;;  %v494_v19 = vld [vmem:[#allocation6 + $0x7f0] sm:$0xff]  ;;  %v385_v20 = vld [vmem:[#allocation6 + $0x488] sm:$0xff] }
  0x3f   :  { %648 = vmatpush.msrb.mxu0 %v312_v24  ;;  %705 = vmatpush.msrb.mxu3 %v503_v35  ;;  %v555_v17 = vld [vmem:[#allocation6 + $0x9d8] sm:$0xff]  ;;  %v545_v21 = vld [vmem:[#allocation6 + $0x988] sm:$0xff]  ;;  %v324_v22 = vld [vmem:[#allocation6 + $0x2a0] sm:$0xff] }
  0x40   :  { %668 = vmatpush.msrb.mxu1 %v472_v25  ;;  %686 = vmatpush.msrb.mxu2 %v333_v38  ;;  %v484_v23 = vld [vmem:[#allocation6 + $0x7a0] sm:$0xff]  ;;  %v375_v24 = vld [vmem:[#allocation6 + $0x438] sm:$0xff]  ;;  %v314_v26 = vld [vmem:[#allocation6 + $0x250] sm:$0xff] }
  0x41   :  { %649 = vmatpush.msrb.mxu0 %v302_v28  ;;  %706 = vmatpush.msrb.mxu3 %v493_v39  ;;  %v535_v25 = vld [vmem:[#allocation6 + $0x938] sm:$0xff]  ;;  %v474_v27 = vld [vmem:[#allocation6 + $0x750] sm:$0xff]  ;;  %v365_v28 = vld [vmem:[#allocation6 + $0x3e8] sm:$0xff] }
  0x42   :  { %669 = vmatpush.msrb.mxu1 %v462_v29  ;;  %687 = vmatpush.msrb.mxu2 %v323_v42  ;;  %v525_v29 = vld [vmem:[#allocation6 + $0x8e8] sm:$0xff]  ;;  %v304_v30 = vld [vmem:[#allocation6 + $0x200] sm:$0xff]  ;;  %v294_v34 = vld [vmem:[#allocation6 + $0x1b0] sm:$0xff] }
  0x43   :  { %650 = vmatpush.msrb.mxu0 %v292_v32  ;;  %707 = vmatpush.msrb.mxu3 %v483_v43  ;;  %v464_v31 = vld [vmem:[#allocation6 + $0x700] sm:$0xff]  ;;  %v355_v32 = vld [vmem:[#allocation6 + $0x398] sm:$0xff]  ;;  %v454_v35 = vld [vmem:[#allocation6 + $0x6b0] sm:$0xff] }
  0x44   :  { %670 = vmatpush.msrb.mxu1 %v452_v33  ;;  %688 = vmatpush.msrb.mxu2 %v313_v46  ;;  %v515_v33 = vld [vmem:[#allocation6 + $0x898] sm:$0xff]  ;;  %v284_v38 = vld [vmem:[#allocation6 + $0x160] sm:$0xff]  ;;  %v274_v42 = vld [vmem:[#allocation6 + $0x110] sm:$0xff] }
  0x45   :  { %651 = vmatpush.msrb.mxu0 %v282_v36  ;;  %708 = vmatpush.msrb.mxu3 %v473_v47  ;;  %v345_v36 = vld [vmem:[#allocation6 + $0x348] sm:$0xff]  ;;  %v444_v39 = vld [vmem:[#allocation6 + $0x660] sm:$0xff]  ;;  %v434_v43 = vld [vmem:[#allocation6 + $0x610] sm:$0xff] }
  0x46   :  { %671 = vmatpush.msrb.mxu1 %v442_v37  ;;  %689 = vmatpush.msrb.mxu2 %v303_v50  ;;  %v505_v37 = vld [vmem:[#allocation6 + $0x848] sm:$0xff]  ;;  %v264_v46 = vld [vmem:[#allocation6 + $0xc0] sm:$0xff]  ;;  %v254_v50 = vld [vmem:[#allocation6 + $0x70] sm:$0xff] }
  0x47   :  { %652 = vmatpush.msrb.mxu0 %v272_v40  ;;  %709 = vmatpush.msrb.mxu3 %v463_v51  ;;  %v335_v40 = vld [vmem:[#allocation6 + $0x2f8] sm:$0xff]  ;;  %v424_v47 = vld [vmem:[#allocation6 + $0x5c0] sm:$0xff]  ;;  %v414_v51 = vld [vmem:[#allocation6 + $0x570] sm:$0xff] }
  0x48   :  { %672 = vmatpush.msrb.mxu1 %v432_v41  ;;  %690 = vmatpush.msrb.mxu2 %v293_v54  ;;  %v495_v41 = vld [vmem:[#allocation6 + $0x7f8] sm:$0xff]  ;;  %v244_v54 = vld [vmem:[#allocation6 + $0x20] sm:$0xff] }
  0x49   :  { %653 = vmatpush.msrb.mxu0 %v262_v44  ;;  %710 = vmatpush.msrb.mxu3 %v453_v55  ;;  %v325_v44 = vld [vmem:[#allocation6 + $0x2a8] sm:$0xff]  ;;  %v404_v55 = vld [vmem:[#allocation6 + $0x520] sm:$0xff] }
  0x4a   :  { %673 = vmatpush.msrb.mxu1 %v422_v45  ;;  %691 = vmatpush.msrb.mxu2 %v283_v60  ;;  %v485_v45 = vld [vmem:[#allocation6 + $0x7a8] sm:$0xff]  ;;  %v396_v60 = vld [vmem:[#allocation6 + $0x4e0] sm:$0xff] }
  0x4b   :  { %654 = vmatpush.msrb.mxu0 %v252_v48  ;;  %711 = vmatpush.msrb.mxu3 %v443_v61  ;;  %v315_v48 = vld [vmem:[#allocation6 + $0x258] sm:$0xff]  ;;  %v556_v61 = vld [vmem:[#allocation6 + $0x9e0] sm:$0xff] }
  0x4c   :  { %674 = vmatpush.msrb.mxu1 %v412_v49  ;;  %692 = vmatpush.msrb.mxu2 %v273_v0  ;;  %v475_v49 = vld [vmem:[#allocation6 + $0x758] sm:$0xff]  ;;  %v386_v0 = vld [vmem:[#allocation6 + $0x490] sm:$0xff] }
  0x4d   :  { %655 = vmatpush.msrb.mxu0 %v242_v52  ;;  %712 = vmatpush.msrb.mxu3 %v433_v1  ;;  %v305_v52 = vld [vmem:[#allocation6 + $0x208] sm:$0xff]  ;;  %v546_v1 = vld [vmem:[#allocation6 + $0x990] sm:$0xff] }
  0x4e   :  { %675 = vmatpush.msrb.mxu1 %v402_v53  ;;  %656 = vmatmul.f32.vlgmr.msrb.gmra.mxu0 %v2538_v56  ;;  %v465_v53 = vld [vmem:[#allocation6 + $0x708] sm:$0xff] }
  0x4f   :  { %676 = vmatmul.f32.vlgmr.msrb.gmra.mxu1 %v2540_v57  ;;  %720 = vmatpush.msra.mxu0 %v394_v58  ;;  %v295_v58 = vld [vmem:[#allocation6 + $0x1b8] sm:$0xff] }
  0x50   :  { %740 = vmatpush.msra.mxu1 %v554_v59  ;;  %693 = vmatpush.msrb.mxu2 %v263_v4  ;;  %v455_v59 = vld [vmem:[#allocation6 + $0x6b8] sm:$0xff]  ;;  %v376_v4 = vld [vmem:[#allocation6 + $0x440] sm:$0xff] }
  0x51   :  { %721 = vmatpush.msra.mxu0 %v384_v62  ;;  %713 = vmatpush.msrb.mxu3 %v423_v5  ;;  %v285_v62 = vld [vmem:[#allocation6 + $0x168] sm:$0xff]  ;;  %v536_v5 = vld [vmem:[#allocation6 + $0x940] sm:$0xff] }
  0x52   :  { %741 = vmatpush.msra.mxu1 %v544_v63  ;;  %694 = vmatpush.msrb.mxu2 %v253_v8  ;;  %v445_v63 = vld [vmem:[#allocation6 + $0x668] sm:$0xff]  ;;  %v366_v8 = vld [vmem:[#allocation6 + $0x3f0] sm:$0xff] }
  0x53   :  { %722 = vmatpush.msra.mxu0 %v374_v2  ;;  %714 = vmatpush.msrb.mxu3 %v413_v9  ;;  %v275_v2 = vld [vmem:[#allocation6 + $0x118] sm:$0xff]  ;;  %v526_v9 = vld [vmem:[#allocation6 + $0x8f0] sm:$0xff] }
  0x54   :  { %742 = vmatpush.msra.mxu1 %v534_v3  ;;  %695 = vmatpush.msrb.mxu2 %v243_v12  ;;  %v435_v3 = vld [vmem:[#allocation6 + $0x618] sm:$0xff]  ;;  %v356_v12 = vld [vmem:[#allocation6 + $0x3a0] sm:$0xff] }
  0x55   :  { %723 = vmatpush.msra.mxu0 %v364_v6  ;;  %715 = vmatpush.msrb.mxu3 %v403_v13  ;;  %v265_v6 = vld [vmem:[#allocation6 + $0xc8] sm:$0xff]  ;;  %v516_v13 = vld [vmem:[#allocation6 + $0x8a0] sm:$0xff] }
  0x56   :  { %743 = vmatpush.msra.mxu1 %v524_v7  ;;  %696 = vmatmul.f32.vlgmr.msrb.gmra.mxu2 %v2538_v56  ;;  %v425_v7 = vld [vmem:[#allocation6 + $0x5c8] sm:$0xff] }
  0x57   :  { %724 = vmatpush.msra.mxu0 %v354_v10  ;;  %716 = vmatmul.f32.vlgmr.msrb.gmra.mxu3 %v2540_v57  ;;  %v255_v10 = vld [vmem:[#allocation6 + $0x78] sm:$0xff] }
  0x58   :  { %744 = vmatpush.msra.mxu1 %v514_v11  ;;  %760 = vmatpush.msra.mxu2 %v395_v16  ;;  %v415_v11 = vld [vmem:[#allocation6 + $0x578] sm:$0xff]  ;;  %v346_v16 = vld [vmem:[#allocation6 + $0x350] sm:$0xff] }
  0x59   :  { %725 = vmatpush.msra.mxu0 %v344_v14  ;;  %780 = vmatpush.msra.mxu3 %v555_v17  ;;  %v245_v14 = vld [vmem:[#allocation6 + $0x28] sm:$0xff]  ;;  %v506_v17 = vld [vmem:[#allocation6 + $0x850] sm:$0xff] }
  0x5a   :  { %745 = vmatpush.msra.mxu1 %v504_v15  ;;  %761 = vmatpush.msra.mxu2 %v385_v20  ;;  %v405_v15 = vld [vmem:[#allocation6 + $0x528] sm:$0xff]  ;;  %v326_v20 = vld [vmem:[#allocation6 + $0x2b0] sm:$0xff] }
  0x5b   :  { %726 = vmatpush.msra.mxu0 %v334_v18  ;;  %781 = vmatpush.msra.mxu3 %v545_v21  ;;  %v336_v18 = vld [vmem:[#allocation6 + $0x300] sm:$0xff]  ;;  %v486_v21 = vld [vmem:[#allocation6 + $0x7b0] sm:$0xff] }
  0x5c   :  { %746 = vmatpush.msra.mxu1 %v494_v19  ;;  %762 = vmatpush.msra.mxu2 %v375_v24  ;;  %v496_v19 = vld [vmem:[#allocation6 + $0x800] sm:$0xff]  ;;  %v306_v24 = vld [vmem:[#allocation6 + $0x210] sm:$0xff] }
  0x5d   :  { %727 = vmatpush.msra.mxu0 %v324_v22  ;;  %782 = vmatpush.msra.mxu3 %v535_v25  ;;  %v316_v22 = vld [vmem:[#allocation6 + $0x260] sm:$0xff]  ;;  %v466_v25 = vld [vmem:[#allocation6 + $0x710] sm:$0xff] }
  0x5e   :  { %747 = vmatpush.msra.mxu1 %v484_v23  ;;  %763 = vmatpush.msra.mxu2 %v365_v28  ;;  %v476_v23 = vld [vmem:[#allocation6 + $0x760] sm:$0xff]  ;;  %v286_v28 = vld [vmem:[#allocation6 + $0x170] sm:$0xff] }
  0x5f   :  { %728 = vmatpush.msra.mxu0 %v314_v26  ;;  %783 = vmatpush.msra.mxu3 %v525_v29  ;;  %v296_v26 = vld [vmem:[#allocation6 + $0x1c0] sm:$0xff]  ;;  %v446_v29 = vld [vmem:[#allocation6 + $0x670] sm:$0xff] }
  0x60   :  { %748 = vmatpush.msra.mxu1 %v474_v27  ;;  %764 = vmatpush.msra.mxu2 %v355_v32  ;;  %v456_v27 = vld [vmem:[#allocation6 + $0x6c0] sm:$0xff] }
  0x61   :  { %729 = vmatpush.msra.mxu0 %v304_v30  ;;  %784 = vmatpush.msra.mxu3 %v515_v33  ;;  %v2497_v30 = vmov 1.0   ;;  %v436_v32 = vld [vmem:[#allocation6 + $0x620] sm:$0xff]  ;;  %v266_v33 = vld [vmem:[#allocation6 + $0xd0] sm:$0xff] }
  0x62   :  { %749 = vmatpush.msra.mxu1 %v464_v31  ;;  %765 = vmatpush.msra.mxu2 %v345_v36  ;;  %94 = vst [vmem:[#allocation2 + $0x4b8] sm:$0xff] %v2497_v30  ;;  %v276_v31 = vld [vmem:[#allocation6 + $0x120] sm:$0xff]  ;;  %v557_v36 = vld [vmem:[#allocation6 + $0x9e8] sm:$0xff] }
  0x63   :  { %730 = vmatpush.msra.mxu0 %v294_v34  ;;  %785 = vmatpush.msra.mxu3 %v505_v37  ;;  %58 = vst [vmem:[#allocation2 + $0x2b0] sm:$0xff] %v2497_v30  ;;  %v426_v34 = vld [vmem:[#allocation6 + $0x5d0] sm:$0xff]  ;;  %v256_v37 = vld [vmem:[#allocation6 + $0x80] sm:$0xff] }
  0x64   :  { %750 = vmatpush.msra.mxu1 %v454_v35  ;;  %766 = vmatpush.msra.mxu2 %v335_v40  ;;  %v397_v35 = vld [vmem:[#allocation6 + $0x4e8] sm:$0xff]  ;;  %59 = vst [vmem:[#allocation2 + $0x3b0] sm:$0xff] %v2497_v30  ;;  %v547_v40 = vld [vmem:[#allocation6 + $0x998] sm:$0xff] }
  0x65   :  { %731 = vmatpush.msra.mxu0 %v284_v38  ;;  %786 = vmatpush.msra.mxu3 %v495_v41  ;;  %v416_v38 = vld [vmem:[#allocation6 + $0x580] sm:$0xff]  ;;  %60 = vst [vmem:[#allocation2 + $0x4d8] sm:$0xff] %v2497_v30  ;;  %v246_v41 = vld [vmem:[#allocation6 + $0x30] sm:$0xff] }
  0x66   :  { %751 = vmatpush.msra.mxu1 %v444_v39  ;;  %767 = vmatpush.msra.mxu2 %v325_v44  ;;  %v387_v39 = vld [vmem:[#allocation6 + $0x498] sm:$0xff]  ;;  %61 = vst [vmem:[#allocation2 + $0x18] sm:$0xff] %v2497_v30  ;;  %v537_v44 = vld [vmem:[#allocation6 + $0x948] sm:$0xff] }
  0x67   :  { %732 = vmatpush.msra.mxu0 %v274_v42  ;;  %787 = vmatpush.msra.mxu3 %v485_v45  ;;  %v406_v42 = vld [vmem:[#allocation6 + $0x530] sm:$0xff]  ;;  %62 = vst [vmem:[#allocation2 + $0x450] sm:$0xff] %v2497_v30  ;;  %v367_v45 = vld [vmem:[#allocation6 + $0x3f8] sm:$0xff] }
  0x68   :  { %752 = vmatpush.msra.mxu1 %v434_v43  ;;  %768 = vmatpush.msra.mxu2 %v315_v48  ;;  %v377_v43 = vld [vmem:[#allocation6 + $0x448] sm:$0xff]  ;;  %63 = vst [vmem:[#allocation2 + $0x328] sm:$0xff] %v2497_v30 }
  0x69   :  { %733 = vmatpush.msra.mxu0 %v264_v46  ;;  %788 = vmatpush.msra.mxu3 %v475_v49  ;;  %64 = vst [vmem:[#allocation2 + $0x440] sm:$0xff] %v2497_v30  ;;  %v527_v46 = vld [vmem:[#allocation6 + $0x8f8] sm:$0xff]  ;;  %v517_v48 = vld [vmem:[#allocation6 + $0x8a8] sm:$0xff] }
  0x6a   :  { %753 = vmatpush.msra.mxu1 %v424_v47  ;;  %769 = vmatpush.msra.mxu2 %v305_v52  ;;  %65 = vst [vmem:[#allocation2 + $0x378] sm:$0xff] %v2497_v30  ;;  %v357_v47 = vld [vmem:[#allocation6 + $0x3a8] sm:$0xff]  ;;  %v347_v49 = vld [vmem:[#allocation6 + $0x358] sm:$0xff] }
  0x6b   :  { %734 = vmatpush.msra.mxu0 %v254_v50  ;;  %789 = vmatpush.msra.mxu3 %v465_v53  ;;  %66 = vst [vmem:[#allocation2 + $0x108] sm:$0xff] %v2497_v30  ;;  %v507_v50 = vld [vmem:[#allocation6 + $0x858] sm:$0xff]  ;;  %v497_v52 = vld [vmem:[#allocation6 + $0x808] sm:$0xff] }
  0x6c   :  { %754 = vmatpush.msra.mxu1 %v414_v51  ;;  %770 = vmatpush.msra.mxu2 %v295_v58  ;;  %67 = vst [vmem:[#allocation2 + $0x510] sm:$0xff] %v2497_v30  ;;  %v337_v51 = vld [vmem:[#allocation6 + $0x308] sm:$0xff]  ;;  %v327_v53 = vld [vmem:[#allocation6 + $0x2b8] sm:$0xff] }
  0x6d   :  { %735 = vmatpush.msra.mxu0 %v244_v54  ;;  %790 = vmatpush.msra.mxu3 %v455_v59  ;;  %68 = vst [vmem:[#allocation2 + $0x490] sm:$0xff] %v2497_v30  ;;  %v487_v54 = vld [vmem:[#allocation6 + $0x7b8] sm:$0xff]  ;;  %v477_v58 = vld [vmem:[#allocation6 + $0x768] sm:$0xff] }
  0x6e   :  { %755 = vmatpush.msra.mxu1 %v404_v55  ;;  %736 = vmatmul.f32.vlgmr.msra.gmra.mxu0 %v2538_v56  ;;  %69 = vst [vmem:[#allocation2 + $0x318] sm:$0xff] %v2497_v30  ;;  %v317_v55 = vld [vmem:[#allocation6 + $0x268] sm:$0xff]  ;;  %v307_v59 = vld [vmem:[#allocation6 + $0x218] sm:$0xff] }
  0x6f   :  { %756 = vmatmul.f32.vlgmr.msra.gmra.mxu1 %v2540_v57  ;;  %800 = vmatpush.msrb.mxu0 %v396_v60  ;;  %70 = vst [vmem:[#allocation2 + $0x548] sm:$0xff] %v2497_v30  ;;  %v467_v60 = vld [vmem:[#allocation6 + $0x718] sm:$0xff] }
  0x70   :  { %820 = vmatpush.msrb.mxu1 %v556_v61  ;;  %771 = vmatpush.msra.mxu2 %v285_v62  ;;  %71 = vst [vmem:[#allocation2 + $0x500] sm:$0xff] %v2497_v30  ;;  %v297_v61 = vld [vmem:[#allocation6 + $0x1c8] sm:$0xff] }
  0x71   :  { %791 = vmatpush.msra.mxu3 %v445_v63  ;;  %801 = vmatpush.msrb.mxu0 %v386_v0  ;;  %72 = vst [vmem:[#allocation2 + $0x58] sm:$0xff] %v2497_v30  ;;  %v457_v62 = vld [vmem:[#allocation6 + $0x6c8] sm:$0xff]  ;;  %v287_v63 = vld [vmem:[#allocation6 + $0x178] sm:$0xff] }
  0x72   :  { %821 = vmatpush.msrb.mxu1 %v546_v1  ;;  %772 = vmatpush.msra.mxu2 %v275_v2  ;;  %73 = vst [vmem:[#allocation2 + $0x2b8] sm:$0xff] %v2497_v30  ;;  %v447_v0 = vld [vmem:[#allocation6 + $0x678] sm:$0xff]  ;;  %v277_v1 = vld [vmem:[#allocation6 + $0x128] sm:$0xff] }
  0x73   :  { %792 = vmatpush.msra.mxu3 %v435_v3  ;;  %802 = vmatpush.msrb.mxu0 %v376_v4  ;;  %74 = vst [vmem:[#allocation2 + $0x580] sm:$0xff] %v2497_v30  ;;  %v437_v2 = vld [vmem:[#allocation6 + $0x628] sm:$0xff]  ;;  %v267_v3 = vld [vmem:[#allocation6 + $0xd8] sm:$0xff] }
  0x74   :  { %822 = vmatpush.msrb.mxu1 %v536_v5  ;;  %773 = vmatpush.msra.mxu2 %v265_v6  ;;  %75 = vst [vmem:[#allocation2 + $0x590] sm:$0xff] %v2497_v30  ;;  %v427_v4 = vld [vmem:[#allocation6 + $0x5d8] sm:$0xff] }
  0x75   :  { %793 = vmatpush.msra.mxu3 %v425_v7  ;;  %803 = vmatpush.msrb.mxu0 %v366_v8  ;;  %76 = vst [vmem:[#allocation2 + $0x540] sm:$0xff] %v2497_v30  ;;  %v257_v8 = vld [vmem:[#allocation6 + $0x88] sm:$0xff] }
  0x76   :  { %823 = vmatpush.msrb.mxu1 %v526_v9  ;;  %774 = vmatpush.msra.mxu2 %v255_v10  ;;  %77 = vst [vmem:[#allocation2 + $0x3c0] sm:$0xff] %v2497_v30  ;;  %v417_v9 = vld [vmem:[#allocation6 + $0x588] sm:$0xff]  ;;  %v247_v10 = vld [vmem:[#allocation6 + $0x38] sm:$0xff] }
  0x77   :  { %794 = vmatpush.msra.mxu3 %v415_v11  ;;  %804 = vmatpush.msrb.mxu0 %v356_v12  ;;  %78 = vst [vmem:[#allocation2 + $0x330] sm:$0xff] %v2497_v30  ;;  %v407_v11 = vld [vmem:[#allocation6 + $0x538] sm:$0xff]  ;;  %v398_v12 = vld [vmem:[#allocation6 + $0x4f0] sm:$0xff] }
  0x78   :  { %824 = vmatpush.msrb.mxu1 %v516_v13  ;;  %775 = vmatpush.msra.mxu2 %v245_v14  ;;  %79 = vst [vmem:[#allocation2 + $0x100] sm:$0xff] %v2497_v30  ;;  %v558_v13 = vld [vmem:[#allocation6 + $0x9f0] sm:$0xff]  ;;  %v388_v14 = vld [vmem:[#allocation6 + $0x4a0] sm:$0xff] }
  0x79   :  { %795 = vmatpush.msra.mxu3 %v405_v15  ;;  %776 = vmatmul.f32.vlgmr.msra.gmra.mxu2 %v2538_v56  ;;  %80 = vst [vmem:[#allocation2 + $0x8] sm:$0xff] %v2497_v30  ;;  %v548_v15 = vld [vmem:[#allocation6 + $0x9a0] sm:$0xff] }
  0x7a   :  { %796 = vmatmul.f32.vlgmr.msra.gmra.mxu3 %v2540_v57  ;;  %805 = vmatpush.msrb.mxu0 %v346_v16  ;;  %81 = vst [vmem:[#allocation2 + $0x188] sm:$0xff] %v2497_v30  ;;  %v378_v16 = vld [vmem:[#allocation6 + $0x450] sm:$0xff] }
  0x7b   :  { %825 = vmatpush.msrb.mxu1 %v506_v17  ;;  %840 = vmatpush.msrb.mxu2 %v397_v35  ;;  %82 = vst [vmem:[#allocation2 + $0x248] sm:$0xff] %v2497_v30  ;;  %v538_v17 = vld [vmem:[#allocation6 + $0x950] sm:$0xff] }
  0x7c   :  { %806 = vmatpush.msrb.mxu0 %v336_v18  ;;  %860 = vmatpush.msrb.mxu3 %v557_v36  ;;  %83 = vst [vmem:[#allocation2 + $0xc8] sm:$0xff] %v2497_v30  ;;  %v368_v18 = vld [vmem:[#allocation6 + $0x400] sm:$0xff] }
  0x7d   :  { %826 = vmatpush.msrb.mxu1 %v496_v19  ;;  %841 = vmatpush.msrb.mxu2 %v387_v39  ;;  %84 = vst [vmem:[#allocation2 + $0x388] sm:$0xff] %v2497_v30  ;;  %v518_v19 = vld [vmem:[#allocation6 + $0x8b0] sm:$0xff]  ;;  %v308_v36 = vld [vmem:[#allocation6 + $0x220] sm:$0xff] }
  0x7e   :  { %807 = vmatpush.msrb.mxu0 %v326_v20  ;;  %861 = vmatpush.msrb.mxu3 %v547_v40  ;;  %85 = vst [vmem:[#allocation2 + $0x520] sm:$0xff] %v2497_v30  ;;  %v348_v20 = vld [vmem:[#allocation6 + $0x360] sm:$0xff]  ;;  %v298_v40 = vld [vmem:[#allocation6 + $0x1d0] sm:$0xff] }
  0x7f   :  { %827 = vmatpush.msrb.mxu1 %v486_v21  ;;  %842 = vmatpush.msrb.mxu2 %v377_v43  ;;  %86 = vst [vmem:[#allocation2 + $0x3a8] sm:$0xff] %v2497_v30  ;;  %v508_v21 = vld [vmem:[#allocation6 + $0x860] sm:$0xff] }
  0x80   :  { %808 = vmatpush.msrb.mxu0 %v316_v22  ;;  %862 = vmatpush.msrb.mxu3 %v537_v44  ;;  %87 = vst [vmem:[#allocation2 + $0x480] sm:$0xff] %v2497_v30  ;;  %v468_v39 = vld [vmem:[#allocation6 + $0x720] sm:$0xff]  ;;  %v369_v44 = vld [vmem:[#allocation6 + $0x408] sm:$0xff] }
  0x81   :  { %828 = vmatpush.msrb.mxu1 %v476_v23  ;;  %843 = vmatpush.msrb.mxu2 %v367_v45  ;;  %88 = vst [vmem:[#allocation2 + $0x4c8] sm:$0xff] %v2497_v30  ;;  %v338_v23 = vld [vmem:[#allocation6 + $0x310] sm:$0xff]  ;;  %v288_v43 = vld [vmem:[#allocation6 + $0x180] sm:$0xff] }
  0x82   :  { %809 = vmatpush.msrb.mxu0 %v306_v24  ;;  %863 = vmatpush.msrb.mxu3 %v527_v46  ;;  %89 = vst [vmem:[#allocation2 + $0x3b8] sm:$0xff] %v2497_v30  ;;  %v498_v24 = vld [vmem:[#allocation6 + $0x810] sm:$0xff]  ;;  %v448_v45 = vld [vmem:[#allocation6 + $0x680] sm:$0xff]  ;;  %v529_v46 = vld [vmem:[#allocation6 + $0x908] sm:$0xff] }
  0x83   :  { %829 = vmatpush.msrb.mxu1 %v466_v25  ;;  %844 = vmatpush.msrb.mxu2 %v357_v47  ;;  %90 = vst [vmem:[#allocation2 + $0xe0] sm:$0xff] %v2497_v30  ;;  %v328_v25 = vld [vmem:[#allocation6 + $0x2c0] sm:$0xff]  ;;  %v278_v47 = vld [vmem:[#allocation6 + $0x130] sm:$0xff] }
  0x84   :  { %810 = vmatpush.msrb.mxu0 %v296_v26  ;;  %864 = vmatpush.msrb.mxu3 %v517_v48  ;;  %91 = vst [vmem:[#allocation2 + $0x298] sm:$0xff] %v2497_v30  ;;  %v359_v48 = vld [vmem:[#allocation6 + $0x3b8] sm:$0xff] }
  0x85   :  { %830 = vmatpush.msrb.mxu1 %v456_v27  ;;  %845 = vmatpush.msrb.mxu2 %v347_v49  ;;  %92 = vst [vmem:[#allocation2 + $0x568] sm:$0xff] %v2497_v30  ;;  %v519_v49 = vld [vmem:[#allocation6 + $0x8b8] sm:$0xff] }
  0x86   :  { %811 = vmatpush.msrb.mxu0 %v286_v28  ;;  %865 = vmatpush.msrb.mxu3 %v507_v50  ;;  %93 = vst [vmem:[#allocation2 + $0x88] sm:$0xff] %v2497_v30  ;;  %v488_v28 = vld [vmem:[#allocation6 + $0x7c0] sm:$0xff]  ;;  %v438_v50 = vld [vmem:[#allocation6 + $0x630] sm:$0xff] }
  0x87   :  { %831 = vmatpush.msrb.mxu1 %v446_v29  ;;  %846 = vmatpush.msrb.mxu2 %v337_v51  ;;  %95 = vst [vmem:[#allocation2 + $0x1e0] sm:$0xff] %v2497_v30  ;;  %v318_v29 = vld [vmem:[#allocation6 + $0x270] sm:$0xff]  ;;  %v349_v51 = vld [vmem:[#allocation6 + $0x368] sm:$0xff] }
  0x88   :  { %812 = vmatpush.msrb.mxu0 %v276_v31  ;;  %866 = vmatpush.msrb.mxu3 %v497_v52  ;;  %96 = vst [vmem:[#allocation2 + $0x2d8] sm:$0xff] %v2497_v30  ;;  %v399_v31 = vld [vmem:[#allocation6 + $0x4f8] sm:$0xff]  ;;  %v268_v52 = vld [vmem:[#allocation6 + $0xe0] sm:$0xff] }
  0x89   :  { %832 = vmatpush.msrb.mxu1 %v436_v32  ;;  %847 = vmatpush.msrb.mxu2 %v327_v53  ;;  %97 = vst [vmem:[#allocation2 + $0xb0] sm:$0xff] %v2497_v30  ;;  %v559_v32 = vld [vmem:[#allocation6 + $0x9f8] sm:$0xff]  ;;  %v428_v53 = vld [vmem:[#allocation6 + $0x5e0] sm:$0xff] }
  0x8a   :  { %813 = vmatpush.msrb.mxu0 %v266_v33  ;;  %867 = vmatpush.msrb.mxu3 %v487_v54  ;;  %98 = vst [vmem:[#allocation2 + $0x70] sm:$0xff] %v2497_v30  ;;  %v478_v33 = vld [vmem:[#allocation6 + $0x770] sm:$0xff]  ;;  %v509_v54 = vld [vmem:[#allocation6 + $0x868] sm:$0xff] }
  0x8b   :  { %833 = vmatpush.msrb.mxu1 %v426_v34  ;;  %848 = vmatpush.msrb.mxu2 %v317_v55  ;;  %99 = vst [vmem:[#allocation2 + $0x460] sm:$0xff] %v2497_v30  ;;  %v389_v34 = vld [vmem:[#allocation6 + $0x4a8] sm:$0xff]  ;;  %v258_v55 = vld [vmem:[#allocation6 + $0x90] sm:$0xff] }
  0x8c   :  { %814 = vmatpush.msrb.mxu0 %v256_v37  ;;  %868 = vmatpush.msrb.mxu3 %v477_v58  ;;  %100 = vst [vmem:[#allocation2 + $0x288] sm:$0xff] %v2497_v30  ;;  %v549_v37 = vld [vmem:[#allocation6 + $0x9a8] sm:$0xff]  ;;  %v339_v58 = vld [vmem:[#allocation6 + $0x318] sm:$0xff] }
  0x8d   :  { %834 = vmatpush.msrb.mxu1 %v416_v38  ;;  %849 = vmatpush.msrb.mxu2 %v307_v59  ;;  %101 = vst [vmem:[#allocation2 + $0x98] sm:$0xff] %v2497_v30  ;;  %v379_v38 = vld [vmem:[#allocation6 + $0x458] sm:$0xff] }
  0x8e   :  { %815 = vmatpush.msrb.mxu0 %v246_v41  ;;  %869 = vmatpush.msrb.mxu3 %v467_v60  ;;  %102 = vst [vmem:[#allocation2 + $0xf8] sm:$0xff] %v2497_v30  ;;  %v539_v41 = vld [vmem:[#allocation6 + $0x958] sm:$0xff] }
  0x8f   :  { %835 = vmatpush.msrb.mxu1 %v406_v42  ;;  %816 = vmatmul.f32.vlgmr.msrb.gmra.mxu0 %v2538_v56  ;;  %103 = vst [vmem:[#allocation2 + $0x50] sm:$0xff] %v2497_v30  ;;  %v458_v42 = vld [vmem:[#allocation6 + $0x6d0] sm:$0xff] }
  0x90   :  { %836 = vmatmul.f32.vlgmr.msrb.gmra.mxu1 %v2540_v57  ;;  %850 = vmatpush.msrb.mxu2 %v297_v61  ;;  %104 = vst [vmem:[#allocation2 + $0x308] sm:$0xff] %v2497_v30  ;;  %v418_v61 = vld [vmem:[#allocation6 + $0x590] sm:$0xff] }
  0x91   :  { %870 = vmatpush.msrb.mxu3 %v457_v62  ;;  %880 = vmatpush.msra.mxu0 %v398_v12  ;;  %105 = vst [vmem:[#allocation2 + $0x4b0] sm:$0xff] %v2497_v30  ;;  %v499_v62 = vld [vmem:[#allocation6 + $0x818] sm:$0xff] }
  0x92   :  { %851 = vmatpush.msrb.mxu2 %v287_v63  ;;  %900 = vmatpush.msra.mxu1 %v558_v13  ;;  %106 = vst [vmem:[#allocation2 + $0xf0] sm:$0xff] %v2497_v30  ;;  %v248_v63 = vld [vmem:[#allocation6 + $0x40] sm:$0xff]  ;;  %v459_v12 = vld [vmem:[#allocation6 + $0x6d8] sm:$0xff]  ;;  %v289_v13 = vld [vmem:[#allocation6 + $0x188] sm:$0xff] }
  0x93   :  { %871 = vmatpush.msrb.mxu3 %v447_v0  ;;  %881 = vmatpush.msra.mxu0 %v388_v14  ;;  %107 = vst [vmem:[#allocation2 + $0x578] sm:$0xff] %v2497_v30  ;;  %v329_v0 = vld [vmem:[#allocation6 + $0x2c8] sm:$0xff] }
  0x94   :  { %852 = vmatpush.msrb.mxu2 %v277_v1  ;;  %901 = vmatpush.msra.mxu1 %v548_v15  ;;  %108 = vst [vmem:[#allocation2 + $0x130] sm:$0xff] %v2497_v30  ;;  %v408_v1 = vld [vmem:[#allocation6 + $0x540] sm:$0xff]  ;;  %v449_v14 = vld [vmem:[#allocation6 + $0x688] sm:$0xff]  ;;  %v279_v15 = vld [vmem:[#allocation6 + $0x138] sm:$0xff] }
  0x95   :  { %872 = vmatpush.msrb.mxu3 %v437_v2  ;;  %882 = vmatpush.msra.mxu0 %v378_v16  ;;  %109 = vst [vmem:[#allocation2 + $0xc0] sm:$0xff] %v2497_v30  ;;  %v439_v16 = vld [vmem:[#allocation6 + $0x638] sm:$0xff] }
  0x96   :  { %853 = vmatpush.msrb.mxu2 %v267_v3  ;;  %902 = vmatpush.msra.mxu1 %v538_v17  ;;  %110 = vst [vmem:[#allocation2 + $0x550] sm:$0xff] %v2497_v30  ;;  %v489_v3 = vld [vmem:[#allocation6 + $0x7c8] sm:$0xff] }
  0x97   :  { %873 = vmatpush.msrb.mxu3 %v427_v4  ;;  %883 = vmatpush.msra.mxu0 %v368_v18  ;;  %111 = vst [vmem:[#allocation2 + $0x1a0] sm:$0xff] %v2497_v30  ;;  %v2667_v4 = vld [vmem:[#allocation3] sm:$0xff]  ;;  %v269_v17 = vld [vmem:[#allocation6 + $0xe8] sm:$0xff] }
  0x98   :  { %854 = vmatpush.msrb.mxu2 %v257_v8  ;;  %112 = vst [vmem:[#allocation2 + $0x78] sm:$0xff] %v2497_v30  ;;  %v479_v8 = vld [vmem:[#allocation6 + $0x778] sm:$0xff]  ;;  %v429_v18 = vld [vmem:[#allocation6 + $0x5e8] sm:$0xff] }
  0x99   :  { %874 = vmatpush.msrb.mxu3 %v417_v9  ;;  %113 = vst [vmem:[#allocation2 + $0x158] sm:$0xff] %v2497_v30  ;;  %v309_v9 = vld [vmem:[#allocation6 + $0x228] sm:$0xff] }
  0x9a   :  { %855 = vmatpush.msrb.mxu2 %v247_v10  ;;  %114 = vst [vmem:[#allocation2 + $0x560] sm:$0xff] %v2497_v30  ;;  %v469_v10 = vld [vmem:[#allocation6 + $0x728] sm:$0xff] }
  0x9b   :  { %875 = vmatpush.msrb.mxu3 %v407_v11  ;;  %856 = vmatmul.f32.vlgmr.msrb.gmra.mxu2 %v2538_v56  ;;  %v528_v56 = vld [vmem:[#allocation6 + $0x900] sm:$0xff]  ;;  %115 = vst [vmem:[#allocation2 + $0x2a0] sm:$0xff] %v2497_v30  ;;  %v299_v11 = vld [vmem:[#allocation6 + $0x1d8] sm:$0xff] }
  0x9c   :  { %876 = vmatmul.f32.vlgmr.msrb.gmra.mxu3 %v2540_v57  ;;  %v358_v57 = vld [vmem:[#allocation6 + $0x3b0] sm:$0xff]  ;;  %903 = vmatpush.msra.mxu1 %v528_v56  ;;  %116 = vst [vmem:[#allocation2 + $0x398] sm:$0xff] %v2497_v30  ;;  %v259_v56 = vld [vmem:[#allocation6 + $0x98] sm:$0xff] }
  0x9d   :  { %884 = vmatpush.msra.mxu0 %v358_v57  ;;  %920 = vmatpush.msra.mxu2 %v399_v31  ;;  %117 = vst [vmem:[#allocation2 + $0x508] sm:$0xff] %v2497_v30  ;;  %v419_v57 = vld [vmem:[#allocation6 + $0x598] sm:$0xff] }
  0x9e   :  { %904 = vmatpush.msra.mxu1 %v518_v19  ;;  %940 = vmatpush.msra.mxu3 %v559_v32  ;;  %118 = vst [vmem:[#allocation2 + $0x180] sm:$0xff] %v2497_v30  ;;  %v249_v19 = vld [vmem:[#allocation6 + $0x48] sm:$0xff] }
  0x9f   :  { %885 = vmatpush.msra.mxu0 %v348_v20  ;;  %921 = vmatpush.msra.mxu2 %v389_v34  ;;  %119 = vst [vmem:[#allocation2 + $0x400] sm:$0xff] %v2497_v30  ;;  %v409_v20 = vld [vmem:[#allocation6 + $0x548] sm:$0xff] }
  0xa0   :  { %905 = vmatpush.msra.mxu1 %v508_v21  ;;  %941 = vmatpush.msra.mxu3 %v549_v37  ;;  %120 = vst [vmem:[#allocation2 + $0x358] sm:$0xff] %v2497_v30 }
  0xa1   :  { %886 = vmatpush.msra.mxu0 %v338_v23  ;;  %922 = vmatpush.msra.mxu2 %v379_v38  ;;  %121 = vst [vmem:[#allocation2 + $0x258] sm:$0xff] %v2497_v30 }
  0xa2   :  { %906 = vmatpush.msra.mxu1 %v498_v24  ;;  %942 = vmatpush.msra.mxu3 %v539_v41  ;;  %122 = vst [vmem:[#allocation2 + $0x1e8] sm:$0xff] %v2497_v30 }
  0xa3   :  { %887 = vmatpush.msra.mxu0 %v328_v25  ;;  %923 = vmatpush.msra.mxu2 %v369_v44  ;;  %123 = vst [vmem:[#allocation2 + $0x320] sm:$0xff] %v2497_v30 }
  0xa4   :  { %907 = vmatpush.msra.mxu1 %v488_v28  ;;  %943 = vmatpush.msra.mxu3 %v529_v46  ;;  %124 = vst [vmem:[#allocation2 + $0xa8] sm:$0xff] %v2497_v30 }
  0xa5   :  { %888 = vmatpush.msra.mxu0 %v318_v29  ;;  %924 = vmatpush.msra.mxu2 %v359_v48  ;;  %125 = vst [vmem:[#allocation2 + $0xd0] sm:$0xff] %v2497_v30 }
  0xa6   :  { %908 = vmatpush.msra.mxu1 %v478_v33  ;;  %944 = vmatpush.msra.mxu3 %v519_v49  ;;  %126 = vst [vmem:[#allocation2 + $0x118] sm:$0xff] %v2497_v30 }
  0xa7   :  { %889 = vmatpush.msra.mxu0 %v308_v36  ;;  %925 = vmatpush.msra.mxu2 %v349_v51  ;;  %127 = vst [vmem:[#allocation2 + $0x410] sm:$0xff] %v2497_v30 }
  0xa8   :  { %909 = vmatpush.msra.mxu1 %v468_v39  ;;  %945 = vmatpush.msra.mxu3 %v509_v54  ;;  %128 = vst [vmem:[#allocation2 + $0x238] sm:$0xff] %v2497_v30 }
  0xa9   :  { %890 = vmatpush.msra.mxu0 %v298_v40  ;;  %926 = vmatpush.msra.mxu2 %v339_v58  ;;  %129 = vst [vmem:[#allocation2 + $0x1f0] sm:$0xff] %v2497_v30 }
  0xaa   :  { %910 = vmatpush.msra.mxu1 %v458_v42  ;;  %946 = vmatpush.msra.mxu3 %v499_v62  ;;  %130 = vst [vmem:[#allocation2 + $0xb8] sm:$0xff] %v2497_v30 }
  0xab   :  { %v577_v5 = vpop.f32.mrf.mxu0  ;;  %891 = vmatpush.msra.mxu0 %v288_v43  ;;  %927 = vmatpush.msra.mxu2 %v329_v0  ;;  %131 = vst [vmem:[#allocation2 + $0x1c8] sm:$0xff] %v2497_v30 }
  0xac   :  { %v597_v6 = vpop.f32.mrf.mxu1  ;;  %911 = vmatpush.msra.mxu1 %v448_v45  ;;  %947 = vmatpush.msra.mxu3 %v489_v3  ;;  %132 = vst [vmem:[#allocation2 + $0x478] sm:$0xff] %v2497_v30 }
  0xad   :  { %v2586_v7 = vadd.f32 %v597_v6, %v577_v5  ;;  %892 = vmatpush.msra.mxu0 %v278_v47  ;;  %v319_v5 = vld [vmem:[#allocation6 + $0x278] sm:$0xff]  ;;  %133 = vst [vmem:[#allocation2 + $0x128] sm:$0xff] %v2497_v30 }
  0xae   :  { %912 = vmatpush.msra.mxu1 %v438_v50  ;;  %v2671_v6 = vld [vmem:[#allocation3 + $0x8] sm:$0xff]  ;;  %928 = vmatpush.msra.mxu2 %v319_v5  ;;  %134 = vst [vmem:[#allocation2 + $0x588] sm:$0xff] %v2497_v30 }
  0xaf   :  { %1075 = vrot.lane.b32.xlu2 %v2586_v7, %s2498_s0  ;;  %1027 = vrot.lane.b32.xlu1 %v2586_v7, %s2499_s2  ;;  %v2619_v22 = vrot.slane %v2586_v7, 4  ;;  %135 = vst [vmem:[#allocation2 + $0x4e0] sm:$0xff] %v2497_v30 }
  0xb0   :  { %979 = vrot.lane.b32.xlu0 %v2586_v7, %s2500_s28  ;;  %893 = vmatpush.msra.mxu0 %v268_v52  ;;  %136 = vst [vmem:[#allocation2 + $0x338] sm:$0xff] %v2497_v30 }
  0xb1   :  { %913 = vmatpush.msra.mxu1 %v428_v53  ;;  %948 = vmatpush.msra.mxu3 %v479_v8  ;;  %137 = vst [vmem:[#allocation2 + $0xa0] sm:$0xff] %v2497_v30 }
  0xb2   :  { %894 = vmatpush.msra.mxu0 %v258_v55  ;;  %929 = vmatpush.msra.mxu2 %v309_v9  ;;  %138 = vst [vmem:[#allocation2 + $0x280] sm:$0xff] %v2497_v30 }
  0xb3   :  { %914 = vmatpush.msra.mxu1 %v418_v61  ;;  %949 = vmatpush.msra.mxu3 %v469_v10  ;;  %139 = vst [vmem:[#allocation2 + $0x3d8] sm:$0xff] %v2497_v30 }
  0xb4   :  { %895 = vmatpush.msra.mxu0 %v248_v63  ;;  %930 = vmatpush.msra.mxu2 %v299_v11  ;;  %140 = vst [vmem:[#allocation2 + $0x1d8] sm:$0xff] %v2497_v30 }
  0xb5   :  { %v617_v26 = vpop.f32.mrf.mxu2  ;;  %915 = vmatpush.msra.mxu1 %v408_v1  ;;  %896 = vmatmul.f32.vlgmr.msra.gmra.mxu0 %v2667_v4  ;;  %141 = vst [vmem:[#allocation2 + $0x4f8] sm:$0xff] %v2497_v30 }
  0xb6   :  { %v637_v27 = vpop.f32.mrf.mxu3  ;;  %916 = vmatmul.f32.vlgmr.msra.gmra.mxu1 %v2671_v6  ;;  %1958 = vmatpush.msrb.mxu0 %v2497_v30  ;;  %142 = vst [vmem:[#allocation2 + $0x240] sm:$0xff] %v2497_v30 }
  0xb7   :  { %1219 = vrot.lane.b32.xlu2 %v2586_v7, %s2501_s29  ;;  %1171 = vrot.lane.b32.xlu1 %v2586_v7, %s2502_s30  ;;  %v2633_v35 = vadd.f32 %v637_v27, %v617_v26  ;;  %143 = vst [vmem:[#allocation2 + $0x30] sm:$0xff] %v2497_v30 }
  0xb8   :  { %1123 = vrot.lane.b32.xlu0 %v2586_v7, %s2503_s4  ;;  %1978 = vmatpush.msrb.mxu1 %v2497_v30  ;;  %144 = vst [vmem:[#allocation2 + $0x360] sm:$0xff] %v2497_v30 }
  0xb9   :  { %950 = vmatpush.msra.mxu3 %v459_v12  ;;  %931 = vmatpush.msra.mxu2 %v289_v13  ;;  %145 = vst [vmem:[#allocation2 + $0x380] sm:$0xff] %v2497_v30  ;;  %v2742_v26 = vrot.slane %v2633_v35, 4 }
  0xba   :  { %146 = vst [vmem:[#allocation2 + $0x150] sm:$0xff] %v2497_v30 }
  0xbb   :  { %951 = vmatpush.msra.mxu3 %v449_v14  ;;  %932 = vmatpush.msra.mxu2 %v279_v15  ;;  %147 = vst [vmem:[#allocation2 + $0x1a8] sm:$0xff] %v2497_v30 }
  0xbc   :  { %148 = vst [vmem:[#allocation2 + $0x60] sm:$0xff] %v2497_v30 }
  0xbd   :  { %952 = vmatpush.msra.mxu3 %v439_v16  ;;  %933 = vmatpush.msra.mxu2 %v269_v17  ;;  %149 = vst [vmem:[#allocation2 + $0x1b8] sm:$0xff] %v2497_v30 }
  0xbe   :  { %150 = vst [vmem:[#allocation2 + $0xe8] sm:$0xff] %v2497_v30 }
  0xbf   :  { %1315 = vrot.lane.b32.xlu1 %v2586_v7, %s2504_s5  ;;  %1391 = vrot.lane.b32.xlu2 %v2619_v22, %s2500_s28  ;;  %151 = vst [vmem:[#allocation2 + $0x2e8] sm:$0xff] %v2497_v30 }
  0xc0   :  { %1267 = vrot.lane.b32.xlu0 %v2586_v7, %s2505_s6  ;;  %953 = vmatpush.msra.mxu3 %v429_v18  ;;  %152 = vst [vmem:[#allocation2 + $0x170] sm:$0xff] %v2497_v30 }
  0xc1   :  { %934 = vmatpush.msra.mxu2 %v259_v56  ;;  %153 = vst [vmem:[#allocation2 + $0x48] sm:$0xff] %v2497_v30 }
  0xc2   :  { %954 = vmatpush.msra.mxu3 %v419_v57  ;;  %154 = vst [vmem:[#allocation2 + $0x178] sm:$0xff] %v2497_v30 }
  0xc3   :  { %935 = vmatpush.msra.mxu2 %v249_v19  ;;  %155 = vst [vmem:[#allocation2 + $0x4c0] sm:$0xff] %v2497_v30 }
  0xc4   :  { %955 = vmatpush.msra.mxu3 %v409_v20  ;;  %936 = vmatmul.f32.vlgmr.msra.gmra.mxu2 %v2667_v4  ;;  %156 = vst [vmem:[#allocation2 + $0x488] sm:$0xff] %v2497_v30 }
  0xc5   :  { %956 = vmatmul.f32.vlgmr.msra.gmra.mxu3 %v2671_v6  ;;  %1998 = vmatpush.msrb.mxu2 %v2497_v30  ;;  %157 = vst [vmem:[#allocation2 + $0x570] sm:$0xff] %v2497_v30 }
  0xc6   :  { %2018 = vmatpush.msrb.mxu3 %v2497_v30  ;;  %158 = vst [vmem:[#allocation2 + $0x250] sm:$0xff] %v2497_v30 }
  0xc7   :  { %1125 = vrot.lane.b32.xlu1 %v2633_v35, %s2503_s4  ;;  %1029 = vrot.lane.b32.xlu2 %v2633_v35, %s2499_s2  ;;  %159 = vst [vmem:[#allocation2 + $0x120] sm:$0xff] %v2497_v30 }
  0xc8   :  { %981 = vrot.lane.b32.xlu0 %v2633_v35, %s2500_s28  ;;  %160 = vst [vmem:[#allocation2 + $0x420] sm:$0xff] %v2497_v30 }
  0xc9   :  { %161 = vst [vmem:[#allocation2 + $0x348] sm:$0xff] %v2497_v30 }
  0xca   :  { %162 = vst [vmem:[#allocation2 + $0x3f0] sm:$0xff] %v2497_v30 }
  0xcb   :  { %v657_v59 = vpop.f32.mrf.mxu0  ;;  %163 = vst [vmem:[#allocation2 + $0x2d0] sm:$0xff] %v2497_v30 }
  0xcc   :  { %v677_v60 = vpop.f32.mrf.mxu1  ;;  %164 = vst [vmem:[#allocation2 + $0x1d0] sm:$0xff] %v2497_v30 }
  0xcd   :  { %v2663_v2 = vadd.f32 %v677_v60, %v657_v59  ;;  %165 = vst [vmem:[#allocation2 + $0x468] sm:$0xff] %v2497_v30 }
  0xce   :  { %166 = vst [vmem:[#allocation2 + $0x3f8] sm:$0xff] %v2497_v30 }
  0xcf   :  { %1269 = vrot.lane.b32.xlu1 %v2633_v35, %s2505_s6  ;;  %1173 = vrot.lane.b32.xlu2 %v2633_v35, %s2502_s30  ;;  %v2724_v25 = vrot.slane %v2663_v2, 4  ;;  %167 = vst [vmem:[#allocation2 + $0x518] sm:$0xff] %v2497_v30 }
  0xd0   :  { %1077 = vrot.lane.b32.xlu0 %v2633_v35, %s2498_s0  ;;  %168 = vst [vmem:[#allocation2 + $0x278] sm:$0xff] %v2497_v30 }
  0xd1   :  { %169 = vst [vmem:[#allocation2 + $0x438] sm:$0xff] %v2497_v30 }
  0xd2   :  { %170 = vst [vmem:[#allocation2 + $0x408] sm:$0xff] %v2497_v30 }
  0xd3   :  { %171 = vst [vmem:[#allocation2 + $0x210] sm:$0xff] %v2497_v30 }
  0xd4   :  { %172 = vst [vmem:[#allocation2 + $0x4a0] sm:$0xff] %v2497_v30 }
  0xd5   :  { %173 = vst [vmem:[#allocation2 + $0x208] sm:$0xff] %v2497_v30 }
  0xd6   :  { %174 = vst [vmem:[#allocation2 + $0x300] sm:$0xff] %v2497_v30 }
  0xd7   :  { %983 = vrot.lane.b32.xlu1 %v2663_v2, %s2500_s28  ;;  %1317 = vrot.lane.b32.xlu2 %v2633_v35, %s2504_s5  ;;  %175 = vst [vmem:[#allocation2] sm:$0xff] %v2497_v30 }
  0xd8   :  { %1221 = vrot.lane.b32.xlu0 %v2633_v35, %s2501_s29  ;;  %176 = vst [vmem:[#allocation2 + $0x228] sm:$0xff] %v2497_v30 }
  0xd9   :  { %v697_v21 = vpop.f32.mrf.mxu2  ;;  %177 = vst [vmem:[#allocation2 + $0x80] sm:$0xff] %v2497_v30 }
  0xda   :  { %v717_v23 = vpop.f32.mrf.mxu3  ;;  %178 = vst [vmem:[#allocation2 + $0x28] sm:$0xff] %v2497_v30 }
  0xdb   :  { %v2718_v24 = vadd.f32 %v717_v23, %v697_v21  ;;  %179 = vst [vmem:[#allocation2 + $0x2e0] sm:$0xff] %v2497_v30 }
  0xdc   :  { %180 = vst [vmem:[#allocation2 + $0x558] sm:$0xff] %v2497_v30 }
  0xdd   :  { %v2756_v27 = vrot.slane %v2718_v24, 4  ;;  %181 = vst [vmem:[#allocation2 + $0x3a0] sm:$0xff] %v2497_v30 }
  0xde   :  { %182 = vst [vmem:[#allocation2 + $0x218] sm:$0xff] %v2497_v30 }
  0xdf   :  { %1079 = vrot.lane.b32.xlu1 %v2663_v2, %s2498_s0  ;;  %1127 = vrot.lane.b32.xlu2 %v2663_v2, %s2503_s4  ;;  %183 = vst [vmem:[#allocation2 + $0x140] sm:$0xff] %v2497_v30 }
  0xe0   :  { %1031 = vrot.lane.b32.xlu0 %v2663_v2, %s2499_s2  ;;  %184 = vst [vmem:[#allocation2 + $0x3c8] sm:$0xff] %v2497_v30 }
  0xe1   :  { %185 = vst [vmem:[#allocation2 + $0x68] sm:$0xff] %v2497_v30 }
  0xe2   :  { %186 = vst [vmem:[#allocation2 + $0x2f0] sm:$0xff] %v2497_v30 }
  0xe3   :  { %187 = vst [vmem:[#allocation2 + $0x310] sm:$0xff] %v2497_v30 }
  0xe4   :  { %188 = vst [vmem:[#allocation2 + $0x190] sm:$0xff] %v2497_v30 }
  0xe5   :  { %189 = vst [vmem:[#allocation2 + $0x2a8] sm:$0xff] %v2497_v30 }
  0xe6   :  { %190 = vst [vmem:[#allocation2 + $0x3d0] sm:$0xff] %v2497_v30 }
  0xe7   :  { %1223 = vrot.lane.b32.xlu1 %v2663_v2, %s2501_s29  ;;  %1271 = vrot.lane.b32.xlu2 %v2663_v2, %s2505_s6  ;;  %191 = vst [vmem:[#allocation2 + $0x200] sm:$0xff] %v2497_v30 }
  0xe8   :  { %1175 = vrot.lane.b32.xlu0 %v2663_v2, %s2502_s30  ;;  %192 = vst [vmem:[#allocation2 + $0x1b0] sm:$0xff] %v2497_v30 }
  0xe9   :  { %193 = vst [vmem:[#allocation2 + $0x390] sm:$0xff] %v2497_v30 }
  0xea   :  { %194 = vst [vmem:[#allocation2 + $0x428] sm:$0xff] %v2497_v30 }
  0xeb   :  { %v737_v28 = vpop.f32.mrf.mxu0  ;;  %195 = vst [vmem:[#allocation2 + $0x418] sm:$0xff] %v2497_v30 }
  0xec   :  { %v757_v29 = vpop.f32.mrf.mxu1  ;;  %196 = vst [vmem:[#allocation2 + $0x4d0] sm:$0xff] %v2497_v30 }
  0xed   :  { %v2772_v31 = vadd.f32 %v757_v29, %v737_v28  ;;  %197 = vst [vmem:[#allocation2 + $0x430] sm:$0xff] %v2497_v30 }
  0xee   :  { %198 = vst [vmem:[#allocation2 + $0x530] sm:$0xff] %v2497_v30 }
  0xef   :  { %1395 = vrot.lane.b32.xlu1 %v2724_v25, %s2500_s28  ;;  %1081 = vrot.lane.b32.xlu2 %v2718_v24, %s2498_s0  ;;  %199 = vst [vmem:[#allocation2 + $0x340] sm:$0xff] %v2497_v30  ;;  %v2826_v36 = vrot.slane %v2772_v31, 4 }
  0xf0   :  { %1319 = vrot.lane.b32.xlu0 %v2663_v2, %s2504_s5  ;;  %200 = vst [vmem:[#allocation2 + $0xd8] sm:$0xff] %v2497_v30 }
  0xf1   :  { %201 = vst [vmem:[#allocation2 + $0x268] sm:$0xff] %v2497_v30 }
  0xf2   :  { %202 = vst [vmem:[#allocation2 + $0x368] sm:$0xff] %v2497_v30 }
  0xf3   :  { %203 = vst [vmem:[#allocation2 + $0x138] sm:$0xff] %v2497_v30 }
  0xf4   :  { %204 = vst [vmem:[#allocation2 + $0x350] sm:$0xff] %v2497_v30 }
  0xf5   :  { %205 = vst [vmem:[#allocation2 + $0x290] sm:$0xff] %v2497_v30 }
  0xf6   :  { %206 = vst [vmem:[#allocation2 + $0x448] sm:$0xff] %v2497_v30 }
  0xf7   :  { %985 = vrot.lane.b32.xlu1 %v2718_v24, %s2500_s28  ;;  %1225 = vrot.lane.b32.xlu2 %v2718_v24, %s2501_s29  ;;  %207 = vst [vmem:[#allocation2 + $0x38] sm:$0xff] %v2497_v30 }
  0xf8   :  { %1393 = vrot.lane.b32.xlu0 %v2742_v26, %s2500_s28  ;;  %208 = vst [vmem:[#allocation2 + $0x1c0] sm:$0xff] %v2497_v30 }
  0xf9   :  { %209 = vst [vmem:[#allocation2 + $0x220] sm:$0xff] %v2497_v30 }
  0xfa   :  { %210 = vst [vmem:[#allocation2 + $0x110] sm:$0xff] %v2497_v30 }
  0xfb   :  { %211 = vst [vmem:[#allocation2 + $0x470] sm:$0xff] %v2497_v30 }
  0xfc   :  { %212 = vst [vmem:[#allocation2 + $0x160] sm:$0xff] %v2497_v30  ;;  %v777_v41 = vpop.f32.mrf.mxu2 }
  0xfd   :  { %213 = vst [vmem:[#allocation2 + $0x2c8] sm:$0xff] %v2497_v30  ;;  %v797_v42 = vpop.f32.mrf.mxu3 }
  0xfe   :  { %214 = vst [vmem:[#allocation2 + $0x1f8] sm:$0xff] %v2497_v30  ;;  %v2856_v43 = vadd.f32 %v797_v42, %v777_v41 }
  0xff   :  { %1033 = vrot.lane.b32.xlu1 %v2718_v24, %s2499_s2  ;;  %1397 = vrot.lane.b32.xlu2 %v2756_v27, %s2500_s28  ;;  %215 = vst [vmem:[#allocation2 + $0x40] sm:$0xff] %v2497_v30 }
 0x100   :  { %1129 = vrot.lane.b32.xlu0 %v2718_v24, %s2503_s4  ;;  %216 = vst [vmem:[#allocation2 + $0x4e8] sm:$0xff] %v2497_v30  ;;  %v2936_v8 = vrot.slane %v2856_v43, 4 }
 0x101   :  { %217 = vst [vmem:[#allocation2 + $0x458] sm:$0xff] %v2497_v30 }
 0x102   :  { %218 = vst [vmem:[#allocation2 + $0x270] sm:$0xff] %v2497_v30 }
 0x103   :  { %219 = vst [vmem:[#allocation2 + $0x20] sm:$0xff] %v2497_v30 }
 0x104   :  { %960 = vst [vmem:[#allocation2 + $0x2b0] sm:$0xf] %v2586_v7 }
 0x105   :  { %961 = vst [vmem:[#allocation2 + $0x3b0] sm:$0xf] %v2633_v35 }
 0x106   :  { %962 = vst [vmem:[#allocation2 + $0x4d8] sm:$0xf] %v2663_v2 }
 0x107   :  { %1177 = vrot.lane.b32.xlu1 %v2718_v24, %s2502_s30  ;;  %987 = vrot.lane.b32.xlu2 %v2772_v31, %s2500_s28  ;;  %963 = vst [vmem:[#allocation2 + $0x18] sm:$0xf] %v2718_v24 }
 0x108   :  { %1273 = vrot.lane.b32.xlu0 %v2718_v24, %s2505_s6  ;;  %964 = vst [vmem:[#allocation2 + $0x450] sm:$0xf] %v2772_v31 }
 0x109   :  { %v2786_v32 = vpop.permute.xlu2 %1075  ;;  %1381 = vst [vmem:[#allocation2 + $0x510] sm:$0xf] %v2619_v22 }
 0x10a   :  { %1382 = vst [vmem:[#allocation2 + $0x490] sm:$0xf] %v2742_v26 }
 0x10b   :  { %1383 = vst [vmem:[#allocation2 + $0x318] sm:$0xf] %v2724_v25 }
 0x10c   :  { %v817_v50 = vpop.f32.mrf.mxu0  ;;  %1384 = vst [vmem:[#allocation2 + $0x548] sm:$0xf] %v2756_v27 }
 0x10d   :  { %v837_v51 = vpop.f32.mrf.mxu1  ;;  %1385 = vst [vmem:[#allocation2 + $0x500] sm:$0xf] %v2826_v36 }
 0x10e   :  { %v2877_v52 = vadd.f32 %v837_v51, %v817_v50  ;;  %965 = vst [vmem:[#allocation2 + $0x328] sm:$0xf] %v2856_v43  ;;  %v1768_v50 = vld [vmem:[#allocation2 + $0x2b0] sm:$0xff] }
 0x10f   :  { %1321 = vrot.lane.b32.xlu1 %v2718_v24, %s2504_s5  ;;  %1035 = vrot.lane.b32.xlu2 %v2772_v31, %s2499_s2  ;;  %1386 = vst [vmem:[#allocation2 + $0x58] sm:$0xf] %v2936_v8 }
 0x110   :  { %1083 = vrot.lane.b32.xlu0 %v2772_v31, %s2498_s0  ;;  %966 = vst [vmem:[#allocation2 + $0x440] sm:$0xf] %v2877_v52  ;;  %v2941_v12 = vrot.slane %v2877_v52, 4 }
 0x111   :  { %v2802_v33 = vpop.permute.xlu2 %1219 }
 0x112   :  { %1387 = vst [vmem:[#allocation2 + $0x2b8] sm:$0xf] %v2941_v12 }
 0x117   :  { %1131 = vrot.lane.b32.xlu1 %v2772_v31, %s2503_s4  ;;  %1179 = vrot.lane.b32.xlu2 %v2772_v31, %s2502_s30 }
 0x118   :  { %1227 = vrot.lane.b32.xlu0 %v2772_v31, %s2501_s29 }
 0x119   :  { %v2818_v34 = vpop.permute.xlu2 %1391 }
 0x11e   :  { %v857_v14 = vpop.f32.mrf.mxu2 }
 0x11f   :  { %1275 = vrot.lane.b32.xlu1 %v2772_v31, %s2505_s6  ;;  %1323 = vrot.lane.b32.xlu2 %v2772_v31, %s2504_s5  ;;  %v877_v15 = vpop.f32.mrf.mxu3 }
 0x120   :  { %1399 = vrot.lane.b32.xlu0 %v2826_v36, %s2500_s28  ;;  %v2959_v56 = vadd.f32 %v877_v15, %v857_v14 }
 0x121   :  { %v1028_v37 = vpop.permute.xlu1 %1027  ;;  %v2837_v38 = vpop.permute.xlu2 %1029 }
 0x122   :  { %v1048_v39 = vsel %vm1047_vm0, %v1028_v37, %v2837_v38  ;;  %v2843_v40 = vpop.permute.xlu0 %979  ;;  %967 = vst [vmem:[#allocation2 + $0x378] sm:$0xf] %v2959_v56 }
 0x123   :  { %1066 = vst [vmem:[#allocation2 + $0x4b8] sm:$0xf] %v1048_v39 }
 0x127   :  { %1085 = vrot.lane.b32.xlu1 %v2856_v43, %s2498_s0  ;;  %989 = vrot.lane.b32.xlu2 %v2856_v43, %s2500_s28 }
 0x128   :  { %1037 = vrot.lane.b32.xlu0 %v2856_v43, %s2499_s2 }
 0x129   :  { %v1172_v44 = vpop.permute.xlu1 %1171  ;;  %v2859_v46 = vpop.permute.xlu2 %1173 }
 0x12a   :  { %v1124_v45 = vpop.permute.xlu0 %1123  ;;  %v1192_v7 = vsel %vm1191_vm1, %v1172_v44, %v2859_v46 }
 0x12b   :  { %1210 = vst [vmem:[#allocation2 + $0x60] sm:$0xf] %v1192_v7 }
 0x12f   :  { %1229 = vrot.lane.b32.xlu1 %v2856_v43, %s2501_s29  ;;  %1133 = vrot.lane.b32.xlu2 %v2856_v43, %s2503_s4 }
 0x130   :  { %1181 = vrot.lane.b32.xlu0 %v2856_v43, %s2502_s30 }
 0x131   :  { %v1316_v47 = vpop.permute.xlu1 %1315  ;;  %v2869_v49 = vpop.permute.xlu2 %1317 }
 0x132   :  { %v1268_v48 = vpop.permute.xlu0 %1267  ;;  %v1336_v35 = vsel %vm1335_vm2, %v1316_v47, %v2869_v49  ;;  %v897_v57 = vpop.f32.mrf.mxu0  ;;  %v1804_v47 = vld [vmem:[#allocation2 + $0x4b8] sm:$0xff] }
 0x133   :  { %1354 = vst [vmem:[#allocation2 + $0x368] sm:$0xf] %v1336_v35  ;;  %v917_v19 = vpop.f32.mrf.mxu1 }
 0x134   :  { %v2963_v24 = vadd.f32 %v917_v19, %v897_v57 }
 0x136   :  { %v2984_v39 = vrot.slane %v2963_v24, 4  ;;  %968 = vst [vmem:[#allocation2 + $0x108] sm:$0xf] %v2963_v24 }
 0x137   :  { %1039 = vrot.lane.b32.xlu1 %v2877_v52, %s2499_s2  ;;  %1277 = vrot.lane.b32.xlu2 %v2856_v43, %s2505_s6 }
 0x138   :  { %1325 = vrot.lane.b32.xlu0 %v2856_v43, %s2504_s5  ;;  %1389 = vst [vmem:[#allocation2 + $0x590] sm:$0xf] %v2984_v39 }
 0x139   :  { %v1126_v30 = vpop.permute.xlu1 %1125  ;;  %v2879_v54 = vpop.permute.xlu2 %1127 }
 0x13a   :  { %v982_v53 = vpop.permute.xlu0 %981  ;;  %v1144_v62 = vsel %vm1143_vm3, %v1124_v45, %v1126_v30  ;;  %v1145_v1 = vsel %vm1143_vm3, %v1126_v30, %v2879_v54  ;;  %v1912_v11 = vld [vmem:[#allocation2 + $0x368] sm:$0xff] }
 0x13b   :  { %v1000_v0 = vsel %vm999_vm4, %v2843_v40, %v982_v53  ;;  %1162 = vst [vmem:[#allocation2 + $0xb8] sm:$0xf] %v1144_v62  ;;  %1959 = vmatpush.msrb.mxu0 %v1912_v11 }
 0x13c   :  { %1018 = vst [vmem:[#allocation2 + $0x540] sm:$0xf] %v1000_v0 }
 0x13d   :  { %1163 = vst [vmem:[#allocation2 + $0x1c8] sm:$0xf] %v1145_v1 }
 0x13f   :  { %1183 = vrot.lane.b32.xlu1 %v2877_v52, %s2502_s30  ;;  %1087 = vrot.lane.b32.xlu2 %v2877_v52, %s2498_s0 }
 0x140   :  { %991 = vrot.lane.b32.xlu0 %v2877_v52, %s2500_s28 }
 0x141   :  { %v1270_v55 = vpop.permute.xlu1 %1269  ;;  %v2891_v59 = vpop.permute.xlu2 %1271 }
 0x142   :  { %v1078_v58 = vpop.permute.xlu0 %1077  ;;  %v1288_v2 = vsel %vm1287_vm5, %v1268_v48, %v1270_v55  ;;  %v1289_v4 = vsel %vm1287_vm5, %v1270_v55, %v2891_v59  ;;  %v1840_v40 = vld [vmem:[#allocation2 + $0xb8] sm:$0xff] }
 0x143   :  { %v1096_v3 = vsel %vm1095_vm6, %v2786_v32, %v1078_v58  ;;  %1306 = vst [vmem:[#allocation2 + $0x3c8] sm:$0xf] %v1288_v2  ;;  %v1786_v48 = vld [vmem:[#allocation2 + $0x540] sm:$0xff] }
 0x144   :  { %1114 = vst [vmem:[#allocation2 + $0x78] sm:$0xf] %v1096_v3 }
 0x145   :  { %1307 = vst [vmem:[#allocation2 + $0x68] sm:$0xf] %v1289_v4 }
 0x147   :  { %1327 = vrot.lane.b32.xlu1 %v2877_v52, %s2504_s5  ;;  %1231 = vrot.lane.b32.xlu2 %v2877_v52, %s2501_s29 }
 0x148   :  { %1135 = vrot.lane.b32.xlu0 %v2877_v52, %s2503_s4 }
 0x149   :  { %v2910_v60 = vpop.permute.xlu1 %983  ;;  %v2913_v63 = vpop.permute.xlu2 %1081 }
 0x14a   :  { %v1222_v61 = vpop.permute.xlu0 %1221  ;;  %v1001_v5 = vsel %vm999_vm4, %v982_v53, %v2910_v60  ;;  %v1894_v20 = vld [vmem:[#allocation2 + $0x3c8] sm:$0xff] }
 0x14b   :  { %v1240_v6 = vsel %vm1239_vm7, %v2802_v33, %v1222_v61  ;;  %1019 = vst [vmem:[#allocation2 + $0x3c0] sm:$0xf] %v1001_v5  ;;  %1960 = vmatpush.msrb.mxu0 %v1894_v20  ;;  %v2975_v33 = vrot.slane %v2959_v56, 4  ;;  %v1822_v41 = vld [vmem:[#allocation2 + $0x78] sm:$0xff]  ;;  %v1841_v5 = vld [vmem:[#allocation2 + $0x1c8] sm:$0xff] }
 0x14c   :  { %1258 = vst [vmem:[#allocation2 + $0x3f8] sm:$0xf] %v1240_v6 }
 0x14d   :  { %1388 = vst [vmem:[#allocation2 + $0x580] sm:$0xf] %v2975_v33 }
 0x14f   :  { %1401 = vrot.lane.b32.xlu1 %v2936_v8, %s2500_s28  ;;  %1403 = vrot.lane.b32.xlu2 %v2941_v12, %s2500_s28 }
 0x150   :  { %1279 = vrot.lane.b32.xlu0 %v2877_v52, %s2505_s6  ;;  %v3004_v52 = vld [vmem:[#allocation2 + $0x330] sm:$0xff] }
 0x151   :  { %v1080_v9 = vpop.permute.xlu1 %1079  ;;  %v2943_v13 = vpop.permute.xlu2 %1225 }
 0x152   :  { %v2938_v10 = vpop.permute.xlu0 %1031  ;;  %v1097_v16 = vsel %vm1095_vm6, %v1078_v58, %v1080_v9  ;;  %v1098_v17 = vsel %vm1095_vm6, %v1080_v9, %v2913_v63  ;;  %v1787_v11 = vld [vmem:[#allocation2 + $0x3c0] sm:$0xff] }
 0x153   :  { %v1049_v18 = vsel %vm1047_vm0, %v2837_v38, %v2938_v10  ;;  %1115 = vst [vmem:[#allocation2 + $0x158] sm:$0xf] %v1097_v16  ;;  %v1876_v37 = vld [vmem:[#allocation2 + $0x3f8] sm:$0xff]  ;;  %v1858_v38 = vld [vmem:[#allocation2 + $0x60] sm:$0xff] }
 0x154   :  { %1116 = vst [vmem:[#allocation2 + $0x560] sm:$0xf] %v1098_v17  ;;  %1961 = vmatpush.msrb.mxu0 %v1876_v37  ;;  %v1769_v17 = vld [vmem:[#allocation2 + $0x3b0] sm:$0xff] }
 0x155   :  { %1067 = vst [vmem:[#allocation2 + $0x1e0] sm:$0xf] %v1049_v18 }
 0x156   :  { %1962 = vmatpush.msrb.mxu0 %v1858_v38 }
 0x157   :  { %993 = vrot.lane.b32.xlu1 %v2959_v56, %s2500_s28  ;;  %1041 = vrot.lane.b32.xlu2 %v2959_v56, %s2499_s2 }
 0x158   :  { %1089 = vrot.lane.b32.xlu0 %v2959_v56, %s2498_s0  ;;  %1963 = vmatpush.msrb.mxu0 %v1840_v40 }
 0x159   :  { %v1224_v21 = vpop.permute.xlu1 %1223  ;;  %v2972_v32 = vpop.permute.xlu2 %1397 }
 0x15a   :  { %v2961_v23 = vpop.permute.xlu0 %1175  ;;  %v1241_v28 = vsel %vm1239_vm7, %v1222_v61, %v1224_v21  ;;  %v1242_v29 = vsel %vm1239_vm7, %v1224_v21, %v2943_v13  ;;  %1964 = vmatpush.msrb.mxu0 %v1822_v41  ;;  %v1823_v6 = vld [vmem:[#allocation2 + $0x158] sm:$0xff]  ;;  %v937_v21 = vpop.f32.mrf.mxu2 }
 0x15b   :  { %v1193_v31 = vsel %vm1191_vm1, %v2859_v46, %v2961_v23  ;;  %1259 = vst [vmem:[#allocation2 + $0x518] sm:$0xf] %v1241_v28 }
 0x15c   :  { %1260 = vst [vmem:[#allocation2 + $0x278] sm:$0xf] %v1242_v29  ;;  %1965 = vmatpush.msrb.mxu0 %v1804_v47 }
 0x15d   :  { %1211 = vst [vmem:[#allocation2 + $0x1b8] sm:$0xf] %v1193_v31 }
 0x15e   :  { %1966 = vmatpush.msrb.mxu0 %v1786_v48 }
 0x15f   :  { %1137 = vrot.lane.b32.xlu1 %v2959_v56, %s2503_s4  ;;  %1185 = vrot.lane.b32.xlu2 %v2959_v56, %s2502_s30 }
 0x160   :  { %1233 = vrot.lane.b32.xlu0 %v2959_v56, %s2501_s29  ;;  %1967 = vmatpush.msrb.mxu0 %v1768_v50 }
 0x161   :  { %v1396_v42 = vpop.permute.xlu1 %1395  ;;  %v2996_v46 = vpop.permute.xlu2 %987 }
 0x162   :  { %v2989_v43 = vpop.permute.xlu0 %1319  ;;  %v1413_v44 = vsel %vm999_vm4, %v1396_v42, %v2972_v32  ;;  %2038 = vmatpush.msra.mxu0 %v3004_v52 }
 0x163   :  { %v1337_v45 = vsel %vm1335_vm2, %v2869_v49, %v2989_v43  ;;  %1431 = vst [vmem:[#allocation2 + $0x480] sm:$0xf] %v1413_v44  ;;  %v1878_v44 = vld [vmem:[#allocation2 + $0x278] sm:$0xff] }
 0x164   :  { %1355 = vst [vmem:[#allocation2 + $0x138] sm:$0xf] %v1337_v45  ;;  %v1859_v0 = vld [vmem:[#allocation2 + $0x1b8] sm:$0xff] }
 0x167   :  { %1281 = vrot.lane.b32.xlu1 %v2959_v56, %s2505_s6  ;;  %1329 = vrot.lane.b32.xlu2 %v2959_v56, %s2504_s5 }
 0x168   :  { %1405 = vrot.lane.b32.xlu0 %v2975_v33, %s2500_s28 }
 0x169   :  { %v986_v49 = vpop.permute.xlu1 %985  ;;  %v3013_v58 = vpop.permute.xlu2 %1035 }
 0x16a   :  { %v1394_v51 = vpop.permute.xlu0 %1393  ;;  %v1002_v30 = vsel %vm999_vm4, %v2910_v60, %v986_v49  ;;  %v1003_v53 = vsel %vm999_vm4, %v986_v49, %v2996_v46  ;;  %v1895_v60 = vld [vmem:[#allocation2 + $0x68] sm:$0xff] }
 0x16b   :  { %v1411_v55 = vsel %vm999_vm4, %v2818_v34, %v1394_v51  ;;  %1020 = vst [vmem:[#allocation2 + $0x330] sm:$0xf] %v1002_v30  ;;  %v1412_v7 = vsel %vm999_vm4, %v1394_v51, %v1396_v42  ;;  %v1913_v35 = vld [vmem:[#allocation2 + $0x138] sm:$0xff]  ;;  %v1824_v51 = vld [vmem:[#allocation2 + $0x560] sm:$0xff] }
 0x16c   :  { %1021 = vst [vmem:[#allocation2 + $0x100] sm:$0xf] %v1003_v53  ;;  %1979 = vmatpush.msrb.mxu1 %v1913_v35  ;;  %v1877_v34 = vld [vmem:[#allocation2 + $0x518] sm:$0xff] }
 0x16d   :  { %1429 = vst [vmem:[#allocation2 + $0x520] sm:$0xf] %v1411_v55 }
 0x16e   :  { %1430 = vst [vmem:[#allocation2 + $0x3a8] sm:$0xf] %v1412_v7  ;;  %1980 = vmatpush.msrb.mxu1 %v1895_v60  ;;  %v1770_v7 = vld [vmem:[#allocation2 + $0x4d8] sm:$0xff] }
 0x16f   :  { %1091 = vrot.lane.b32.xlu1 %v2963_v24, %s2498_s0  ;;  %995 = vrot.lane.b32.xlu2 %v2963_v24, %s2500_s28 }
 0x170   :  { %1981 = vmatpush.msrb.mxu1 %v1877_v34  ;;  %1043 = vrot.lane.b32.xlu0 %v2963_v24, %s2499_s2 }
 0x171   :  { %v1034_v61 = vpop.permute.xlu1 %1033  ;;  %v3028_v4 = vpop.permute.xlu2 %1179 }
 0x172   :  { %v1130_v62 = vpop.permute.xlu0 %1129  ;;  %v1050_v1 = vsel %vm1047_vm0, %v2938_v10, %v1034_v61  ;;  %v1051_v2 = vsel %vm1047_vm0, %v1034_v61, %v3013_v58  ;;  %1982 = vmatpush.msrb.mxu1 %v1859_v0 }
 0x173   :  { %v1146_v3 = vsel %vm1143_vm3, %v2879_v54, %v1130_v62  ;;  %1068 = vst [vmem:[#allocation2 + $0x2d8] sm:$0xf] %v1050_v1  ;;  %v1805_v54 = vld [vmem:[#allocation2 + $0x1e0] sm:$0xff] }
 0x174   :  { %1069 = vst [vmem:[#allocation2 + $0xb0] sm:$0xf] %v1051_v2  ;;  %1983 = vmatpush.msrb.mxu1 %v1841_v5 }
 0x175   :  { %1164 = vst [vmem:[#allocation2 + $0x478] sm:$0xf] %v1146_v3 }
 0x176   :  { %1984 = vmatpush.msrb.mxu1 %v1823_v6 }
 0x177   :  { %1235 = vrot.lane.b32.xlu1 %v2963_v24, %s2501_s29  ;;  %1139 = vrot.lane.b32.xlu2 %v2963_v24, %s2503_s4 }
 0x178   :  { %1985 = vmatpush.msrb.mxu1 %v1805_v54  ;;  %1187 = vrot.lane.b32.xlu0 %v2963_v24, %s2502_s30 }
 0x179   :  { %v1178_v9 = vpop.permute.xlu1 %1177  ;;  %v3046_v18 = vpop.permute.xlu2 %1323 }
 0x17a   :  { %v1274_v10 = vpop.permute.xlu0 %1273  ;;  %v1194_v14 = vsel %vm1191_vm1, %v2961_v23, %v1178_v9  ;;  %v1195_v15 = vsel %vm1191_vm1, %v1178_v9, %v3028_v4  ;;  %1986 = vmatpush.msrb.mxu1 %v1787_v11  ;;  %v957_v23 = vpop.f32.mrf.mxu3  ;;  %v1806_v53 = vld [vmem:[#allocation2 + $0x2d8] sm:$0xff] }
 0x17b   :  { %v1290_v16 = vsel %vm1287_vm5, %v2891_v59, %v1274_v10  ;;  %1212 = vst [vmem:[#allocation2 + $0xe8] sm:$0xf] %v1194_v14  ;;  %v958_v29 = vadd.f32 %v957_v23, %v937_v21 }
 0x17c   :  { %1213 = vst [vmem:[#allocation2 + $0x2e8] sm:$0xf] %v1195_v15  ;;  %1987 = vmatpush.msrb.mxu1 %v1769_v17  ;;  %v1842_v49 = vld [vmem:[#allocation2 + $0x478] sm:$0xff]  ;;  %v1789_v17 = vld [vmem:[#allocation2 + $0x100] sm:$0xff] }
 0x17d   :  { %1308 = vst [vmem:[#allocation2 + $0x2f0] sm:$0xf] %v1290_v16  ;;  %v3098_v60 = vrot.slane %v958_v29, 4 }
 0x17e   :  { %2058 = vmatpush.msra.mxu1 %v3004_v52 }
 0x17f   :  { %1407 = vrot.lane.b32.xlu1 %v2984_v39, %s2500_s28  ;;  %1283 = vrot.lane.b32.xlu2 %v2963_v24, %s2505_s6 }
 0x180   :  { %1331 = vrot.lane.b32.xlu0 %v2963_v24, %s2504_s5 }
 0x181   :  { %v1322_v59 = vpop.permute.xlu1 %1321  ;;  %v3066_v28 = vpop.permute.xlu2 %989 }
 0x182   :  { %v3051_v56 = vpop.permute.xlu0 %1083  ;;  %v1338_v57 = vsel %vm1335_vm2, %v2989_v43, %v1322_v59  ;;  %v1339_v19 = vsel %vm1335_vm2, %v1322_v59, %v3046_v18  ;;  %v1860_v45 = vld [vmem:[#allocation2 + $0xe8] sm:$0xff]  ;;  %v1771_v59 = vld [vmem:[#allocation2 + $0x18] sm:$0xff] }
 0x183   :  { %v1099_v20 = vsel %vm1095_vm6, %v2913_v63, %v3051_v56  ;;  %1356 = vst [vmem:[#allocation2 + $0x350] sm:$0xf] %v1338_v57  ;;  %v1004_v63 = vsel %vm999_vm4, %v2996_v46, %v3066_v28  ;;  %v1861_v5 = vld [vmem:[#allocation2 + $0x2e8] sm:$0xff] }
 0x184   :  { %1357 = vst [vmem:[#allocation2 + $0x290] sm:$0xf] %v1339_v19  ;;  %v1896_v42 = vld [vmem:[#allocation2 + $0x2f0] sm:$0xff] }
 0x185   :  { %1117 = vst [vmem:[#allocation2 + $0x2a0] sm:$0xf] %v1099_v20 }
 0x186   :  { %1022 = vst [vmem:[#allocation2 + $0x8] sm:$0xf] %v1004_v63 }
 0x187   :  { %1045 = vrot.lane.b32.xlu1 %v958_v29, %s2499_s2  ;;  %1093 = vrot.lane.b32.xlu2 %v958_v29, %s2498_s0 }
 0x188   :  { %997 = vrot.lane.b32.xlu0 %v958_v29, %s2500_s28 }
 0x189   :  { %v1132_v31 = vpop.permute.xlu1 %1131  ;;  %v3080_v43 = vpop.permute.xlu2 %1133 }
 0x18a   :  { %v3071_v37 = vpop.permute.xlu0 %1227  ;;  %v1147_v38 = vsel %vm1143_vm3, %v1130_v62, %v1132_v31  ;;  %v1914_v41 = vld [vmem:[#allocation2 + $0x350] sm:$0xff] }
 0x18b   :  { %v1243_v40 = vsel %vm1239_vm7, %v2943_v13, %v3071_v37  ;;  %1165 = vst [vmem:[#allocation2 + $0x128] sm:$0xf] %v1147_v38  ;;  %1999 = vmatpush.msrb.mxu2 %v1914_v41  ;;  %v1915_v24 = vld [vmem:[#allocation2 + $0x290] sm:$0xff]  ;;  %v1148_v13 = vsel %vm1143_vm3, %v1132_v31, %v3080_v43 }
 0x18c   :  { %1261 = vst [vmem:[#allocation2 + $0x438] sm:$0xf] %v1243_v40  ;;  %2019 = vmatpush.msrb.mxu3 %v1915_v24  ;;  %v1825_v54 = vld [vmem:[#allocation2 + $0x2a0] sm:$0xff] }
 0x18d   :  { %2000 = vmatpush.msrb.mxu2 %v1896_v42  ;;  %1166 = vst [vmem:[#allocation2 + $0x588] sm:$0xf] %v1148_v13 }
 0x18f   :  { %2001 = vmatpush.msrb.mxu2 %v1878_v44  ;;  %1189 = vrot.lane.b32.xlu1 %v958_v29, %s2502_s30 }
 0x190   :  { %1141 = vrot.lane.b32.xlu0 %v958_v29, %s2503_s4  ;;  %1237 = vrot.lane.b32.xlu2 %v958_v29, %s2501_s29 }
 0x191   :  { %v1276_v46 = vpop.permute.xlu1 %1275  ;;  %2002 = vmatpush.msrb.mxu2 %v1860_v45  ;;  %v3093_v30 = vpop.permute.xlu2 %1277 }
 0x192   :  { %v3084_v47 = vpop.permute.xlu0 %1399  ;;  %v1291_v48 = vsel %vm1287_vm5, %v1274_v10, %v1276_v46  ;;  %v1292_v55 = vsel %vm1287_vm5, %v1276_v46, %v3093_v30  ;;  %v1843_v6 = vld [vmem:[#allocation2 + $0x128] sm:$0xff]  ;;  %v1807_v10 = vld [vmem:[#allocation2 + $0xb0] sm:$0xff] }
 0x193   :  { %v1414_v50 = vsel %vm999_vm4, %v2972_v32, %v3084_v47  ;;  %1309 = vst [vmem:[#allocation2 + $0x310] sm:$0xf] %v1291_v48  ;;  %2003 = vmatpush.msrb.mxu2 %v1842_v49  ;;  %v1788_v32 = vld [vmem:[#allocation2 + $0x330] sm:$0xff]  ;;  %v1879_v62 = vld [vmem:[#allocation2 + $0x438] sm:$0xff]  ;;  %v1790_v49 = vld [vmem:[#allocation2 + $0x8] sm:$0xff] }
 0x194   :  { %1432 = vst [vmem:[#allocation2 + $0x4c8] sm:$0xf] %v1414_v50  ;;  %v1844_v45 = vld [vmem:[#allocation2 + $0x588] sm:$0xff] }
 0x195   :  { %2004 = vmatpush.msrb.mxu2 %v1824_v51  ;;  %1310 = vst [vmem:[#allocation2 + $0x190] sm:$0xf] %v1292_v55 }
 0x197   :  { %2005 = vmatpush.msrb.mxu2 %v1806_v53  ;;  %1333 = vrot.lane.b32.xlu1 %v958_v29, %s2504_s5 }
 0x198   :  { %1285 = vrot.lane.b32.xlu0 %v958_v29, %s2505_s6  ;;  %1409 = vrot.lane.b32.xlu2 %v3098_v60, %s2500_s28 }
 0x199   :  { %2006 = vmatpush.msrb.mxu2 %v1788_v32  ;;  %v1086_v34 = vpop.permute.xlu1 %1085  ;;  %v3108_v2 = vpop.permute.xlu2 %1087 }
 0x19a   :  { %v1897_v35 = vld [vmem:[#allocation2 + $0x310] sm:$0xff]  ;;  %v1038_v61 = vpop.permute.xlu0 %1037  ;;  %v1100_v0 = vsel %vm1095_vm6, %v3051_v56, %v1086_v34  ;;  %v1101_v3 = vsel %vm1095_vm6, %v1086_v34, %v3108_v2 }
 0x19b   :  { %2007 = vmatpush.msrb.mxu2 %v1770_v7  ;;  %2020 = vmatpush.msrb.mxu3 %v1897_v35  ;;  %v1052_v1 = vsel %vm1047_vm0, %v3013_v58, %v1038_v61  ;;  %1118 = vst [vmem:[#allocation2 + $0x398] sm:$0xf] %v1100_v0  ;;  %v1772_v34 = vld [vmem:[#allocation2 + $0x450] sm:$0xff] }
 0x19c   :  { %1070 = vst [vmem:[#allocation2 + $0x70] sm:$0xf] %v1052_v1  ;;  %v1898_v38 = vld [vmem:[#allocation2 + $0x190] sm:$0xff] }
 0x19d   :  { %2078 = vmatpush.msra.mxu2 %v3004_v52  ;;  %2021 = vmatpush.msrb.mxu3 %v1879_v62  ;;  %1119 = vst [vmem:[#allocation2 + $0x508] sm:$0xf] %v1101_v3 }
 0x19f   :  { %2022 = vmatpush.msrb.mxu3 %v1861_v5  ;;  %1722 = vrot.lane.b32.xlu1 %v2742_v26, %s2504_s5 }
 0x1a0   :  { %1720 = vrot.lane.b32.xlu0 %v2619_v22, %s2504_s5  ;;  %1673 = vrot.lane.b32.xlu2 %v2619_v22, %s2505_s6 }
 0x1a1   :  { %2023 = vmatpush.msrb.mxu3 %v1843_v6  ;;  %v1230_v58 = vpop.permute.xlu1 %1229  ;;  %v3122_v15 = vpop.permute.xlu2 %1231 }
 0x1a2   :  { %v1182_v9 = vpop.permute.xlu0 %1181  ;;  %v1244_v11 = vsel %vm1239_vm7, %v3071_v37, %v1230_v58  ;;  %v1245_v16 = vsel %vm1239_vm7, %v1230_v58, %v3122_v15  ;;  %v1826_v48 = vld [vmem:[#allocation2 + $0x398] sm:$0xff] }
 0x1a3   :  { %2024 = vmatpush.msrb.mxu3 %v1825_v54  ;;  %v1196_v14 = vsel %vm1191_vm1, %v3028_v4, %v1182_v9  ;;  %1262 = vst [vmem:[#allocation2 + $0x408] sm:$0xf] %v1244_v11  ;;  %v1808_v50 = vld [vmem:[#allocation2 + $0x70] sm:$0xff] }
 0x1a4   :  { %1214 = vst [vmem:[#allocation2 + $0x170] sm:$0xf] %v1196_v14 }
 0x1a5   :  { %2025 = vmatpush.msrb.mxu3 %v1807_v10  ;;  %1263 = vst [vmem:[#allocation2 + $0x210] sm:$0xf] %v1245_v16 }
 0x1a7   :  { %2026 = vmatpush.msrb.mxu3 %v1789_v17  ;;  %1626 = vrot.lane.b32.xlu1 %v2619_v22, %s2501_s29 }
 0x1a8   :  { %1675 = vrot.lane.b32.xlu0 %v2742_v26, %s2505_s6  ;;  %1628 = vrot.lane.b32.xlu2 %v2742_v26, %s2501_s29 }
 0x1a9   :  { %2027 = vmatpush.msrb.mxu3 %v1771_v59  ;;  %v1040_v4 = vpop.permute.xlu1 %1039  ;;  %v3136_v20 = vpop.permute.xlu2 %1403 }
 0x1aa   :  { %v1326_v56 = vpop.permute.xlu0 %1325  ;;  %v1053_v57 = vsel %vm1047_vm0, %v1038_v61, %v1040_v4  ;;  %v1880_v40 = vld [vmem:[#allocation2 + $0x408] sm:$0xff] }
 0x1ab   :  { %2098 = vmatpush.msra.mxu3 %v3004_v52  ;;  %v1340_v19 = vsel %vm1335_vm2, %v3046_v18, %v1326_v56  ;;  %1071 = vst [vmem:[#allocation2 + $0x460] sm:$0xf] %v1053_v57  ;;  %v1862_v24 = vld [vmem:[#allocation2 + $0x170] sm:$0xff]  ;;  %v1773_v57 = vld [vmem:[#allocation2 + $0x328] sm:$0xff] }
 0x1ac   :  { %1358 = vst [vmem:[#allocation2 + $0x448] sm:$0xf] %v1340_v19  ;;  %v1881_v54 = vld [vmem:[#allocation2 + $0x210] sm:$0xff] }
 0x1af   :  { %1581 = vrot.lane.b32.xlu1 %v2742_v26, %s2502_s30 }
 0x1b0   :  { %1579 = vrot.lane.b32.xlu0 %v2619_v22, %s2502_s30  ;;  %1724 = vrot.lane.b32.xlu2 %v2724_v25, %s2504_s5 }
 0x1b1   :  { %v1184_v21 = vpop.permute.xlu1 %1183  ;;  %v3147_v29 = vpop.permute.xlu2 %1041 }
 0x1b2   :  { %v992_v23 = vpop.permute.xlu0 %991  ;;  %v1197_v63 = vsel %vm1191_vm1, %v1182_v9, %v1184_v21  ;;  %v1054_v37 = vsel %vm1047_vm0, %v1040_v4, %v3147_v29  ;;  %v1809_v17 = vld [vmem:[#allocation2 + $0x460] sm:$0xff] }
 0x1b3   :  { %v1005_v18 = vsel %vm999_vm4, %v3066_v28, %v992_v23  ;;  %1215 = vst [vmem:[#allocation2 + $0x48] sm:$0xf] %v1197_v63  ;;  %v1916_v31 = vld [vmem:[#allocation2 + $0x448] sm:$0xff] }
 0x1b4   :  { %1023 = vst [vmem:[#allocation2 + $0x188] sm:$0xf] %v1005_v18  ;;  %2039 = vmatpush.msra.mxu0 %v1916_v31 }
 0x1b5   :  { %1072 = vst [vmem:[#allocation2 + $0x288] sm:$0xf] %v1054_v37 }
 0x1b6   :  { %2040 = vmatpush.msra.mxu0 %v1898_v38 }
 0x1b7   :  { %1532 = vrot.lane.b32.xlu1 %v2619_v22, %s2503_s4 }
 0x1b8   :  { %1726 = vrot.lane.b32.xlu0 %v2756_v27, %s2504_s5  ;;  %2041 = vmatpush.msra.mxu0 %v1880_v40 }
 0x1b9   :  { %1534 = vrot.lane.b32.xlu2 %v2742_v26, %s2503_s4  ;;  %v1328_v28 = vpop.permute.xlu1 %1327  ;;  %v3160_v13 = vpop.permute.xlu2 %1185 }
 0x1ba   :  { %v1136_v41 = vpop.permute.xlu0 %1135  ;;  %v1341_v42 = vsel %vm1335_vm2, %v1326_v56, %v1328_v28  ;;  %2042 = vmatpush.msra.mxu0 %v1862_v24  ;;  %v1198_v46 = vsel %vm1191_vm1, %v1184_v21, %v3160_v13 }
 0x1bb   :  { %v1149_v44 = vsel %vm1143_vm3, %v3080_v43, %v1136_v41  ;;  %1359 = vst [vmem:[#allocation2 + $0x38] sm:$0xf] %v1341_v42  ;;  %v1791_v59 = vld [vmem:[#allocation2 + $0x188] sm:$0xff] }
 0x1bc   :  { %1167 = vst [vmem:[#allocation2 + $0x4e0] sm:$0xf] %v1149_v44  ;;  %2043 = vmatpush.msra.mxu0 %v1844_v45 }
 0x1bd   :  { %1216 = vst [vmem:[#allocation2 + $0x178] sm:$0xf] %v1198_v46 }
 0x1be   :  { %2044 = vmatpush.msra.mxu0 %v1826_v48 }
 0x1bf   :  { %1679 = vrot.lane.b32.xlu1 %v2756_v27, %s2505_s6 }
 0x1c0   :  { %1677 = vrot.lane.b32.xlu0 %v2724_v25, %s2505_s6  ;;  %2045 = vmatpush.msra.mxu0 %v1808_v50 }
 0x1c1   :  { %1485 = vrot.lane.b32.xlu2 %v2619_v22, %s2498_s0  ;;  %v1402_v43 = vpop.permute.xlu1 %1401  ;;  %v3176_v35 = vpop.permute.xlu2 %1329 }
 0x1c2   :  { %v1415_v51 = vsel %vm999_vm4, %v3084_v47, %v1402_v43  ;;  %v1416_v53 = vsel %vm999_vm4, %v1402_v43, %v3136_v20  ;;  %v1280_v55 = vpop.permute.xlu0 %1279  ;;  %2046 = vmatpush.msra.mxu0 %v1790_v49  ;;  %v1917_v32 = vld [vmem:[#allocation2 + $0x38] sm:$0xff]  ;;  %v1342_v61 = vsel %vm1335_vm2, %v1328_v28, %v3176_v35  ;;  %v1810_v43 = vld [vmem:[#allocation2 + $0x288] sm:$0xff] }
 0x1c3   :  { %1433 = vst [vmem:[#allocation2 + $0x3b8] sm:$0xf] %v1415_v51  ;;  %v1293_v7 = vsel %vm1287_vm5, %v3093_v30, %v1280_v55  ;;  %2059 = vmatpush.msra.mxu1 %v1917_v32  ;;  %v1845_v11 = vld [vmem:[#allocation2 + $0x4e0] sm:$0xff] }
 0x1c4   :  { %1434 = vst [vmem:[#allocation2 + $0xe0] sm:$0xf] %v1416_v53  ;;  %2047 = vmatpush.msra.mxu0 %v1772_v34  ;;  %v1774_v51 = vld [vmem:[#allocation2 + $0x440] sm:$0xff] }
 0x1c5   :  { %1311 = vst [vmem:[#allocation2 + $0x2a8] sm:$0xf] %v1293_v7 }
 0x1c6   :  { %1360 = vst [vmem:[#allocation2 + $0x1c0] sm:$0xf] %v1342_v61  ;;  %v3249_v61 = vld [vmem:[#allocation8] sm:$0xff] }
 0x1c7   :  { %1630 = vrot.lane.b32.xlu1 %v2724_v25, %s2501_s29  ;;  %2351 = vmatmul.msk.f32.vlgmr.msrb.gmra.mxu0 %vm1948_vm8, %v3249_v61 }
 0x1c8   :  { %1487 = vrot.lane.b32.xlu0 %v2742_v26, %s2498_s0  ;;  %2352 = vmatmul.msk.f32.vlgmr.msrb.gmra.mxu1 %vm1948_vm8, %v3249_v61 }
 0x1c9   :  { %1632 = vrot.lane.b32.xlu2 %v2756_v27, %s2501_s29  ;;  %v994_v47 = vpop.permute.xlu1 %993  ;;  %v3189_v1 = vpop.permute.xlu2 %995  ;;  %2118 = vmatpush.msrb.mxu0 %v3004_v52 }
 0x1ca   :  { %v1006_v30 = vsel %vm999_vm4, %v992_v23, %v994_v47  ;;  %v1090_v62 = vpop.permute.xlu0 %1089  ;;  %v1007_v3 = vsel %vm999_vm4, %v994_v47, %v3189_v1  ;;  %2353 = vmatmul.msk.f32.vlgmr.msrb.gmra.mxu2 %vm1948_vm8, %v3249_v61  ;;  %2354 = vmatmul.msk.f32.vlgmr.msrb.gmra.mxu3 %vm1948_vm8, %v3249_v61 }
 0x1cb   :  { %1024 = vst [vmem:[#allocation2 + $0x248] sm:$0xf] %v1006_v30  ;;  %v1102_v0 = vsel %vm1095_vm6, %v3108_v2, %v1090_v62  ;;  %v1863_v2 = vld [vmem:[#allocation2 + $0x48] sm:$0xff] }
 0x1cc   :  { %1120 = vst [vmem:[#allocation2 + $0x180] sm:$0xf] %v1102_v0  ;;  %v1899_v5 = vld [vmem:[#allocation2 + $0x2a8] sm:$0xff] }
 0x1cd   :  { %1025 = vst [vmem:[#allocation2 + $0xc8] sm:$0xf] %v1007_v3  ;;  %2060 = vmatpush.msra.mxu1 %v1899_v5  ;;  %v1918_v6 = vld [vmem:[#allocation2 + $0x1c0] sm:$0xff] }
 0x1ce   :  { %2079 = vmatpush.msra.mxu2 %v1918_v6 }
 0x1cf   :  { %2061 = vmatpush.msra.mxu1 %v1881_v54  ;;  %1440 = vrot.lane.b32.xlu1 %v2742_v26, %s2499_s2  ;;  %v1827_v26 = vld [vmem:[#allocation2 + $0x508] sm:$0xff] }
 0x1d0   :  { %1438 = vrot.lane.b32.xlu0 %v2619_v22, %s2499_s2  ;;  %2355 = vmatmul.msk.f32.vlgmr.msra.gmra.mxu0 %vm1948_vm8, %v3249_v61 }
 0x1d1   :  { %1583 = vrot.lane.b32.xlu2 %v2724_v25, %s2502_s30  ;;  %2062 = vmatpush.msra.mxu1 %v1863_v2  ;;  %v1138_v58 = vpop.permute.xlu1 %1137  ;;  %v3202_v16 = vpop.permute.xlu2 %1139 }
 0x1d2   :  { %v1150_v9 = vsel %vm1143_vm3, %v1136_v41, %v1138_v58  ;;  %v1234_v10 = vpop.permute.xlu0 %1233  ;;  %v1151_v22 = vsel %vm1143_vm3, %v1138_v58, %v3202_v16  ;;  %v1864_v41 = vld [vmem:[#allocation2 + $0x178] sm:$0xff]  ;;  %v1792_v49 = vld [vmem:[#allocation2 + $0x248] sm:$0xff] }
 0x1d3   :  { %1168 = vst [vmem:[#allocation2 + $0x338] sm:$0xf] %v1150_v9  ;;  %v1246_v14 = vsel %vm1239_vm7, %v3122_v15, %v1234_v10  ;;  %2063 = vmatpush.msra.mxu1 %v1845_v11  ;;  %v1828_v45 = vld [vmem:[#allocation2 + $0x180] sm:$0xff] }
 0x1d4   :  { %1264 = vst [vmem:[#allocation2 + $0x4a0] sm:$0xf] %v1246_v14 }
 0x1d5   :  { %1169 = vst [vmem:[#allocation2 + $0xa0] sm:$0xf] %v1151_v22  ;;  %2064 = vmatpush.msra.mxu1 %v1827_v26 }
 0x1d7   :  { %2065 = vmatpush.msra.mxu1 %v1809_v17  ;;  %1728 = vrot.lane.b32.xlu1 %v2826_v36, %s2504_s5 }
 0x1d8   :  { %1585 = vrot.lane.b32.xlu0 %v2756_v27, %s2502_s30 }
 0x1d9   :  { %1730 = vrot.lane.b32.xlu2 %v2936_v8, %s2504_s5  ;;  %2066 = vmatpush.msra.mxu1 %v1791_v59  ;;  %v1282_v15 = vpop.permute.xlu1 %1281  ;;  %v3215_v21 = vpop.permute.xlu2 %1283 }
 0x1da   :  { %v1294_v4 = vsel %vm1287_vm5, %v1280_v55, %v1282_v15  ;;  %v1406_v56 = vpop.permute.xlu0 %1405  ;;  %v1295_v23 = vsel %vm1287_vm5, %v1282_v15, %v3215_v21  ;;  %v1846_v24 = vld [vmem:[#allocation2 + $0x338] sm:$0xff] }
 0x1db   :  { %1312 = vst [vmem:[#allocation2 + $0x3d0] sm:$0xf] %v1294_v4  ;;  %v1417_v19 = vsel %vm999_vm4, %v3136_v20, %v1406_v56  ;;  %2067 = vmatpush.msra.mxu1 %v1773_v57  ;;  %v1882_v28 = vld [vmem:[#allocation2 + $0x4a0] sm:$0xff]  ;;  %v1775_v15 = vld [vmem:[#allocation2 + $0x378] sm:$0xff] }
 0x1dc   :  { %1435 = vst [vmem:[#allocation2 + $0x298] sm:$0xf] %v1417_v19  ;;  %2356 = vmatmul.msk.f32.vlgmr.msra.gmra.mxu1 %vm1948_vm8, %v3249_v61 }
 0x1dd   :  { %1313 = vst [vmem:[#allocation2 + $0x200] sm:$0xf] %v1295_v23  ;;  %2138 = vmatpush.msrb.mxu1 %v3004_v52 }
 0x1df   :  { %1538 = vrot.lane.b32.xlu1 %v2756_v27, %s2503_s4 }
 0x1e0   :  { %1536 = vrot.lane.b32.xlu0 %v2724_v25, %s2503_s4 }
 0x1e1   :  { %1681 = vrot.lane.b32.xlu2 %v2826_v36, %s2505_s6  ;;  %v1092_v63 = vpop.permute.xlu1 %1091  ;;  %v1094_v38 = vpop.permute.xlu2 %1093 }
 0x1e2   :  { %v1103_v20 = vsel %vm1095_vm6, %v1090_v62, %v1092_v63  ;;  %v1044_v18 = vpop.permute.xlu0 %1043  ;;  %v1900_v31 = vld [vmem:[#allocation2 + $0x3d0] sm:$0xff]  ;;  %v1104_v40 = vsel %vm1095_vm6, %v1092_v63, %v1094_v38 }
 0x1e3   :  { %1121 = vst [vmem:[#allocation2 + $0x400] sm:$0xf] %v1103_v20  ;;  %v1055_v37 = vsel %vm1047_vm0, %v3147_v29, %v1044_v18  ;;  %2080 = vmatpush.msra.mxu2 %v1900_v31 }
 0x1e4   :  { %1073 = vst [vmem:[#allocation2 + $0x98] sm:$0xf] %v1055_v37  ;;  %v1901_v5 = vld [vmem:[#allocation2 + $0x200] sm:$0xff] }
 0x1e5   :  { %1122 = vst [vmem:[#allocation2 + $0x358] sm:$0xf] %v1104_v40  ;;  %2081 = vmatpush.msra.mxu2 %v1882_v28 }
 0x1e7   :  { %1732 = vrot.lane.b32.xlu1 %v2941_v12, %s2504_s5  ;;  %2082 = vmatpush.msra.mxu2 %v1864_v41 }
 0x1e8   :  { %1683 = vrot.lane.b32.xlu0 %v2936_v8, %s2505_s6 }
 0x1e9   :  { %1734 = vrot.lane.b32.xlu2 %v2975_v33, %s2504_s5  ;;  %v1236_v29 = vpop.permute.xlu1 %1235  ;;  %2083 = vmatpush.msra.mxu2 %v1846_v24 }
 0x1ea   :  { %v1247_v42 = vsel %vm1239_vm7, %v1234_v10, %v1236_v29  ;;  %v1188_v44 = vpop.permute.xlu0 %1187  ;;  %v1238_v48 = vpop.permute.xlu2 %1237 }
 0x1eb   :  { %1265 = vst [vmem:[#allocation2 + $0x208] sm:$0xf] %v1247_v42  ;;  %v1199_v46 = vsel %vm1191_vm1, %v3160_v13, %v1188_v44  ;;  %2084 = vmatpush.msra.mxu2 %v1828_v45  ;;  %v1248_v50 = vsel %vm1239_vm7, %v1236_v29, %v1238_v48  ;;  %v1811_v11 = vld [vmem:[#allocation2 + $0x98] sm:$0xff] }
 0x1ec   :  { %1217 = vst [vmem:[#allocation2 + $0x4c0] sm:$0xf] %v1199_v46  ;;  %v1830_v42 = vld [vmem:[#allocation2 + $0x358] sm:$0xff] }
 0x1ed   :  { %1266 = vst [vmem:[#allocation2 + $0x300] sm:$0xf] %v1248_v50  ;;  %2085 = vmatpush.msra.mxu2 %v1810_v43  ;;  %v1776_v50 = vld [vmem:[#allocation2 + $0x108] sm:$0xff] }
 0x1ef   :  { %1491 = vrot.lane.b32.xlu1 %v2756_v27, %s2498_s0  ;;  %2086 = vmatpush.msra.mxu2 %v1792_v49 }
 0x1f0   :  { %1489 = vrot.lane.b32.xlu0 %v2724_v25, %s2498_s0 }
 0x1f1   :  { %1634 = vrot.lane.b32.xlu2 %v2826_v36, %s2501_s29  ;;  %v1408_v13 = vpop.permute.xlu1 %1407  ;;  %2087 = vmatpush.msra.mxu2 %v1774_v51 }
 0x1f2   :  { %v1418_v53 = vsel %vm999_vm4, %v1406_v56, %v1408_v13  ;;  %v1332_v55 = vpop.permute.xlu0 %1331  ;;  %v1410_v7 = vpop.permute.xlu2 %1409  ;;  %2357 = vmatmul.msk.f32.vlgmr.msra.gmra.mxu2 %vm1948_vm8, %v3249_v61 }
 0x1f3   :  { %1436 = vst [vmem:[#allocation2 + $0x568] sm:$0xf] %v1418_v53  ;;  %v1343_v32 = vsel %vm1335_vm2, %v3176_v35, %v1332_v55  ;;  %v1419_v34 = vsel %vm999_vm4, %v1408_v13, %v1410_v7  ;;  %2158 = vmatpush.msrb.mxu2 %v3004_v52  ;;  %v1865_v54 = vld [vmem:[#allocation2 + $0x4c0] sm:$0xff] }
 0x1f4   :  { %1361 = vst [vmem:[#allocation2 + $0x220] sm:$0xf] %v1343_v32  ;;  %v1884_v20 = vld [vmem:[#allocation2 + $0x300] sm:$0xff] }
 0x1f5   :  { %1437 = vst [vmem:[#allocation2 + $0x88] sm:$0xf] %v1419_v34 }
 0x1f7   :  { %1685 = vrot.lane.b32.xlu1 %v2941_v12, %s2505_s6 }
 0x1f8   :  { %1636 = vrot.lane.b32.xlu0 %v2936_v8, %s2501_s29 }
 0x1f9   :  { %1687 = vrot.lane.b32.xlu2 %v2975_v33, %s2505_s6  ;;  %v1046_v35 = vpop.permute.xlu1 %1045 }
 0x1fa   :  { %v1056_v47 = vsel %vm1047_vm0, %v1044_v18, %v1046_v35  ;;  %v998_v30 = vpop.permute.xlu0 %997  ;;  %v3271_v0 = vpop.permute.xlu2 %1673 }
 0x1fb   :  { %1074 = vst [vmem:[#allocation2 + $0xf8] sm:$0xf] %v1056_v47  ;;  %v1008_v62 = vsel %vm999_vm4, %v3189_v1, %v998_v30  ;;  %v1919_v3 = vld [vmem:[#allocation2 + $0x220] sm:$0xff]  ;;  %v1883_v1 = vld [vmem:[#allocation2 + $0x208] sm:$0xff] }
 0x1fc   :  { %1026 = vst [vmem:[#allocation2 + $0x388] sm:$0xf] %v1008_v62  ;;  %2099 = vmatpush.msra.mxu3 %v1919_v3 }
 0x1fe   :  { %2100 = vmatpush.msra.mxu3 %v1901_v5 }
 0x1ff   :  { %1444 = vrot.lane.b32.xlu1 %v2756_v27, %s2499_s2  ;;  %v1847_v27 = vld [vmem:[#allocation2 + $0xa0] sm:$0xff] }
 0x200   :  { %1442 = vrot.lane.b32.xlu0 %v2724_v25, %s2499_s2  ;;  %2101 = vmatpush.msra.mxu3 %v1883_v1  ;;  %v1829_v25 = vld [vmem:[#allocation2 + $0x400] sm:$0xff] }
 0x201   :  { %1587 = vrot.lane.b32.xlu2 %v2826_v36, %s2502_s30  ;;  %v1190_v6 = vpop.permute.xlu1 %1189 }
 0x202   :  { %v1200_v2 = vsel %vm1191_vm1, %v1188_v44, %v1190_v6  ;;  %v1142_v58 = vpop.permute.xlu0 %1141  ;;  %2102 = vmatpush.msra.mxu3 %v1865_v54  ;;  %v3288_v10 = vpop.permute.xlu2 %1628  ;;  %v1812_v44 = vld [vmem:[#allocation2 + $0xf8] sm:$0xff] }
 0x203   :  { %1218 = vst [vmem:[#allocation2 + $0x488] sm:$0xf] %v1200_v2  ;;  %v1152_v9 = vsel %vm1143_vm3, %v3202_v16, %v1142_v58  ;;  %v1793_v16 = vld [vmem:[#allocation2 + $0xc8] sm:$0xff] }
 0x204   :  { %1170 = vst [vmem:[#allocation2 + $0x280] sm:$0xf] %v1152_v9  ;;  %2103 = vmatpush.msra.mxu3 %v1847_v27  ;;  %v1794_v45 = vld [vmem:[#allocation2 + $0x388] sm:$0xff] }
 0x206   :  { %2104 = vmatpush.msra.mxu3 %v1829_v25 }
 0x207   :  { %1638 = vrot.lane.b32.xlu1 %v2941_v12, %s2501_s29 }
 0x208   :  { %1589 = vrot.lane.b32.xlu0 %v2936_v8, %s2502_s30  ;;  %2105 = vmatpush.msra.mxu3 %v1811_v11 }
 0x209   :  { %1640 = vrot.lane.b32.xlu2 %v2975_v33, %s2501_s29  ;;  %v1334_v14 = vpop.permute.xlu1 %1333 }
 0x20a   :  { %v1344_v22 = vsel %vm1335_vm2, %v1332_v55, %v1334_v14  ;;  %v1286_v26 = vpop.permute.xlu0 %1285  ;;  %2106 = vmatpush.msra.mxu3 %v1793_v16  ;;  %v3299_v59 = vpop.permute.xlu2 %1724  ;;  %v1866_v18 = vld [vmem:[#allocation2 + $0x488] sm:$0xff] }
 0x20b   :  { %1362 = vst [vmem:[#allocation2 + $0x110] sm:$0xf] %v1344_v22  ;;  %v1296_v17 = vsel %vm1287_vm5, %v3215_v21, %v1286_v26  ;;  %v1848_v40 = vld [vmem:[#allocation2 + $0x280] sm:$0xff] }
 0x20c   :  { %1314 = vst [vmem:[#allocation2 + $0x1b0] sm:$0xf] %v1296_v17  ;;  %2107 = vmatpush.msra.mxu3 %v1775_v15 }
 0x20d   :  { %2358 = vmatmul.msk.f32.vlgmr.msra.gmra.mxu3 %vm1948_vm8, %v3249_v61 }
 0x20e   :  { %2178 = vmatpush.msrb.mxu3 %v3004_v52 }
 0x20f   :  { %1542 = vrot.lane.b32.xlu1 %v2936_v8, %s2503_s4 }
 0x210   :  { %1540 = vrot.lane.b32.xlu0 %v2826_v36, %s2503_s4 }
 0x211   :  { %1591 = vrot.lane.b32.xlu2 %v2941_v12, %s2502_s30  ;;  %v1723_v4 = vpop.permute.xlu1 %1722 }
 0x212   :  { %v1741_v56 = vsel %vm1335_vm2, %v1723_v4, %v3299_v59  ;;  %v1721_v57 = vpop.permute.xlu0 %1720  ;;  %v1920_v19 = vld [vmem:[#allocation2 + $0x110] sm:$0xff] }
 0x213   :  { %1759 = vst [vmem:[#allocation2 + $0x160] sm:$0xf] %v1741_v56  ;;  %v1740_v21 = vsel %vm1335_vm2, %v1721_v57, %v1723_v4  ;;  %v3313_v23 = vpop.permute.xlu2 %1534  ;;  %2119 = vmatpush.msrb.mxu0 %v1920_v19  ;;  %v1902_v63 = vld [vmem:[#allocation2 + $0x1b0] sm:$0xff] }
 0x214   :  { %1758 = vst [vmem:[#allocation2 + $0x470] sm:$0xf] %v1740_v21 }
 0x215   :  { %2120 = vmatpush.msrb.mxu0 %v1902_v63  ;;  %v1795_v63 = vld [vmem:[#allocation2 + $0x520] sm:$0xff] }
 0x217   :  { %1736 = vrot.lane.b32.xlu1 %v2984_v39, %s2504_s5  ;;  %2121 = vmatpush.msrb.mxu0 %v1884_v20  ;;  %v1777_v20 = vld [vmem:[#allocation2 + $0x510] sm:$0xff] }
 0x218   :  { %1593 = vrot.lane.b32.xlu0 %v2975_v33, %s2502_s30 }
 0x219   :  { %1738 = vrot.lane.b32.xlu2 %v3098_v60, %s2504_s5  ;;  %v1627_v31 = vpop.permute.xlu1 %1626  ;;  %2122 = vmatpush.msrb.mxu0 %v1866_v18 }
 0x21a   :  { %v1646_v37 = vsel %vm1239_vm7, %v1627_v31, %v3288_v10  ;;  %v1676_v38 = vpop.permute.xlu0 %1675  ;;  %v1922_v28 = vld [vmem:[#allocation2 + $0x160] sm:$0xff]  ;;  %v3418_v31 = vld [vmem:[#allocation2 + $0x308] sm:$0xff] }
 0x21b   :  { %1664 = vst [vmem:[#allocation2] sm:$0xf] %v1646_v37  ;;  %v1693_v41 = vsel %vm1287_vm5, %v3271_v0, %v1676_v38  ;;  %v3325_v24 = vpop.permute.xlu2 %1485  ;;  %2123 = vmatpush.msrb.mxu0 %v1848_v40  ;;  %v1921_v29 = vld [vmem:[#allocation2 + $0x470] sm:$0xff]  ;;  %2159 = vmatpush.msrb.mxu2 %v1922_v28 }
 0x21c   :  { %1711 = vst [vmem:[#allocation2 + $0x390] sm:$0xf] %v1693_v41  ;;  %2139 = vmatpush.msrb.mxu1 %v1921_v29 }
 0x21d   :  { %2124 = vmatpush.msrb.mxu0 %v1830_v42 }
 0x21f   :  { %1495 = vrot.lane.b32.xlu1 %v2936_v8, %s2498_s0  ;;  %2125 = vmatpush.msrb.mxu0 %v1812_v44 }
 0x220   :  { %1493 = vrot.lane.b32.xlu0 %v2826_v36, %s2498_s0 }
 0x221   :  { %1544 = vrot.lane.b32.xlu2 %v2941_v12, %s2503_s4  ;;  %v1582_v46 = vpop.permute.xlu1 %1581  ;;  %2126 = vmatpush.msrb.mxu0 %v1794_v45 }
 0x222   :  { %v1580_v48 = vpop.permute.xlu0 %1579  ;;  %v1885_v13 = vld [vmem:[#allocation2] sm:$0xff] }
 0x223   :  { %v1599_v43 = vsel %vm1191_vm1, %v1580_v48, %v1582_v46  ;;  %v3334_v49 = vpop.permute.xlu2 %1632  ;;  %2127 = vmatpush.msrb.mxu0 %v1776_v50  ;;  %v1903_v51 = vld [vmem:[#allocation2 + $0x390] sm:$0xff] }
 0x224   :  { %1617 = vst [vmem:[#allocation2 + $0x570] sm:$0xf] %v1599_v43  ;;  %2140 = vmatpush.msrb.mxu1 %v1903_v51  ;;  %2359 = vmatmul.msk.f32.vlgmr.msrb.gmra.mxu0 %vm1948_vm8, %v3249_v61 }
 0x225   :  { %2198 = vmatpush.msra.mxu0 %v3004_v52 }
 0x226   :  { %2141 = vmatpush.msrb.mxu1 %v1885_v13 }
 0x227   :  { %1689 = vrot.lane.b32.xlu1 %v2984_v39, %s2505_s6 }
 0x228   :  { %1546 = vrot.lane.b32.xlu0 %v2975_v33, %s2503_s4 }
 0x229   :  { %1691 = vrot.lane.b32.xlu2 %v3098_v60, %s2505_s6  ;;  %v1533_v53 = vpop.permute.xlu1 %1532 }
 0x22a   :  { %v1552_v55 = vsel %vm1143_vm3, %v1533_v53, %v3313_v23  ;;  %v1727_v32 = vpop.permute.xlu0 %1726 }
 0x22b   :  { %1570 = vst [vmem:[#allocation2 + $0x3d8] sm:$0xf] %v1552_v55  ;;  %v1742_v52 = vsel %vm1335_vm2, %v3299_v59, %v1727_v32  ;;  %v3349_v7 = vpop.permute.xlu2 %1583  ;;  %v1867_v34 = vld [vmem:[#allocation2 + $0x570] sm:$0xff] }
 0x22c   :  { %1760 = vst [vmem:[#allocation2 + $0x2c8] sm:$0xf] %v1742_v52  ;;  %v1600_v35 = vsel %vm1191_vm1, %v1582_v46, %v3349_v7  ;;  %2142 = vmatpush.msrb.mxu1 %v1867_v34 }
 0x22d   :  { %1618 = vst [vmem:[#allocation2 + $0x250] sm:$0xf] %v1600_v35 }
 0x22f   :  { %1448 = vrot.lane.b32.xlu1 %v2936_v8, %s2499_s2 }
 0x230   :  { %1446 = vrot.lane.b32.xlu0 %v2826_v36, %s2499_s2 }
 0x231   :  { %1497 = vrot.lane.b32.xlu2 %v2941_v12, %s2498_s0  ;;  %v1680_v47 = vpop.permute.xlu1 %1679 }
 0x232   :  { %v1678_v30 = vpop.permute.xlu0 %1677  ;;  %v1849_v62 = vld [vmem:[#allocation2 + $0x3d8] sm:$0xff] }
 0x233   :  { %v1694_v0 = vsel %vm1287_vm5, %v1676_v38, %v1678_v30  ;;  %v1695_v3 = vsel %vm1287_vm5, %v1678_v30, %v1680_v47  ;;  %v3361_v5 = vpop.permute.xlu2 %1730  ;;  %2143 = vmatpush.msrb.mxu1 %v1849_v62  ;;  %v1923_v1 = vld [vmem:[#allocation2 + $0x2c8] sm:$0xff] }
 0x234   :  { %1712 = vst [vmem:[#allocation2 + $0x428] sm:$0xf] %v1694_v0  ;;  %2179 = vmatpush.msrb.mxu3 %v1923_v1 }
 0x235   :  { %1713 = vst [vmem:[#allocation2 + $0x418] sm:$0xf] %v1695_v3 }
 0x237   :  { %1642 = vrot.lane.b32.xlu1 %v2984_v39, %s2501_s29 }
 0x238   :  { %1499 = vrot.lane.b32.xlu0 %v2975_v33, %s2498_s0 }
 0x239   :  { %1644 = vrot.lane.b32.xlu2 %v3098_v60, %s2501_s29  ;;  %v1631_v36 = vpop.permute.xlu1 %1630 }
 0x23a   :  { %v1647_v8 = vsel %vm1239_vm7, %v3288_v10, %v1631_v36  ;;  %v1648_v6 = vsel %vm1239_vm7, %v1631_v36, %v3334_v49  ;;  %v3373_v54 = vpop.permute.xlu0 %1487 }
 0x23b   :  { %1665 = vst [vmem:[#allocation2 + $0x228] sm:$0xf] %v1647_v8  ;;  %v1505_v2 = vsel %vm1095_vm6, %v3325_v24, %v3373_v54  ;;  %v3378_v58 = vpop.permute.xlu2 %1681  ;;  %v1904_v9 = vld [vmem:[#allocation2 + $0x428] sm:$0xff] }
 0x23c   :  { %1666 = vst [vmem:[#allocation2 + $0x80] sm:$0xf] %v1648_v6  ;;  %v1696_v27 = vsel %vm1287_vm5, %v1680_v47, %v3378_v58  ;;  %2160 = vmatpush.msrb.mxu2 %v1904_v9  ;;  %v1905_v25 = vld [vmem:[#allocation2 + $0x418] sm:$0xff] }
 0x23d   :  { %1523 = vst [vmem:[#allocation2 + $0x258] sm:$0xf] %v1505_v2  ;;  %2180 = vmatpush.msrb.mxu3 %v1905_v25 }
 0x23e   :  { %1714 = vst [vmem:[#allocation2 + $0x4d0] sm:$0xf] %v1696_v27 }
 0x23f   :  { %1452 = vrot.lane.b32.xlu1 %v2975_v33, %s2499_s2  ;;  %v1868_v33 = vld [vmem:[#allocation2 + $0x250] sm:$0xff] }
 0x240   :  { %1450 = vrot.lane.b32.xlu0 %v2941_v12, %s2499_s2 }
 0x241   :  { %1595 = vrot.lane.b32.xlu2 %v2984_v39, %s2502_s30  ;;  %v3388_v10 = vpop.permute.xlu1 %1440 }
 0x242   :  { %v1439_v11 = vpop.permute.xlu0 %1438  ;;  %v1886_v14 = vld [vmem:[#allocation2 + $0x228] sm:$0xff] }
 0x243   :  { %v1458_v16 = vsel %vm1047_vm0, %v1439_v11, %v3388_v10  ;;  %v3392_v22 = vpop.permute.xlu2 %1734  ;;  %2161 = vmatpush.msrb.mxu2 %v1886_v14  ;;  %v1887_v26 = vld [vmem:[#allocation2 + $0x80] sm:$0xff] }
 0x244   :  { %1476 = vst [vmem:[#allocation2 + $0x50] sm:$0xf] %v1458_v16  ;;  %v1831_v17 = vld [vmem:[#allocation2 + $0x258] sm:$0xff]  ;;  %2181 = vmatpush.msrb.mxu3 %v1887_v26 }
 0x245   :  { %2144 = vmatpush.msrb.mxu1 %v1831_v17  ;;  %2162 = vmatpush.msrb.mxu2 %v1868_v33  ;;  %v1906_v29 = vld [vmem:[#allocation2 + $0x4d0] sm:$0xff]  ;;  %v1796_v17 = vld [vmem:[#allocation2 + $0x3a8] sm:$0xff]  ;;  %v1797_v33 = vld [vmem:[#allocation2 + $0x480] sm:$0xff] }
 0x247   :  { %1548 = vrot.lane.b32.xlu1 %v2984_v39, %s2503_s4 }
 0x248   :  { %1597 = vrot.lane.b32.xlu0 %v3098_v60, %s2502_s30 }
 0x249   :  { %1550 = vrot.lane.b32.xlu2 %v3098_v60, %s2503_s4  ;;  %v1729_v12 = vpop.permute.xlu1 %1728 }
 0x24a   :  { %v1743_v59 = vsel %vm1335_vm2, %v1727_v32, %v1729_v12  ;;  %v1744_v15 = vsel %vm1335_vm2, %v1729_v12, %v3361_v5  ;;  %v1586_v4 = vpop.permute.xlu0 %1585  ;;  %v1778_v12 = vld [vmem:[#allocation2 + $0x490] sm:$0xff] }
 0x24b   :  { %1761 = vst [vmem:[#allocation2 + $0x1f8] sm:$0xf] %v1743_v59  ;;  %v1601_v56 = vsel %vm1191_vm1, %v3349_v7, %v1586_v4  ;;  %v3405_v57 = vpop.permute.xlu2 %1634  ;;  %v1813_v19 = vld [vmem:[#allocation2 + $0x50] sm:$0xff]  ;;  %v1779_v59 = vld [vmem:[#allocation2 + $0x318] sm:$0xff] }
 0x24c   :  { %1762 = vst [vmem:[#allocation2 + $0x40] sm:$0xf] %v1744_v15  ;;  %v1649_v21 = vsel %vm1239_vm7, %v3334_v49, %v3405_v57  ;;  %2145 = vmatpush.msrb.mxu1 %v1813_v19 }
 0x24d   :  { %1619 = vst [vmem:[#allocation2 + $0x120] sm:$0xf] %v1601_v56 }
 0x24e   :  { %1667 = vst [vmem:[#allocation2 + $0x28] sm:$0xf] %v1649_v21  ;;  %2146 = vmatpush.msrb.mxu1 %v1795_v63 }
 0x24f   :  { %1503 = vrot.lane.b32.xlu1 %v3098_v60, %s2498_s0 }
 0x250   :  { %1501 = vrot.lane.b32.xlu0 %v2984_v39, %s2498_s0  ;;  %2147 = vmatpush.msrb.mxu1 %v1777_v20 }
 0x251   :  { %1454 = vrot.lane.b32.xlu2 %v2984_v39, %s2499_s2  ;;  %v3416_v18 = vpop.permute.xlu1 %1538  ;;  %2360 = vmatmul.msk.f32.vlgmr.msrb.gmra.mxu1 %vm1948_vm8, %v3249_v61 }
 0x252   :  { %2218 = vmatpush.msra.mxu1 %v3418_v31  ;;  %v1537_v37 = vpop.permute.xlu0 %1536  ;;  %v1924_v38 = vld [vmem:[#allocation2 + $0x1f8] sm:$0xff] }
 0x253   :  { %v1553_v40 = vsel %vm1143_vm3, %v3313_v23, %v1537_v37  ;;  %v1554_v28 = vsel %vm1143_vm3, %v1537_v37, %v3416_v18  ;;  %v3427_v41 = vpop.permute.xlu2 %1687  ;;  %2199 = vmatpush.msra.mxu0 %v1924_v38  ;;  %v1925_v39 = vld [vmem:[#allocation2 + $0x40] sm:$0xff] }
 0x254   :  { %1571 = vst [vmem:[#allocation2 + $0x1d8] sm:$0xf] %v1553_v40  ;;  %v1869_v24 = vld [vmem:[#allocation2 + $0x120] sm:$0xff]  ;;  %2219 = vmatpush.msra.mxu1 %v1925_v39 }
 0x255   :  { %1572 = vst [vmem:[#allocation2 + $0x4f8] sm:$0xf] %v1554_v28  ;;  %2182 = vmatpush.msrb.mxu3 %v1869_v24  ;;  %2200 = vmatpush.msra.mxu0 %v1906_v29  ;;  %v1888_v42 = vld [vmem:[#allocation2 + $0x28] sm:$0xff] }
 0x257   :  { %2201 = vmatpush.msra.mxu0 %v1888_v42 }
 0x258   :  { %1456 = vrot.lane.b32.xlu0 %v3098_v60, %s2499_s2 }
 0x259   :  { %v1733_v23 = vpop.permute.xlu1 %1732 }
 0x25a   :  { %v1745_v44 = vsel %vm1335_vm2, %v3361_v5, %v1733_v23  ;;  %v1746_v45 = vsel %vm1335_vm2, %v1733_v23, %v3392_v22  ;;  %v1684_v46 = vpop.permute.xlu0 %1683 }
 0x25b   :  { %1763 = vst [vmem:[#allocation2 + $0x4e8] sm:$0xf] %v1745_v44  ;;  %v1697_v48 = vsel %vm1287_vm5, %v3378_v58, %v1684_v46  ;;  %v1588_v50 = vpop.permute.xlu2 %1587  ;;  %v1850_v43 = vld [vmem:[#allocation2 + $0x1d8] sm:$0xff] }
 0x25c   :  { %1764 = vst [vmem:[#allocation2 + $0x458] sm:$0xf] %v1746_v45  ;;  %v1602_v49 = vsel %vm1191_vm1, %v1586_v4, %v1588_v50  ;;  %2163 = vmatpush.msrb.mxu2 %v1850_v43  ;;  %v1851_v51 = vld [vmem:[#allocation2 + $0x4f8] sm:$0xff] }
 0x25d   :  { %1715 = vst [vmem:[#allocation2 + $0x430] sm:$0xf] %v1697_v48  ;;  %2183 = vmatpush.msrb.mxu3 %v1851_v51 }
 0x25e   :  { %1620 = vst [vmem:[#allocation2 + $0x420] sm:$0xf] %v1602_v49 }
 0x261   :  { %v3438_v60 = vpop.permute.xlu1 %1491 }
 0x262   :  { %v1490_v13 = vpop.permute.xlu0 %1489 }
 0x263   :  { %v1506_v53 = vsel %vm1095_vm6, %v3373_v54, %v1490_v13  ;;  %v1507_v55 = vsel %vm1095_vm6, %v1490_v13, %v3438_v60  ;;  %v3444_v32 = vpop.permute.xlu2 %1640  ;;  %v1927_v20 = vld [vmem:[#allocation2 + $0x458] sm:$0xff] }
 0x264   :  { %1524 = vst [vmem:[#allocation2 + $0x1e8] sm:$0xf] %v1506_v53  ;;  %v1907_v52 = vld [vmem:[#allocation2 + $0x430] sm:$0xff] }
 0x265   :  { %1525 = vst [vmem:[#allocation2 + $0x320] sm:$0xf] %v1507_v55  ;;  %v1870_v7 = vld [vmem:[#allocation2 + $0x420] sm:$0xff]  ;;  %2220 = vmatpush.msra.mxu1 %v1907_v52 }
 0x266   :  { %2202 = vmatpush.msra.mxu0 %v1870_v7 }
 0x269   :  { %v1686_v34 = vpop.permute.xlu1 %1685 }
 0x26a   :  { %v1698_v35 = vsel %vm1287_vm5, %v1684_v46, %v1686_v34  ;;  %v1699_v47 = vsel %vm1287_vm5, %v1686_v34, %v3427_v41  ;;  %v1637_v30 = vpop.permute.xlu0 %1636 }
 0x26b   :  { %1716 = vst [vmem:[#allocation2 + $0x530] sm:$0xf] %v1698_v35  ;;  %v1650_v62 = vsel %vm1239_vm7, %v3405_v57, %v1637_v30  ;;  %v3451_v0 = vpop.permute.xlu2 %1591  ;;  %v1832_v3 = vld [vmem:[#allocation2 + $0x1e8] sm:$0xff] }
 0x26c   :  { %1717 = vst [vmem:[#allocation2 + $0x340] sm:$0xf] %v1699_v47  ;;  %2164 = vmatpush.msrb.mxu2 %v1832_v3  ;;  %v1833_v5 = vld [vmem:[#allocation2 + $0x320] sm:$0xff]  ;;  %v1926_v57 = vld [vmem:[#allocation2 + $0x4e8] sm:$0xff] }
 0x26d   :  { %1668 = vst [vmem:[#allocation2 + $0x2e0] sm:$0xf] %v1650_v62  ;;  %2184 = vmatpush.msrb.mxu3 %v1833_v5 }
 0x271   :  { %v3453_v1 = vpop.permute.xlu1 %1444 }
 0x272   :  { %v1443_v36 = vpop.permute.xlu0 %1442  ;;  %v1908_v38 = vld [vmem:[#allocation2 + $0x530] sm:$0xff] }
 0x273   :  { %v1459_v8 = vsel %vm1047_vm0, %v3388_v10, %v1443_v36  ;;  %v1460_v6 = vsel %vm1047_vm0, %v1443_v36, %v3453_v1  ;;  %v1739_v54 = vpop.permute.xlu2 %1738  ;;  %v1909_v40 = vld [vmem:[#allocation2 + $0x340] sm:$0xff] }
 0x274   :  { %1477 = vst [vmem:[#allocation2 + $0x308] sm:$0xf] %v1459_v8  ;;  %v1889_v2 = vld [vmem:[#allocation2 + $0x2e0] sm:$0xff] }
 0x275   :  { %1478 = vst [vmem:[#allocation2 + $0x4b0] sm:$0xf] %v1460_v6  ;;  %2221 = vmatpush.msra.mxu1 %v1889_v2 }
 0x279   :  { %v1639_v58 = vpop.permute.xlu1 %1638 }
 0x27a   :  { %v1651_v9 = vsel %vm1239_vm7, %v1637_v30, %v1639_v58  ;;  %v1652_v27 = vsel %vm1239_vm7, %v1639_v58, %v3444_v32  ;;  %v1590_v25 = vpop.permute.xlu0 %1589 }
 0x27b   :  { %1669 = vst [vmem:[#allocation2 + $0x558] sm:$0xf] %v1651_v9  ;;  %v1603_v11 = vsel %vm1191_vm1, %v1588_v50, %v1590_v25  ;;  %v1604_v10 = vsel %vm1191_vm1, %v1590_v25, %v3451_v0  ;;  %v3465_v14 = vpop.permute.xlu2 %1544  ;;  %v1814_v16 = vld [vmem:[#allocation2 + $0x308] sm:$0xff] }
 0x27c   :  { %1670 = vst [vmem:[#allocation2 + $0x3a0] sm:$0xf] %v1652_v27  ;;  %2165 = vmatpush.msrb.mxu2 %v1814_v16  ;;  %v1815_v26 = vld [vmem:[#allocation2 + $0x4b0] sm:$0xff]  ;;  %v1780_v16 = vld [vmem:[#allocation2 + $0x548] sm:$0xff] }
 0x27d   :  { %1621 = vst [vmem:[#allocation2 + $0x348] sm:$0xf] %v1603_v11  ;;  %2185 = vmatpush.msrb.mxu3 %v1815_v26 }
 0x27e   :  { %1622 = vst [vmem:[#allocation2 + $0x3f0] sm:$0xf] %v1604_v10  ;;  %2166 = vmatpush.msrb.mxu2 %v1796_v17  ;;  %v1798_v10 = vld [vmem:[#allocation2 + $0x4c8] sm:$0xff] }
 0x27f   :  { %2186 = vmatpush.msrb.mxu3 %v1797_v33 }
 0x280   :  { %2167 = vmatpush.msrb.mxu2 %v1778_v12 }
 0x281   :  { %2187 = vmatpush.msrb.mxu3 %v1779_v59  ;;  %v1543_v15 = vpop.permute.xlu1 %1542  ;;  %2361 = vmatmul.msk.f32.vlgmr.msrb.gmra.mxu2 %vm1948_vm8, %v3249_v61 }
 0x282   :  { %2238 = vmatpush.msra.mxu2 %v3418_v31  ;;  %v1557_v4 = vsel %vm1143_vm3, %v1543_v15, %v3465_v14  ;;  %v1541_v56 = vpop.permute.xlu0 %1540  ;;  %2362 = vmatmul.msk.f32.vlgmr.msrb.gmra.mxu3 %vm1948_vm8, %v3249_v61  ;;  %v1890_v28 = vld [vmem:[#allocation2 + $0x558] sm:$0xff] }
 0x283   :  { %2258 = vmatpush.msra.mxu3 %v3418_v31  ;;  %1575 = vst [vmem:[#allocation2 + $0x360] sm:$0xf] %v1557_v4  ;;  %v1555_v19 = vsel %vm1143_vm3, %v3416_v18, %v1541_v56  ;;  %v1556_v21 = vsel %vm1143_vm3, %v1541_v56, %v1543_v15  ;;  %v1692_v63 = vpop.permute.xlu2 %1691  ;;  %v1891_v18 = vld [vmem:[#allocation2 + $0x3a0] sm:$0xff] }
 0x284   :  { %2239 = vmatpush.msra.mxu2 %v1926_v57  ;;  %1573 = vst [vmem:[#allocation2 + $0x240] sm:$0xf] %v1555_v19  ;;  %v1871_v37 = vld [vmem:[#allocation2 + $0x348] sm:$0xff] }
 0x285   :  { %2259 = vmatpush.msra.mxu3 %v1927_v20  ;;  %1574 = vst [vmem:[#allocation2 + $0x30] sm:$0xf] %v1556_v21  ;;  %2222 = vmatpush.msra.mxu1 %v1871_v37  ;;  %v1872_v39 = vld [vmem:[#allocation2 + $0x3f0] sm:$0xff] }
 0x286   :  { %2240 = vmatpush.msra.mxu2 %v1908_v38  ;;  %v1969_v38 = vpop.f32.mrf.mxu0 }
 0x287   :  { %2260 = vmatpush.msra.mxu3 %v1909_v40  ;;  %2312 = vst [vmem:[#allocation9] sm:$0xff] %v1969_v38 }
 0x288   :  { %2241 = vmatpush.msra.mxu2 %v1890_v28 }
 0x289   :  { %2261 = vmatpush.msra.mxu3 %v1891_v18  ;;  %v1737_v24 = vpop.permute.xlu1 %1736 }
 0x28a   :  { %2242 = vmatpush.msra.mxu2 %v1872_v39  ;;  %v1747_v29 = vsel %vm1335_vm2, %v3392_v22, %v1737_v24  ;;  %v1748_v42 = vsel %vm1335_vm2, %v1737_v24, %v1739_v54  ;;  %v1594_v23 = vpop.permute.xlu0 %1593  ;;  %v1854_v44 = vld [vmem:[#allocation2 + $0x360] sm:$0xff]  ;;  %v1989_v39 = vpop.f32.mrf.mxu1 }
 0x28b   :  { %1765 = vst [vmem:[#allocation2 + $0x270] sm:$0xf] %v1747_v29  ;;  %v1605_v45 = vsel %vm1191_vm1, %v3451_v0, %v1594_v23  ;;  %v1498_v46 = vpop.permute.xlu2 %1497  ;;  %v1852_v48 = vld [vmem:[#allocation2 + $0x240] sm:$0xff] }
 0x28c   :  { %2243 = vmatpush.msra.mxu2 %v1854_v44  ;;  %1766 = vst [vmem:[#allocation2 + $0x20] sm:$0xf] %v1748_v42  ;;  %2203 = vmatpush.msra.mxu0 %v1852_v48  ;;  %v1853_v50 = vld [vmem:[#allocation2 + $0x30] sm:$0xff]  ;;  %v2009_v42 = vpop.f32.mrf.mxu2  ;;  %v2029_v44 = vpop.f32.mrf.mxu3  ;;  %v1782_v48 = vld [vmem:[#allocation2 + $0x58] sm:$0xff] }
 0x28d   :  { %1623 = vst [vmem:[#allocation2 + $0x2d0] sm:$0xf] %v1605_v45  ;;  %2223 = vmatpush.msra.mxu1 %v1853_v50  ;;  %v1800_v45 = vld [vmem:[#allocation2 + $0xe0] sm:$0xff]  ;;  %v1783_v50 = vld [vmem:[#allocation2 + $0x2b8] sm:$0xff] }
 0x28e   :  { %2313 = vst [vmem:[#allocation9 + $0x8] sm:$0xff] %v1989_v39 }
 0x28f   :  { %2314 = vst [vmem:[#allocation9 + $0x10] sm:$0xff] %v2009_v42 }
 0x290   :  { %2315 = vst [vmem:[#allocation9 + $0x18] sm:$0xff] %v2029_v44 }
 0x291   :  { %v1496_v43 = vpop.permute.xlu1 %1495 }
 0x292   :  { %v1510_v49 = vsel %vm1095_vm6, %v1496_v43, %v1498_v46  ;;  %v1494_v22 = vpop.permute.xlu0 %1493  ;;  %v1928_v59 = vld [vmem:[#allocation2 + $0x270] sm:$0xff] }
 0x293   :  { %1528 = vst [vmem:[#allocation2 + $0x118] sm:$0xf] %v1510_v49  ;;  %v1508_v51 = vsel %vm1095_vm6, %v3438_v60, %v1494_v22  ;;  %v1509_v13 = vsel %vm1095_vm6, %v1494_v22, %v1496_v43  ;;  %v1645_v53 = vpop.permute.xlu2 %1644  ;;  %v1929_v56 = vld [vmem:[#allocation2 + $0x20] sm:$0xff]  ;;  %v2049_v49 = vpop.f32.mrf.mxu0 }
 0x294   :  { %1526 = vst [vmem:[#allocation2 + $0xa8] sm:$0xf] %v1508_v51  ;;  %v1873_v55 = vld [vmem:[#allocation2 + $0x2d0] sm:$0xff] }
 0x295   :  { %1527 = vst [vmem:[#allocation2 + $0xd0] sm:$0xf] %v1509_v13  ;;  %2262 = vmatpush.msra.mxu3 %v1873_v55  ;;  %v2069_v13 = vpop.f32.mrf.mxu1 }
 0x296   :  { %2316 = vst [vmem:[#allocation9 + $0x20] sm:$0xff] %v2049_v49 }
 0x297   :  { %2317 = vst [vmem:[#allocation9 + $0x28] sm:$0xff] %v2069_v13 }
 0x299   :  { %v1690_v52 = vpop.permute.xlu1 %1689 }
 0x29a   :  { %v1700_v7 = vsel %vm1287_vm5, %v3427_v41, %v1690_v52  ;;  %v1701_v34 = vsel %vm1287_vm5, %v1690_v52, %v1692_v63  ;;  %v3490_v35 = vpop.permute.xlu0 %1546  ;;  %v1836_v47 = vld [vmem:[#allocation2 + $0x118] sm:$0xff]  ;;  %v2089_v52 = vpop.f32.mrf.mxu2 }
 0x29b   :  { %1718 = vst [vmem:[#allocation2 + $0xd8] sm:$0xf] %v1700_v7  ;;  %v1558_v60 = vsel %vm1143_vm3, %v3465_v14, %v3490_v35  ;;  %v3495_v30 = vpop.permute.xlu2 %1595  ;;  %v1834_v62 = vld [vmem:[#allocation2 + $0xa8] sm:$0xff]  ;;  %2244 = vmatpush.msra.mxu2 %v1836_v47  ;;  %v1799_v14 = vld [vmem:[#allocation2 + $0x3b8] sm:$0xff] }
 0x29c   :  { %1719 = vst [vmem:[#allocation2 + $0x268] sm:$0xf] %v1701_v34  ;;  %v1606_v0 = vsel %vm1191_vm1, %v1594_v23, %v3495_v30  ;;  %2204 = vmatpush.msra.mxu0 %v1834_v62  ;;  %v1835_v41 = vld [vmem:[#allocation2 + $0xd0] sm:$0xff]  ;;  %v2109_v34 = vpop.f32.mrf.mxu3 }
 0x29d   :  { %1576 = vst [vmem:[#allocation2 + $0x380] sm:$0xf] %v1558_v60  ;;  %2224 = vmatpush.msra.mxu1 %v1835_v41 }
 0x29e   :  { %1624 = vst [vmem:[#allocation2 + $0x1d0] sm:$0xf] %v1606_v0 }
 0x29f   :  { %2318 = vst [vmem:[#allocation9 + $0x30] sm:$0xff] %v2089_v52 }
 0x2a0   :  { %2319 = vst [vmem:[#allocation9 + $0x38] sm:$0xff] %v2109_v34 }
 0x2a1   :  { %v1449_v3 = vpop.permute.xlu1 %1448  ;;  %v2129_v47 = vpop.f32.mrf.mxu0 }
 0x2a2   :  { %v1447_v5 = vpop.permute.xlu0 %1446  ;;  %v1910_v57 = vld [vmem:[#allocation2 + $0xd8] sm:$0xff]  ;;  %2320 = vst [vmem:[#allocation9 + $0x40] sm:$0xff] %v2129_v47 }
 0x2a3   :  { %v1461_v36 = vsel %vm1047_vm0, %v3453_v1, %v1447_v5  ;;  %v1462_v8 = vsel %vm1047_vm0, %v1447_v5, %v1449_v3  ;;  %v1551_v54 = vpop.permute.xlu2 %1550  ;;  %v1911_v19 = vld [vmem:[#allocation2 + $0x268] sm:$0xff] }
 0x2a4   :  { %1479 = vst [vmem:[#allocation2 + $0xf0] sm:$0xf] %v1461_v36  ;;  %v1855_v6 = vld [vmem:[#allocation2 + $0x380] sm:$0xff] }
 0x2a5   :  { %1480 = vst [vmem:[#allocation2 + $0x578] sm:$0xf] %v1462_v8  ;;  %2263 = vmatpush.msra.mxu3 %v1855_v6  ;;  %v1874_v20 = vld [vmem:[#allocation2 + $0x1d0] sm:$0xff]  ;;  %v1784_v36 = vld [vmem:[#allocation2 + $0x580] sm:$0xff]  ;;  %v1803_v6 = vld [vmem:[#allocation2 + $0x88] sm:$0xff] }
 0x2a9   :  { %v1643_v2 = vpop.permute.xlu1 %1642 }
 0x2aa   :  { %v1653_v58 = vsel %vm1239_vm7, %v3444_v32, %v1643_v2  ;;  %v1654_v9 = vsel %vm1239_vm7, %v1643_v2, %v1645_v53  ;;  %v3505_v27 = vpop.permute.xlu0 %1499  ;;  %v1781_v32 = vld [vmem:[#allocation2 + $0x500] sm:$0xff] }
 0x2ab   :  { %1671 = vst [vmem:[#allocation2 + $0x218] sm:$0xf] %v1653_v58  ;;  %v1511_v25 = vsel %vm1095_vm6, %v1498_v46, %v3505_v27  ;;  %v1816_v1 = vld [vmem:[#allocation2 + $0xf0] sm:$0xff]  ;;  %v3509_v26 = vpop.permute.xlu2 %1454  ;;  %v1801_v46 = vld [vmem:[#allocation2 + $0x298] sm:$0xff] }
 0x2ac   :  { %1672 = vst [vmem:[#allocation2 + $0x140] sm:$0xf] %v1654_v9  ;;  %2205 = vmatpush.msra.mxu0 %v1816_v1  ;;  %v1817_v11 = vld [vmem:[#allocation2 + $0x578] sm:$0xff] }
 0x2ad   :  { %1529 = vst [vmem:[#allocation2 + $0x410] sm:$0xf] %v1511_v25  ;;  %2225 = vmatpush.msra.mxu1 %v1817_v11 }
 0x2ae   :  { %2206 = vmatpush.msra.mxu0 %v1798_v10 }
 0x2af   :  { %2226 = vmatpush.msra.mxu1 %v1799_v14 }
 0x2b0   :  { %2207 = vmatpush.msra.mxu0 %v1780_v16 }
 0x2b1   :  { %2227 = vmatpush.msra.mxu1 %v1781_v32  ;;  %v1453_v17 = vpop.permute.xlu1 %1452  ;;  %2363 = vmatmul.msk.f32.vlgmr.msra.gmra.mxu0 %vm1948_vm8, %v3249_v61 }
 0x2b2   :  { %2278 = vmatpush.msrb.mxu0 %v3418_v31  ;;  %v1465_v33 = vsel %vm1047_vm0, %v1453_v17, %v3509_v26  ;;  %v1451_v12 = vpop.permute.xlu0 %1450  ;;  %2364 = vmatmul.msk.f32.vlgmr.msra.gmra.mxu1 %vm1948_vm8, %v3249_v61  ;;  %v1892_v21 = vld [vmem:[#allocation2 + $0x218] sm:$0xff] }
 0x2b3   :  { %2298 = vmatpush.msrb.mxu1 %v3418_v31  ;;  %1483 = vst [vmem:[#allocation2 + $0x550] sm:$0xf] %v1465_v33  ;;  %v1463_v15 = vsel %vm1047_vm0, %v1449_v3, %v1451_v12  ;;  %v1464_v4 = vsel %vm1047_vm0, %v1451_v12, %v1453_v17  ;;  %v1893_v63 = vld [vmem:[#allocation2 + $0x140] sm:$0xff]  ;;  %v1802_v3 = vld [vmem:[#allocation2 + $0x568] sm:$0xff] }
 0x2b4   :  { %2279 = vmatpush.msrb.mxu0 %v1928_v59  ;;  %1481 = vst [vmem:[#allocation2 + $0x130] sm:$0xf] %v1463_v15  ;;  %v1837_v31 = vld [vmem:[#allocation2 + $0x410] sm:$0xff] }
 0x2b5   :  { %2299 = vmatpush.msrb.mxu1 %v1929_v56  ;;  %1482 = vst [vmem:[#allocation2 + $0xc0] sm:$0xf] %v1464_v4  ;;  %2264 = vmatpush.msra.mxu3 %v1837_v31 }
 0x2b6   :  { %2280 = vmatpush.msrb.mxu0 %v1910_v57 }
 0x2b7   :  { %2300 = vmatpush.msrb.mxu1 %v1911_v19 }
 0x2b8   :  { %2281 = vmatpush.msrb.mxu0 %v1892_v21 }
 0x2b9   :  { %2301 = vmatpush.msrb.mxu1 %v1893_v63  ;;  %v1549_v37 = vpop.permute.xlu1 %1548 }
 0x2ba   :  { %2282 = vmatpush.msrb.mxu0 %v1874_v20  ;;  %v1559_v40 = vsel %vm1143_vm3, %v3490_v35, %v1549_v37  ;;  %v1560_v28 = vsel %vm1143_vm3, %v1549_v37, %v1551_v54  ;;  %v1598_v18 = vpop.permute.xlu0 %1597  ;;  %v1820_v41 = vld [vmem:[#allocation2 + $0x550] sm:$0xff] }
 0x2bb   :  { %1577 = vst [vmem:[#allocation2 + $0x150] sm:$0xf] %v1559_v40  ;;  %v1607_v24 = vsel %vm1191_vm1, %v3495_v30, %v1598_v18  ;;  %v1818_v29 = vld [vmem:[#allocation2 + $0x130] sm:$0xff] }
 0x2bc   :  { %1578 = vst [vmem:[#allocation2 + $0x1a8] sm:$0xf] %v1560_v28  ;;  %2245 = vmatpush.msra.mxu2 %v1818_v29  ;;  %v1819_v23 = vld [vmem:[#allocation2 + $0xc0] sm:$0xff]  ;;  %v1785_v54 = vld [vmem:[#allocation2 + $0x590] sm:$0xff] }
 0x2bd   :  { %1625 = vst [vmem:[#allocation2 + $0x468] sm:$0xf] %v1607_v24  ;;  %2265 = vmatpush.msra.mxu3 %v1819_v23 }
 0x2be   :  { %2246 = vmatpush.msra.mxu2 %v1800_v45 }
 0x2bf   :  { %2266 = vmatpush.msra.mxu3 %v1801_v46 }
 0x2c0   :  { %2247 = vmatpush.msra.mxu2 %v1782_v48 }
 0x2c1   :  { %2267 = vmatpush.msra.mxu3 %v1783_v50  ;;  %v1504_v43 = vpop.permute.xlu1 %1503  ;;  %2365 = vmatmul.msk.f32.vlgmr.msra.gmra.mxu2 %vm1948_vm8, %v3249_v61 }
 0x2c2   :  { %v1502_v22 = vpop.permute.xlu0 %1501  ;;  %v1856_v51 = vld [vmem:[#allocation2 + $0x150] sm:$0xff]  ;;  %2366 = vmatmul.msk.f32.vlgmr.msra.gmra.mxu3 %vm1948_vm8, %v3249_v61 }
 0x2c3   :  { %v1512_v53 = vsel %vm1095_vm6, %v3505_v27, %v1502_v22  ;;  %v1513_v55 = vsel %vm1095_vm6, %v1502_v22, %v1504_v43  ;;  %2283 = vmatpush.msrb.mxu0 %v1856_v51  ;;  %v1857_v35 = vld [vmem:[#allocation2 + $0x1a8] sm:$0xff] }
 0x2c4   :  { %1530 = vst [vmem:[#allocation2 + $0x238] sm:$0xf] %v1512_v53  ;;  %v1875_v7 = vld [vmem:[#allocation2 + $0x468] sm:$0xff] }
 0x2c5   :  { %1531 = vst [vmem:[#allocation2 + $0x1f0] sm:$0xf] %v1513_v55  ;;  %2302 = vmatpush.msrb.mxu1 %v1875_v7 }
 0x2c7   :  { %2303 = vmatpush.msrb.mxu1 %v1857_v35 }
 0x2ca   :  { %v1457_v60 = vpop.permute.xlu0 %1456 }
 0x2cb   :  { %v1466_v30 = vsel %vm1047_vm0, %v3509_v26, %v1457_v60  ;;  %v1838_v62 = vld [vmem:[#allocation2 + $0x238] sm:$0xff] }
 0x2cc   :  { %1484 = vst [vmem:[#allocation2 + $0x1a0] sm:$0xf] %v1466_v30  ;;  %2284 = vmatpush.msrb.mxu0 %v1838_v62  ;;  %v1839_v0 = vld [vmem:[#allocation2 + $0x1f0] sm:$0xff] }
 0x2cd   :  { %2304 = vmatpush.msrb.mxu1 %v1839_v0 }
 0x2ce   :  { %2285 = vmatpush.msrb.mxu0 %v1820_v41  ;;  %v2149_v5 = vpop.f32.mrf.mxu1 }
 0x2cf   :  { %2322 = vst [vmem:[#allocation9 + $0x48] sm:$0xff] %v2149_v5 }
 0x2d0   :  { %2286 = vmatpush.msrb.mxu0 %v1802_v3 }
 0x2d2   :  { %2287 = vmatpush.msrb.mxu0 %v1784_v36 }
 0x2d3   :  { %v1821_v8 = vld [vmem:[#allocation2 + $0x1a0] sm:$0xff]  ;;  %2367 = vmatmul.msk.f32.vlgmr.msrb.gmra.mxu0 %vm1948_vm8, %v3249_v61 }
 0x2d4   :  { %2305 = vmatpush.msrb.mxu1 %v1821_v8 }
 0x2d6   :  { %2306 = vmatpush.msrb.mxu1 %v1803_v6 }
 0x2d8   :  { %2307 = vmatpush.msrb.mxu1 %v1785_v54 }
 0x2d9   :  { %2368 = vmatmul.msk.f32.vlgmr.msrb.gmra.mxu1 %vm1948_vm8, %v3249_v61 }
 0x304   :  { %v2169_v2 = vpop.f32.mrf.mxu2 }
 0x305   :  { %2323 = vst [vmem:[#allocation9 + $0x50] sm:$0xff] %v2169_v2  ;;  %v2189_v58 = vpop.f32.mrf.mxu3 }
 0x306   :  { %2324 = vst [vmem:[#allocation9 + $0x58] sm:$0xff] %v2189_v58 }
 0x32e   :  { %v2209_v9 = vpop.f32.mrf.mxu0 }
 0x32f   :  { %2325 = vst [vmem:[#allocation9 + $0x60] sm:$0xff] %v2209_v9  ;;  %v2229_v27 = vpop.f32.mrf.mxu1 }
 0x330   :  { %2326 = vst [vmem:[#allocation9 + $0x68] sm:$0xff] %v2229_v27 }
 0x344   :  { %v2249_v25 = vpop.f32.mrf.mxu2 }
 0x345   :  { %2327 = vst [vmem:[#allocation9 + $0x70] sm:$0xff] %v2249_v25  ;;  %v2269_v1 = vpop.f32.mrf.mxu3 }
 0x346   :  { %2328 = vst [vmem:[#allocation9 + $0x78] sm:$0xff] %v2269_v1 }
 0x350   :  { %v2289_v11 = vpop.f32.mrf.mxu0 }
 0x351   :  { %2329 = vst [vmem:[#allocation9 + $0x80] sm:$0xff] %v2289_v11 }
 0x356   :  { %v2309_v61 = vpop.f32.mrf.mxu1 }
 0x357   :  { %2330 = vst [vmem:[#allocation9 + $0x88] sm:$0xff] %v2309_v61 }
 0x358   :  { %2343 = dma.vmem_to_hbm [thread:$0]  %s2336_s8, 2304, %s2338_s11, [#allocation5], %s2507_s12, %s2507_s12, %s2508_s13  }
 0x359   :  { %2490 = dma.done.wait [#allocation5], 2304  }
 0x35a   :  { %2491 = vsyncadd [#allocation5], 4294964992 }
 0x35b   :  { %2348 = vsyncpa [#allocation4], 1 }
 0x35c   :  { %2349 = vsyncpa [#allocation7], 1 }
 0x35d   :  { %2350 = vsyncpa [#allocation5], 1 }

</bundles_post_ra>
